<compile_context>
chip_gen: v6e
topology: v6e:2x2x1
jax: 0.10.0
libtpu: 0.0.40
codegen_flags: <defaults>
</compile_context>

<pallas_src>
import math
import jax
import jax.numpy as jnp
from jax.experimental import pallas as pl
from jax.experimental.pallas import tpu as pltpu

# ---- model hyper-parameters (small, consistent with the module) ----
TARGET_VOCAB = 50
EMBED = 32          # target_embed_dim
N_HEADS = 4         # target_n_heads
HID = 64            # target_hid_dim
N_LAYERS = 2        # target_n_layers
MAX_SEQ = 16        # decoder_max_seq_len
D_K = EMBED // N_HEADS


def _layer_norm(v):
    # nn.LayerNorm(embed_dim) with default weight=1, bias=0, eps=1e-5
    mu = jnp.mean(v, axis=-1, keepdims=True)
    var = jnp.mean(jnp.square(v - mu), axis=-1, keepdims=True)
    return (v - mu) * jax.lax.rsqrt(var + 1e-5)


def decoder_kernel(x_ref, enc_ref, smask_ref, emask_ref,
                   wq1_ref, wk1_ref, wv1_ref, wo1_ref,
                   wq2_ref, wk2_ref, wv2_ref, wo2_ref,
                   w1_ref, w2_ref,
                   y_ref, sattn_ref, eattn_ref):
    """Whole Decoder stack (all layers, all batches) in one kernel invocation.

    x_ref:     (B, T, D)   embedded decoder inputs (word + positional embedding)
    enc_ref:   (B, S, D)   encoder outputs
    smask_ref: (B, T, T)   additive self-attn mask (-1e9 masked / 0 visible)
    emask_ref: (B, T, S)   additive enc-dec mask
    w*_ref:    (L, in, out) stacked per-layer weights
    y_ref:     (B, T, D)
    sattn_ref: (L, H, B, T, T)   (wrapper transposes to per-layer (B, H, T, T))
    eattn_ref: (L, H, B, T, S)
    """
    B, T, D = x_ref.shape
    S = enc_ref.shape[1]
    n_layers = wq1_ref.shape[0]
    scale = 1.0 / math.sqrt(D_K)

    # TODO(synk): nn.Linear biases omitted — assumes bias=False in the reference
    # DecoderLayer / MultiHeadAttention / FFN (as in the tutorial this code mirrors).

    x = x_ref[...].reshape(B * T, D)       # batch folded into sublane axis
    enc = enc_ref[...].reshape(B * S, D)
    smask = smask_ref[...]
    emask = emask_ref[...]

    def mha(q2, kv2, Lq, Lk, mask_add, wq, wk, wv, wo, attn_ref, layer):
        # q2: (B*Lq, D), kv2: (B*Lk, D) — single MXU matmul per projection
        Q = jnp.dot(q2, wq, preferred_element_type=jnp.float32).reshape(B, Lq, D)
        K = jnp.dot(kv2, wk, preferred_element_type=jnp.float32).reshape(B, Lk, D)
        V = jnp.dot(kv2, wv, preferred_element_type=jnp.float32).reshape(B, Lk, D)
        out = jnp.zeros((B * Lq, D), jnp.float32)
        for h in range(N_HEADS):                       # static unroll (H = 4)
            lo, hi = h * D_K, (h + 1) * D_K
            s = jnp.einsum('bqd,bkd->bqk', Q[:, :, lo:hi], K[:, :, lo:hi],
                           preferred_element_type=jnp.float32) * scale + mask_add
            m = jnp.max(s, axis=-1, keepdims=True)
            e = jnp.exp(s - m)
            attn = e * pl.reciprocal(jnp.sum(e, axis=-1, keepdims=True), approx=True)
            attn_ref[layer, h] = attn                  # direct contiguous block store
            ctx = jnp.einsum('bqk,bkd->bqd', attn, V[:, :, lo:hi],
                             preferred_element_type=jnp.float32)
            # fold head h through its row-block of the output projection
            out = out + jnp.dot(ctx.reshape(B * Lq, D_K), wo[lo:hi, :],
                                preferred_element_type=jnp.float32)
        return _layer_norm(out + q2)                   # residual + LayerNorm

    for l in range(n_layers):                          # static unroll over fused layers
        # masked self-attention (pad + causal mask)
        x = mha(x, x, T, T, smask,
                wq1_ref[l], wk1_ref[l], wv1_ref[l], wo1_ref[l], sattn_ref, l)
        # encoder-decoder attention (pad mask on encoder keys)
        x = mha(x, enc, T, S, emask,
                wq2_ref[l], wk2_ref[l], wv2_ref[l], wo2_ref[l], eattn_ref, l)
        # position-wise FFN: Linear -> ReLU -> Linear, residual + LayerNorm
        inner = jnp.maximum(
            jnp.dot(x, w1_ref[l], preferred_element_type=jnp.float32), 0.0)
        ff = jnp.dot(inner, w2_ref[l], preferred_element_type=jnp.float32)
        x = _layer_norm(ff + x)

    y_ref[...] = x.reshape(B, T, D)


def decoder_pallas(x0, enc_outputs, smask_add, emask_add, stacked_weights):
    B, T, D = x0.shape
    S = enc_outputs.shape[1]
    L = stacked_weights[0].shape[0]

    out_shape = (jax.ShapeDtypeStruct((B, T, D), jnp.float32),
                 jax.ShapeDtypeStruct((L, N_HEADS, B, T, T), jnp.float32),
                 jax.ShapeDtypeStruct((L, N_HEADS, B, T, S), jnp.float32))

    n_in = 4 + len(stacked_weights)
    return pl.pallas_call(
        decoder_kernel,
        out_shape=out_shape,
        # no grid: every operand is a single whole-array block resident in VMEM
        in_specs=[pl.BlockSpec(memory_space=pltpu.MemorySpace.VMEM)
                  for _ in range(n_in)],
        out_specs=tuple(pl.BlockSpec(memory_space=pltpu.MemorySpace.VMEM)
                        for _ in range(3)),
    )(x0, enc_outputs, smask_add, emask_add, *stacked_weights)


# ----------------------- plain-JAX glue -----------------------

def sinusoid_pos_table(max_len, d):
    pos = jnp.arange(max_len, dtype=jnp.float32)[:, None]
    i = jnp.arange(d)[None, :]
    angle = pos / jnp.power(10000.0, (2.0 * (i // 2)).astype(jnp.float32) / d)
    return jnp.where(i % 2 == 0, jnp.sin(angle), jnp.cos(angle)).astype(jnp.float32)


def decoder_forward(dec_inputs, enc_inputs, enc_outputs, emb_table, pe_table,
                    layer_params):
    B, T = dec_inputs.shape
    S = enc_inputs.shape[1]

    word_emb = emb_table[dec_inputs]                 # (B, T, D)
    pos_emb = pe_table[:T][None]                     # (1, T, D) broadcast
    x0 = (word_emb + pos_emb).astype(jnp.float32)
    # TODO(synk): nn.Dropout(p=0.1) treated as identity (deterministic / inference).

    # additive masks: -1e9 where attention is forbidden, 0 elsewhere
    pad_self = jnp.broadcast_to((dec_inputs == 0)[:, None, :], (B, T, T))
    causal = jnp.broadcast_to(jnp.triu(jnp.ones((T, T), jnp.float32), k=1) > 0,
                              (B, T, T))
    smask_add = jnp.where(pad_self | causal, -1e9, 0.0).astype(jnp.float32)
    pad_enc = jnp.broadcast_to((enc_inputs == 0)[:, None, :], (B, T, S))
    emask_add = jnp.where(pad_enc, -1e9, 0.0).astype(jnp.float32)

    # stack per-layer weights: 10 arrays of shape (L, in, out)
    stacked = [jnp.stack([p[i] for p in layer_params], axis=0) for i in range(10)]

    y, sattn_raw, eattn_raw = decoder_pallas(x0, enc_outputs, smask_add, emask_add,
                                             stacked)

    # reorder to the module's per-layer (B, H, Lq, Lk) attention tensors
    self_attns = [jnp.transpose(sattn_raw[l], (1, 0, 2, 3)) for l in range(N_LAYERS)]
    enc_attns = [jnp.transpose(eattn_raw[l], (1, 0, 2, 3)) for l in range(N_LAYERS)]
    return y, self_attns, enc_attns


decoder_forward_jit = jax.jit(decoder_forward)


def make_params(key):
    """Deterministic parameter init (shapes from the module __init__)."""
    keys = jax.random.split(key, 2 + N_LAYERS)
    emb_table = jax.random.normal(keys[0], (TARGET_VOCAB, EMBED), jnp.float32)
    pe_table = sinusoid_pos_table(MAX_SEQ, EMBED)
    layer_params = []
    for l in range(N_LAYERS):
        ks = jax.random.split(keys[2 + l], 10)

        def w(k, shp):
            return (jax.random.normal(k, shp, jnp.float32) * 0.1).astype(jnp.float32)

        layer_params.append((
            w(ks[0], (EMBED, EMBED)), w(ks[1], (EMBED, EMBED)),   # self-attn W_Q, W_K
            w(ks[2], (EMBED, EMBED)), w(ks[3], (EMBED, EMBED)),   # self-attn W_V, fc
            w(ks[4], (EMBED, EMBED)), w(ks[5], (EMBED, EMBED)),   # enc-dec W_Q, W_K
            w(ks[6], (EMBED, EMBED)), w(ks[7], (EMBED, EMBED)),   # enc-dec W_V, fc
            w(ks[8], (EMBED, HID)),   w(ks[9], (HID, EMBED)),     # FFN
        ))
    return emb_table, pe_table, layer_params


if __name__ == "__main__":
    B, TGT_LEN, SRC_LEN = 2, 8, 8
    key = jax.random.PRNGKey(0)
    k_dec, k_enc, k_encout, k_params = jax.random.split(key, 4)

    dec_inputs = jax.random.randint(k_dec, (B, TGT_LEN), 0, TARGET_VOCAB, jnp.int32)
    enc_inputs = jax.random.randint(k_enc, (B, SRC_LEN), 0, TARGET_VOCAB, jnp.int32)
    # force some PAD (id 0) tokens so the pad masks are exercised
    dec_inputs = dec_inputs.at[:, -1].set(0)
    enc_inputs = enc_inputs.at[:, -2:].set(0)
    enc_outputs = jax.random.normal(k_encout, (B, SRC_LEN, EMBED), jnp.float32)

    emb_table, pe_table, layer_params = make_params(k_params)

    dec_out, dec_self_attns, dec_enc_attns = decoder_forward_jit(
        dec_inputs, enc_inputs, enc_outputs, emb_table, pe_table, layer_params)

    jax.block_until_ready(dec_out)
    for a in dec_self_attns + dec_enc_attns:
        jax.block_until_ready(a)

    assert dec_out.shape == (B, TGT_LEN, EMBED)
    assert dec_self_attns[0].shape == (B, N_HEADS, TGT_LEN, TGT_LEN)
    assert dec_enc_attns[0].shape == (B, N_HEADS, TGT_LEN, SRC_LEN)
    assert len(dec_self_attns) == N_LAYERS and len(dec_enc_attns) == N_LAYERS
    assert bool(jnp.all(jnp.isfinite(dec_out)))
    print("KERNEL_OK")
</pallas_src>

<mosaic_0001>
module attributes {stable_mosaic.version = 11 : i64} {
  func.func @decoder_kernel(%arg0: memref<2x8x32xf32, #tpu.memory_space<vmem>>, %arg1: memref<2x8x32xf32, #tpu.memory_space<vmem>>, %arg2: memref<2x8x8xf32, #tpu.memory_space<vmem>>, %arg3: memref<2x8x8xf32, #tpu.memory_space<vmem>>, %arg4: memref<2x32x32xf32, #tpu.memory_space<vmem>>, %arg5: memref<2x32x32xf32, #tpu.memory_space<vmem>>, %arg6: memref<2x32x32xf32, #tpu.memory_space<vmem>>, %arg7: memref<2x32x32xf32, #tpu.memory_space<vmem>>, %arg8: memref<2x32x32xf32, #tpu.memory_space<vmem>>, %arg9: memref<2x32x32xf32, #tpu.memory_space<vmem>>, %arg10: memref<2x32x32xf32, #tpu.memory_space<vmem>>, %arg11: memref<2x32x32xf32, #tpu.memory_space<vmem>>, %arg12: memref<2x32x64xf32, #tpu.memory_space<vmem>>, %arg13: memref<2x64x32xf32, #tpu.memory_space<vmem>>, %arg14: memref<2x8x32xf32, #tpu.memory_space<vmem>>, %arg15: memref<2x4x2x8x8xf32, #tpu.memory_space<vmem>>, %arg16: memref<2x4x2x8x8xf32, #tpu.memory_space<vmem>>) attributes {dimension_semantics = [], scalar_prefetch = 0 : i64, scratch_operands = 0 : i64, tpu.core_type = #tpu.core_type<tc>} {
    %c0 = arith.constant 0 : index
    %c0_0 = arith.constant 0 : index
    %c0_1 = arith.constant 0 : index
    %0 = vector.load %arg0[%c0, %c0_0, %c0_1] : memref<2x8x32xf32, #tpu.memory_space<vmem>>, vector<2x8x32xf32>
    %1 = vector.shape_cast %0 : vector<2x8x32xf32> to vector<16x32xf32>
    %c0_2 = arith.constant 0 : index
    %c0_3 = arith.constant 0 : index
    %c0_4 = arith.constant 0 : index
    %2 = vector.load %arg1[%c0_2, %c0_3, %c0_4] : memref<2x8x32xf32, #tpu.memory_space<vmem>>, vector<2x8x32xf32>
    %3 = vector.shape_cast %2 : vector<2x8x32xf32> to vector<16x32xf32>
    %c0_5 = arith.constant 0 : index
    %c0_6 = arith.constant 0 : index
    %c0_7 = arith.constant 0 : index
    %4 = vector.load %arg2[%c0_5, %c0_6, %c0_7] : memref<2x8x8xf32, #tpu.memory_space<vmem>>, vector<2x8x8xf32>
    %c0_8 = arith.constant 0 : index
    %c0_9 = arith.constant 0 : index
    %c0_10 = arith.constant 0 : index
    %5 = vector.load %arg3[%c0_8, %c0_9, %c0_10] : memref<2x8x8xf32, #tpu.memory_space<vmem>>, vector<2x8x8xf32>
    %c0_11 = arith.constant 0 : index
    %c0_12 = arith.constant 0 : index
    %c0_13 = arith.constant 0 : index
    %6 = vector.load %arg4[%c0_11, %c0_12, %c0_13] : memref<2x32x32xf32, #tpu.memory_space<vmem>>, vector<1x32x32xf32>
    %7 = vector.shape_cast %6 : vector<1x32x32xf32> to vector<32x32xf32>
    %c0_14 = arith.constant 0 : index
    %c0_15 = arith.constant 0 : index
    %c0_16 = arith.constant 0 : index
    %8 = vector.load %arg5[%c0_14, %c0_15, %c0_16] : memref<2x32x32xf32, #tpu.memory_space<vmem>>, vector<1x32x32xf32>
    %9 = vector.shape_cast %8 : vector<1x32x32xf32> to vector<32x32xf32>
    %c0_17 = arith.constant 0 : index
    %c0_18 = arith.constant 0 : index
    %c0_19 = arith.constant 0 : index
    %10 = vector.load %arg6[%c0_17, %c0_18, %c0_19] : memref<2x32x32xf32, #tpu.memory_space<vmem>>, vector<1x32x32xf32>
    %11 = vector.shape_cast %10 : vector<1x32x32xf32> to vector<32x32xf32>
    %c0_20 = arith.constant 0 : index
    %c0_21 = arith.constant 0 : index
    %c0_22 = arith.constant 0 : index
    %12 = vector.load %arg7[%c0_20, %c0_21, %c0_22] : memref<2x32x32xf32, #tpu.memory_space<vmem>>, vector<1x32x32xf32>
    %13 = vector.shape_cast %12 : vector<1x32x32xf32> to vector<32x32xf32>
    %cst = arith.constant dense<0.000000e+00> : vector<16x32xf32>
    %14 = tpu.matmul %1, %7, %cst {dimension_numbers = #tpu.dot_dimension_numbers<[1], [0], [0], [1], [0, 0, 1, 1], [], []>} : vector<16x32xf32>, vector<32x32xf32>, vector<16x32xf32> -> vector<16x32xf32>
    %15 = vector.shape_cast %14 : vector<16x32xf32> to vector<2x8x32xf32>
    %cst_23 = arith.constant dense<0.000000e+00> : vector<16x32xf32>
    %16 = tpu.matmul %1, %9, %cst_23 {dimension_numbers = #tpu.dot_dimension_numbers<[1], [0], [0], [1], [0, 0, 1, 1], [], []>} : vector<16x32xf32>, vector<32x32xf32>, vector<16x32xf32> -> vector<16x32xf32>
    %17 = vector.shape_cast %16 : vector<16x32xf32> to vector<2x8x32xf32>
    %cst_24 = arith.constant dense<0.000000e+00> : vector<16x32xf32>
    %18 = tpu.matmul %1, %11, %cst_24 {dimension_numbers = #tpu.dot_dimension_numbers<[1], [0], [0], [1], [0, 0, 1, 1], [], []>} : vector<16x32xf32>, vector<32x32xf32>, vector<16x32xf32> -> vector<16x32xf32>
    %19 = vector.shape_cast %18 : vector<16x32xf32> to vector<2x8x32xf32>
    %cst_25 = arith.constant 0.000000e+00 : f32
    %20 = vector.broadcast %cst_25 : f32 to vector<16x32xf32>
    %21 = vector.extract_strided_slice %15 {offsets = [0, 0, 0], sizes = [2, 8, 8], strides = [1, 1, 1]} : vector<2x8x32xf32> to vector<2x8x8xf32>
    %22 = vector.extract_strided_slice %17 {offsets = [0, 0, 0], sizes = [2, 8, 8], strides = [1, 1, 1]} : vector<2x8x32xf32> to vector<2x8x8xf32>
    "tpu.trace_start"() <{level = 10 : i32, message = "bqd,bkd->bqk"}> : () -> ()
    %cst_26 = arith.constant dense<0.000000e+00> : vector<2x8x8xf32>
    %23 = tpu.matmul %21, %22, %cst_26 {dimension_numbers = #tpu.dot_dimension_numbers<[2], [2], [1], [1], [0, 0, 0, 1, 1, 1], [0], [0]>} : vector<2x8x8xf32>, vector<2x8x8xf32>, vector<2x8x8xf32> -> vector<2x8x8xf32>
    "tpu.trace_stop"() : () -> ()
    %cst_27 = arith.constant 0.353553385 : f32
    %24 = vector.broadcast %cst_27 : f32 to vector<2x8x8xf32>
    %25 = arith.mulf %23, %24 : vector<2x8x8xf32>
    %26 = arith.addf %25, %4 : vector<2x8x8xf32>
    %cst_28 = arith.constant dense<0xFF800000> : vector<2x8xf32>
    %27 = vector.multi_reduction <maximumf>, %26, %cst_28 [2] : vector<2x8x8xf32> to vector<2x8xf32>
    %28 = vector.shape_cast %27 : vector<2x8xf32> to vector<2x8x1xf32>
    %29 = vector.broadcast %28 : vector<2x8x1xf32> to vector<2x8x8xf32>
    %30 = arith.subf %26, %29 : vector<2x8x8xf32>
    %31 = math.exp %30 : vector<2x8x8xf32>
    %cst_29 = arith.constant dense<0.000000e+00> : vector<2x8xf32>
    %32 = vector.multi_reduction <add>, %31, %cst_29 [2] : vector<2x8x8xf32> to vector<2x8xf32>
    %33 = vector.shape_cast %32 : vector<2x8xf32> to vector<2x8x1xf32>
    %34 = tpu.reciprocal %33 {approx = true} : vector<2x8x1xf32> -> vector<2x8x1xf32>
    %35 = vector.broadcast %34 : vector<2x8x1xf32> to vector<2x8x8xf32>
    %36 = arith.mulf %31, %35 : vector<2x8x8xf32>
    %c0_30 = arith.constant 0 : index
    %c0_31 = arith.constant 0 : index
    %c0_32 = arith.constant 0 : index
    %c0_33 = arith.constant 0 : index
    %c0_34 = arith.constant 0 : index
    %37 = vector.load %arg15[%c0_30, %c0_31, %c0_32, %c0_33, %c0_34] : memref<2x4x2x8x8xf32, #tpu.memory_space<vmem>>, vector<1x1x2x8x8xf32>
    %38 = vector.shape_cast %37 : vector<1x1x2x8x8xf32> to vector<2x8x8xf32>
    %39 = vector.shape_cast %36 : vector<2x8x8xf32> to vector<1x1x2x8x8xf32>
    tpu.vector_store %arg15[%c0_30, %c0_31, %c0_32, %c0_33, %c0_34], %39 {strides = array<i32>} : memref<2x4x2x8x8xf32, #tpu.memory_space<vmem>>, vector<1x1x2x8x8xf32>,
    %40 = vector.extract_strided_slice %19 {offsets = [0, 0, 0], sizes = [2, 8, 8], strides = [1, 1, 1]} : vector<2x8x32xf32> to vector<2x8x8xf32>
    "tpu.trace_start"() <{level = 10 : i32, message = "bqk,bkd->bqd"}> : () -> ()
    %cst_35 = arith.constant dense<0.000000e+00> : vector<2x8x8xf32>
    %41 = tpu.matmul %36, %40, %cst_35 {dimension_numbers = #tpu.dot_dimension_numbers<[2], [1], [1], [2], [0, 0, 0, 1, 1, 2], [0], [0]>} : vector<2x8x8xf32>, vector<2x8x8xf32>, vector<2x8x8xf32> -> vector<2x8x8xf32>
    "tpu.trace_stop"() : () -> ()
    %42 = vector.shape_cast %41 : vector<2x8x8xf32> to vector<16x8xf32>
    %43 = vector.extract_strided_slice %13 {offsets = [0, 0], sizes = [8, 32], strides = [1, 1]} : vector<32x32xf32> to vector<8x32xf32>
    %cst_36 = arith.constant dense<0.000000e+00> : vector<16x32xf32>
    %44 = tpu.matmul %42, %43, %cst_36 {dimension_numbers = #tpu.dot_dimension_numbers<[1], [0], [0], [1], [0, 0, 1, 1], [], []>} : vector<16x8xf32>, vector<8x32xf32>, vector<16x32xf32> -> vector<16x32xf32>
    %45 = arith.addf %20, %44 : vector<16x32xf32>
    %46 = vector.extract_strided_slice %15 {offsets = [0, 0, 8], sizes = [2, 8, 8], strides = [1, 1, 1]} : vector<2x8x32xf32> to vector<2x8x8xf32>
    %47 = vector.extract_strided_slice %17 {offsets = [0, 0, 8], sizes = [2, 8, 8], strides = [1, 1, 1]} : vector<2x8x32xf32> to vector<2x8x8xf32>
    "tpu.trace_start"() <{level = 10 : i32, message = "bqd,bkd->bqk"}> : () -> ()
    %cst_37 = arith.constant dense<0.000000e+00> : vector<2x8x8xf32>
    %48 = tpu.matmul %46, %47, %cst_37 {dimension_numbers = #tpu.dot_dimension_numbers<[2], [2], [1], [1], [0, 0, 0, 1, 1, 1], [0], [0]>} : vector<2x8x8xf32>, vector<2x8x8xf32>, vector<2x8x8xf32> -> vector<2x8x8xf32>
    "tpu.trace_stop"() : () -> ()
    %cst_38 = arith.constant 0.353553385 : f32
    %49 = vector.broadcast %cst_38 : f32 to vector<2x8x8xf32>
    %50 = arith.mulf %48, %49 : vector<2x8x8xf32>
    %51 = arith.addf %50, %4 : vector<2x8x8xf32>
    %cst_39 = arith.constant dense<0xFF800000> : vector<2x8xf32>
    %52 = vector.multi_reduction <maximumf>, %51, %cst_39 [2] : vector<2x8x8xf32> to vector<2x8xf32>
    %53 = vector.shape_cast %52 : vector<2x8xf32> to vector<2x8x1xf32>
    %54 = vector.broadcast %53 : vector<2x8x1xf32> to vector<2x8x8xf32>
    %55 = arith.subf %51, %54 : vector<2x8x8xf32>
    %56 = math.exp %55 : vector<2x8x8xf32>
    %cst_40 = arith.constant dense<0.000000e+00> : vector<2x8xf32>
    %57 = vector.multi_reduction <add>, %56, %cst_40 [2] : vector<2x8x8xf32> to vector<2x8xf32>
    %58 = vector.shape_cast %57 : vector<2x8xf32> to vector<2x8x1xf32>
    %59 = tpu.reciprocal %58 {approx = true} : vector<2x8x1xf32> -> vector<2x8x1xf32>
    %60 = vector.broadcast %59 : vector<2x8x1xf32> to vector<2x8x8xf32>
    %61 = arith.mulf %56, %60 : vector<2x8x8xf32>
    %c0_41 = arith.constant 0 : index
    %c1 = arith.constant 1 : index
    %c0_42 = arith.constant 0 : index
    %c0_43 = arith.constant 0 : index
    %c0_44 = arith.constant 0 : index
    %62 = vector.load %arg15[%c0_41, %c1, %c0_42, %c0_43, %c0_44] : memref<2x4x2x8x8xf32, #tpu.memory_space<vmem>>, vector<1x1x2x8x8xf32>
    %63 = vector.shape_cast %62 : vector<1x1x2x8x8xf32> to vector<2x8x8xf32>
    %64 = vector.shape_cast %61 : vector<2x8x8xf32> to vector<1x1x2x8x8xf32>
    tpu.vector_store %arg15[%c0_41, %c1, %c0_42, %c0_43, %c0_44], %64 {strides = array<i32>} : memref<2x4x2x8x8xf32, #tpu.memory_space<vmem>>, vector<1x1x2x8x8xf32>,
    %65 = vector.extract_strided_slice %19 {offsets = [0, 0, 8], sizes = [2, 8, 8], strides = [1, 1, 1]} : vector<2x8x32xf32> to vector<2x8x8xf32>
    "tpu.trace_start"() <{level = 10 : i32, message = "bqk,bkd->bqd"}> : () -> ()
    %cst_45 = arith.constant dense<0.000000e+00> : vector<2x8x8xf32>
    %66 = tpu.matmul %61, %65, %cst_45 {dimension_numbers = #tpu.dot_dimension_numbers<[2], [1], [1], [2], [0, 0, 0, 1, 1, 2], [0], [0]>} : vector<2x8x8xf32>, vector<2x8x8xf32>, vector<2x8x8xf32> -> vector<2x8x8xf32>
    "tpu.trace_stop"() : () -> ()
    %67 = vector.shape_cast %66 : vector<2x8x8xf32> to vector<16x8xf32>
    %68 = vector.extract_strided_slice %13 {offsets = [8, 0], sizes = [8, 32], strides = [1, 1]} : vector<32x32xf32> to vector<8x32xf32>
    %cst_46 = arith.constant dense<0.000000e+00> : vector<16x32xf32>
    %69 = tpu.matmul %67, %68, %cst_46 {dimension_numbers = #tpu.dot_dimension_numbers<[1], [0], [0], [1], [0, 0, 1, 1], [], []>} : vector<16x8xf32>, vector<8x32xf32>, vector<16x32xf32> -> vector<16x32xf32>
    %70 = arith.addf %45, %69 : vector<16x32xf32>
    %71 = vector.extract_strided_slice %15 {offsets = [0, 0, 16], sizes = [2, 8, 8], strides = [1, 1, 1]} : vector<2x8x32xf32> to vector<2x8x8xf32>
    %72 = vector.extract_strided_slice %17 {offsets = [0, 0, 16], sizes = [2, 8, 8], strides = [1, 1, 1]} : vector<2x8x32xf32> to vector<2x8x8xf32>
    "tpu.trace_start"() <{level = 10 : i32, message = "bqd,bkd->bqk"}> : () -> ()
    %cst_47 = arith.constant dense<0.000000e+00> : vector<2x8x8xf32>
    %73 = tpu.matmul %71, %72, %cst_47 {dimension_numbers = #tpu.dot_dimension_numbers<[2], [2], [1], [1], [0, 0, 0, 1, 1, 1], [0], [0]>} : vector<2x8x8xf32>, vector<2x8x8xf32>, vector<2x8x8xf32> -> vector<2x8x8xf32>
    "tpu.trace_stop"() : () -> ()
    %cst_48 = arith.constant 0.353553385 : f32
    %74 = vector.broadcast %cst_48 : f32 to vector<2x8x8xf32>
    %75 = arith.mulf %73, %74 : vector<2x8x8xf32>
    %76 = arith.addf %75, %4 : vector<2x8x8xf32>
    %cst_49 = arith.constant dense<0xFF800000> : vector<2x8xf32>
    %77 = vector.multi_reduction <maximumf>, %76, %cst_49 [2] : vector<2x8x8xf32> to vector<2x8xf32>
    %78 = vector.shape_cast %77 : vector<2x8xf32> to vector<2x8x1xf32>
    %79 = vector.broadcast %78 : vector<2x8x1xf32> to vector<2x8x8xf32>
    %80 = arith.subf %76, %79 : vector<2x8x8xf32>
    %81 = math.exp %80 : vector<2x8x8xf32>
    %cst_50 = arith.constant dense<0.000000e+00> : vector<2x8xf32>
    %82 = vector.multi_reduction <add>, %81, %cst_50 [2] : vector<2x8x8xf32> to vector<2x8xf32>
    %83 = vector.shape_cast %82 : vector<2x8xf32> to vector<2x8x1xf32>
    %84 = tpu.reciprocal %83 {approx = true} : vector<2x8x1xf32> -> vector<2x8x1xf32>
    %85 = vector.broadcast %84 : vector<2x8x1xf32> to vector<2x8x8xf32>
    %86 = arith.mulf %81, %85 : vector<2x8x8xf32>
    %c0_51 = arith.constant 0 : index
    %c2 = arith.constant 2 : index
    %c0_52 = arith.constant 0 : index
    %c0_53 = arith.constant 0 : index
    %c0_54 = arith.constant 0 : index
    %87 = vector.load %arg15[%c0_51, %c2, %c0_52, %c0_53, %c0_54] : memref<2x4x2x8x8xf32, #tpu.memory_space<vmem>>, vector<1x1x2x8x8xf32>
    %88 = vector.shape_cast %87 : vector<1x1x2x8x8xf32> to vector<2x8x8xf32>
    %89 = vector.shape_cast %86 : vector<2x8x8xf32> to vector<1x1x2x8x8xf32>
    tpu.vector_store %arg15[%c0_51, %c2, %c0_52, %c0_53, %c0_54], %89 {strides = array<i32>} : memref<2x4x2x8x8xf32, #tpu.memory_space<vmem>>, vector<1x1x2x8x8xf32>,
    %90 = vector.extract_strided_slice %19 {offsets = [0, 0, 16], sizes = [2, 8, 8], strides = [1, 1, 1]} : vector<2x8x32xf32> to vector<2x8x8xf32>
    "tpu.trace_start"() <{level = 10 : i32, message = "bqk,bkd->bqd"}> : () -> ()
    %cst_55 = arith.constant dense<0.000000e+00> : vector<2x8x8xf32>
    %91 = tpu.matmul %86, %90, %cst_55 {dimension_numbers = #tpu.dot_dimension_numbers<[2], [1], [1], [2], [0, 0, 0, 1, 1, 2], [0], [0]>} : vector<2x8x8xf32>, vector<2x8x8xf32>, vector<2x8x8xf32> -> vector<2x8x8xf32>
    "tpu.trace_stop"() : () -> ()
    %92 = vector.shape_cast %91 : vector<2x8x8xf32> to vector<16x8xf32>
    %93 = vector.extract_strided_slice %13 {offsets = [16, 0], sizes = [8, 32], strides = [1, 1]} : vector<32x32xf32> to vector<8x32xf32>
    %cst_56 = arith.constant dense<0.000000e+00> : vector<16x32xf32>
    %94 = tpu.matmul %92, %93, %cst_56 {dimension_numbers = #tpu.dot_dimension_numbers<[1], [0], [0], [1], [0, 0, 1, 1], [], []>} : vector<16x8xf32>, vector<8x32xf32>, vector<16x32xf32> -> vector<16x32xf32>
    %95 = arith.addf %70, %94 : vector<16x32xf32>
    %96 = vector.extract_strided_slice %15 {offsets = [0, 0, 24], sizes = [2, 8, 8], strides = [1, 1, 1]} : vector<2x8x32xf32> to vector<2x8x8xf32>
    %97 = vector.extract_strided_slice %17 {offsets = [0, 0, 24], sizes = [2, 8, 8], strides = [1, 1, 1]} : vector<2x8x32xf32> to vector<2x8x8xf32>
    "tpu.trace_start"() <{level = 10 : i32, message = "bqd,bkd->bqk"}> : () -> ()
    %cst_57 = arith.constant dense<0.000000e+00> : vector<2x8x8xf32>
    %98 = tpu.matmul %96, %97, %cst_57 {dimension_numbers = #tpu.dot_dimension_numbers<[2], [2], [1], [1], [0, 0, 0, 1, 1, 1], [0], [0]>} : vector<2x8x8xf32>, vector<2x8x8xf32>, vector<2x8x8xf32> -> vector<2x8x8xf32>
    "tpu.trace_stop"() : () -> ()
    %cst_58 = arith.constant 0.353553385 : f32
    %99 = vector.broadcast %cst_58 : f32 to vector<2x8x8xf32>
    %100 = arith.mulf %98, %99 : vector<2x8x8xf32>
    %101 = arith.addf %100, %4 : vector<2x8x8xf32>
    %cst_59 = arith.constant dense<0xFF800000> : vector<2x8xf32>
    %102 = vector.multi_reduction <maximumf>, %101, %cst_59 [2] : vector<2x8x8xf32> to vector<2x8xf32>
    %103 = vector.shape_cast %102 : vector<2x8xf32> to vector<2x8x1xf32>
    %104 = vector.broadcast %103 : vector<2x8x1xf32> to vector<2x8x8xf32>
    %105 = arith.subf %101, %104 : vector<2x8x8xf32>
    %106 = math.exp %105 : vector<2x8x8xf32>
    %cst_60 = arith.constant dense<0.000000e+00> : vector<2x8xf32>
    %107 = vector.multi_reduction <add>, %106, %cst_60 [2] : vector<2x8x8xf32> to vector<2x8xf32>
    %108 = vector.shape_cast %107 : vector<2x8xf32> to vector<2x8x1xf32>
    %109 = tpu.reciprocal %108 {approx = true} : vector<2x8x1xf32> -> vector<2x8x1xf32>
    %110 = vector.broadcast %109 : vector<2x8x1xf32> to vector<2x8x8xf32>
    %111 = arith.mulf %106, %110 : vector<2x8x8xf32>
    %c0_61 = arith.constant 0 : index
    %c3 = arith.constant 3 : index
    %c0_62 = arith.constant 0 : index
    %c0_63 = arith.constant 0 : index
    %c0_64 = arith.constant 0 : index
    %112 = vector.load %arg15[%c0_61, %c3, %c0_62, %c0_63, %c0_64] : memref<2x4x2x8x8xf32, #tpu.memory_space<vmem>>, vector<1x1x2x8x8xf32>
    %113 = vector.shape_cast %112 : vector<1x1x2x8x8xf32> to vector<2x8x8xf32>
    %114 = vector.shape_cast %111 : vector<2x8x8xf32> to vector<1x1x2x8x8xf32>
    tpu.vector_store %arg15[%c0_61, %c3, %c0_62, %c0_63, %c0_64], %114 {strides = array<i32>} : memref<2x4x2x8x8xf32, #tpu.memory_space<vmem>>, vector<1x1x2x8x8xf32>,
    %115 = vector.extract_strided_slice %19 {offsets = [0, 0, 24], sizes = [2, 8, 8], strides = [1, 1, 1]} : vector<2x8x32xf32> to vector<2x8x8xf32>
    "tpu.trace_start"() <{level = 10 : i32, message = "bqk,bkd->bqd"}> : () -> ()
    %cst_65 = arith.constant dense<0.000000e+00> : vector<2x8x8xf32>
    %116 = tpu.matmul %111, %115, %cst_65 {dimension_numbers = #tpu.dot_dimension_numbers<[2], [1], [1], [2], [0, 0, 0, 1, 1, 2], [0], [0]>} : vector<2x8x8xf32>, vector<2x8x8xf32>, vector<2x8x8xf32> -> vector<2x8x8xf32>
    "tpu.trace_stop"() : () -> ()
    %117 = vector.shape_cast %116 : vector<2x8x8xf32> to vector<16x8xf32>
    %118 = vector.extract_strided_slice %13 {offsets = [24, 0], sizes = [8, 32], strides = [1, 1]} : vector<32x32xf32> to vector<8x32xf32>
    %cst_66 = arith.constant dense<0.000000e+00> : vector<16x32xf32>
    %119 = tpu.matmul %117, %118, %cst_66 {dimension_numbers = #tpu.dot_dimension_numbers<[1], [0], [0], [1], [0, 0, 1, 1], [], []>} : vector<16x8xf32>, vector<8x32xf32>, vector<16x32xf32> -> vector<16x32xf32>
    %120 = arith.addf %95, %119 : vector<16x32xf32>
    %121 = arith.addf %120, %1 : vector<16x32xf32>
    %cst_67 = arith.constant dense<0.000000e+00> : vector<16xf32>
    %122 = vector.multi_reduction <add>, %121, %cst_67 [1] : vector<16x32xf32> to vector<16xf32>
    %123 = vector.shape_cast %122 : vector<16xf32> to vector<16x1xf32>
    %cst_68 = arith.constant 3.200000e+01 : f32
    %124 = vector.broadcast %cst_68 : f32 to vector<16x1xf32>
    %125 = arith.divf %123, %124 : vector<16x1xf32>
    %126 = vector.broadcast %125 : vector<16x1xf32> to vector<16x32xf32>
    %127 = arith.subf %121, %126 : vector<16x32xf32>
    %128 = arith.mulf %127, %127 : vector<16x32xf32>
    %cst_69 = arith.constant dense<0.000000e+00> : vector<16xf32>
    %129 = vector.multi_reduction <add>, %128, %cst_69 [1] : vector<16x32xf32> to vector<16xf32>
    %130 = vector.shape_cast %129 : vector<16xf32> to vector<16x1xf32>
    %cst_70 = arith.constant 3.200000e+01 : f32
    %131 = vector.broadcast %cst_70 : f32 to vector<16x1xf32>
    %132 = arith.divf %130, %131 : vector<16x1xf32>
    %133 = vector.broadcast %125 : vector<16x1xf32> to vector<16x32xf32>
    %134 = arith.subf %121, %133 : vector<16x32xf32>
    %cst_71 = arith.constant 9.99999974E-6 : f32
    %135 = vector.broadcast %cst_71 : f32 to vector<16x1xf32>
    %136 = arith.addf %132, %135 : vector<16x1xf32>
    %137 = math.rsqrt %136 : vector<16x1xf32>
    %138 = vector.broadcast %137 : vector<16x1xf32> to vector<16x32xf32>
    %139 = arith.mulf %134, %138 : vector<16x32xf32>
    %c0_72 = arith.constant 0 : index
    %c0_73 = arith.constant 0 : index
    %c0_74 = arith.constant 0 : index
    %140 = vector.load %arg8[%c0_72, %c0_73, %c0_74] : memref<2x32x32xf32, #tpu.memory_space<vmem>>, vector<1x32x32xf32>
    %141 = vector.shape_cast %140 : vector<1x32x32xf32> to vector<32x32xf32>
    %c0_75 = arith.constant 0 : index
    %c0_76 = arith.constant 0 : index
    %c0_77 = arith.constant 0 : index
    %142 = vector.load %arg9[%c0_75, %c0_76, %c0_77] : memref<2x32x32xf32, #tpu.memory_space<vmem>>, vector<1x32x32xf32>
    %143 = vector.shape_cast %142 : vector<1x32x32xf32> to vector<32x32xf32>
    %c0_78 = arith.constant 0 : index
    %c0_79 = arith.constant 0 : index
    %c0_80 = arith.constant 0 : index
    %144 = vector.load %arg10[%c0_78, %c0_79, %c0_80] : memref<2x32x32xf32, #tpu.memory_space<vmem>>, vector<1x32x32xf32>
    %145 = vector.shape_cast %144 : vector<1x32x32xf32> to vector<32x32xf32>
    %c0_81 = arith.constant 0 : index
    %c0_82 = arith.constant 0 : index
    %c0_83 = arith.constant 0 : index
    %146 = vector.load %arg11[%c0_81, %c0_82, %c0_83] : memref<2x32x32xf32, #tpu.memory_space<vmem>>, vector<1x32x32xf32>
    %147 = vector.shape_cast %146 : vector<1x32x32xf32> to vector<32x32xf32>
    %cst_84 = arith.constant dense<0.000000e+00> : vector<16x32xf32>
    %148 = tpu.matmul %139, %141, %cst_84 {dimension_numbers = #tpu.dot_dimension_numbers<[1], [0], [0], [1], [0, 0, 1, 1], [], []>} : vector<16x32xf32>, vector<32x32xf32>, vector<16x32xf32> -> vector<16x32xf32>
    %149 = vector.shape_cast %148 : vector<16x32xf32> to vector<2x8x32xf32>
    %cst_85 = arith.constant dense<0.000000e+00> : vector<16x32xf32>
    %150 = tpu.matmul %3, %143, %cst_85 {dimension_numbers = #tpu.dot_dimension_numbers<[1], [0], [0], [1], [0, 0, 1, 1], [], []>} : vector<16x32xf32>, vector<32x32xf32>, vector<16x32xf32> -> vector<16x32xf32>
    %151 = vector.shape_cast %150 : vector<16x32xf32> to vector<2x8x32xf32>
    %cst_86 = arith.constant dense<0.000000e+00> : vector<16x32xf32>
    %152 = tpu.matmul %3, %145, %cst_86 {dimension_numbers = #tpu.dot_dimension_numbers<[1], [0], [0], [1], [0, 0, 1, 1], [], []>} : vector<16x32xf32>, vector<32x32xf32>, vector<16x32xf32> -> vector<16x32xf32>
    %153 = vector.shape_cast %152 : vector<16x32xf32> to vector<2x8x32xf32>
    %cst_87 = arith.constant 0.000000e+00 : f32
    %154 = vector.broadcast %cst_87 : f32 to vector<16x32xf32>
    %155 = vector.extract_strided_slice %149 {offsets = [0, 0, 0], sizes = [2, 8, 8], strides = [1, 1, 1]} : vector<2x8x32xf32> to vector<2x8x8xf32>
    %156 = vector.extract_strided_slice %151 {offsets = [0, 0, 0], sizes = [2, 8, 8], strides = [1, 1, 1]} : vector<2x8x32xf32> to vector<2x8x8xf32>
    "tpu.trace_start"() <{level = 10 : i32, message = "bqd,bkd->bqk"}> : () -> ()
    %cst_88 = arith.constant dense<0.000000e+00> : vector<2x8x8xf32>
    %157 = tpu.matmul %155, %156, %cst_88 {dimension_numbers = #tpu.dot_dimension_numbers<[2], [2], [1], [1], [0, 0, 0, 1, 1, 1], [0], [0]>} : vector<2x8x8xf32>, vector<2x8x8xf32>, vector<2x8x8xf32> -> vector<2x8x8xf32>
    "tpu.trace_stop"() : () -> ()
    %cst_89 = arith.constant 0.353553385 : f32
    %158 = vector.broadcast %cst_89 : f32 to vector<2x8x8xf32>
    %159 = arith.mulf %157, %158 : vector<2x8x8xf32>
    %160 = arith.addf %159, %5 : vector<2x8x8xf32>
    %cst_90 = arith.constant dense<0xFF800000> : vector<2x8xf32>
    %161 = vector.multi_reduction <maximumf>, %160, %cst_90 [2] : vector<2x8x8xf32> to vector<2x8xf32>
    %162 = vector.shape_cast %161 : vector<2x8xf32> to vector<2x8x1xf32>
    %163 = vector.broadcast %162 : vector<2x8x1xf32> to vector<2x8x8xf32>
    %164 = arith.subf %160, %163 : vector<2x8x8xf32>
    %165 = math.exp %164 : vector<2x8x8xf32>
    %cst_91 = arith.constant dense<0.000000e+00> : vector<2x8xf32>
    %166 = vector.multi_reduction <add>, %165, %cst_91 [2] : vector<2x8x8xf32> to vector<2x8xf32>
    %167 = vector.shape_cast %166 : vector<2x8xf32> to vector<2x8x1xf32>
    %168 = tpu.reciprocal %167 {approx = true} : vector<2x8x1xf32> -> vector<2x8x1xf32>
    %169 = vector.broadcast %168 : vector<2x8x1xf32> to vector<2x8x8xf32>
    %170 = arith.mulf %165, %169 : vector<2x8x8xf32>
    %c0_92 = arith.constant 0 : index
    %c0_93 = arith.constant 0 : index
    %c0_94 = arith.constant 0 : index
    %c0_95 = arith.constant 0 : index
    %c0_96 = arith.constant 0 : index
    %171 = vector.load %arg16[%c0_92, %c0_93, %c0_94, %c0_95, %c0_96] : memref<2x4x2x8x8xf32, #tpu.memory_space<vmem>>, vector<1x1x2x8x8xf32>
    %172 = vector.shape_cast %171 : vector<1x1x2x8x8xf32> to vector<2x8x8xf32>
    %173 = vector.shape_cast %170 : vector<2x8x8xf32> to vector<1x1x2x8x8xf32>
    tpu.vector_store %arg16[%c0_92, %c0_93, %c0_94, %c0_95, %c0_96], %173 {strides = array<i32>} : memref<2x4x2x8x8xf32, #tpu.memory_space<vmem>>, vector<1x1x2x8x8xf32>,
    %174 = vector.extract_strided_slice %153 {offsets = [0, 0, 0], sizes = [2, 8, 8], strides = [1, 1, 1]} : vector<2x8x32xf32> to vector<2x8x8xf32>
    "tpu.trace_start"() <{level = 10 : i32, message = "bqk,bkd->bqd"}> : () -> ()
    %cst_97 = arith.constant dense<0.000000e+00> : vector<2x8x8xf32>
    %175 = tpu.matmul %170, %174, %cst_97 {dimension_numbers = #tpu.dot_dimension_numbers<[2], [1], [1], [2], [0, 0, 0, 1, 1, 2], [0], [0]>} : vector<2x8x8xf32>, vector<2x8x8xf32>, vector<2x8x8xf32> -> vector<2x8x8xf32>
    "tpu.trace_stop"() : () -> ()
    %176 = vector.shape_cast %175 : vector<2x8x8xf32> to vector<16x8xf32>
    %177 = vector.extract_strided_slice %147 {offsets = [0, 0], sizes = [8, 32], strides = [1, 1]} : vector<32x32xf32> to vector<8x32xf32>
    %cst_98 = arith.constant dense<0.000000e+00> : vector<16x32xf32>
    %178 = tpu.matmul %176, %177, %cst_98 {dimension_numbers = #tpu.dot_dimension_numbers<[1], [0], [0], [1], [0, 0, 1, 1], [], []>} : vector<16x8xf32>, vector<8x32xf32>, vector<16x32xf32> -> vector<16x32xf32>
    %179 = arith.addf %154, %178 : vector<16x32xf32>
    %180 = vector.extract_strided_slice %149 {offsets = [0, 0, 8], sizes = [2, 8, 8], strides = [1, 1, 1]} : vector<2x8x32xf32> to vector<2x8x8xf32>
    %181 = vector.extract_strided_slice %151 {offsets = [0, 0, 8], sizes = [2, 8, 8], strides = [1, 1, 1]} : vector<2x8x32xf32> to vector<2x8x8xf32>
    "tpu.trace_start"() <{level = 10 : i32, message = "bqd,bkd->bqk"}> : () -> ()
    %cst_99 = arith.constant dense<0.000000e+00> : vector<2x8x8xf32>
    %182 = tpu.matmul %180, %181, %cst_99 {dimension_numbers = #tpu.dot_dimension_numbers<[2], [2], [1], [1], [0, 0, 0, 1, 1, 1], [0], [0]>} : vector<2x8x8xf32>, vector<2x8x8xf32>, vector<2x8x8xf32> -> vector<2x8x8xf32>
    "tpu.trace_stop"() : () -> ()
    %cst_100 = arith.constant 0.353553385 : f32
    %183 = vector.broadcast %cst_100 : f32 to vector<2x8x8xf32>
    %184 = arith.mulf %182, %183 : vector<2x8x8xf32>
    %185 = arith.addf %184, %5 : vector<2x8x8xf32>
    %cst_101 = arith.constant dense<0xFF800000> : vector<2x8xf32>
    %186 = vector.multi_reduction <maximumf>, %185, %cst_101 [2] : vector<2x8x8xf32> to vector<2x8xf32>
    %187 = vector.shape_cast %186 : vector<2x8xf32> to vector<2x8x1xf32>
    %188 = vector.broadcast %187 : vector<2x8x1xf32> to vector<2x8x8xf32>
    %189 = arith.subf %185, %188 : vector<2x8x8xf32>
    %190 = math.exp %189 : vector<2x8x8xf32>
    %cst_102 = arith.constant dense<0.000000e+00> : vector<2x8xf32>
    %191 = vector.multi_reduction <add>, %190, %cst_102 [2] : vector<2x8x8xf32> to vector<2x8xf32>
    %192 = vector.shape_cast %191 : vector<2x8xf32> to vector<2x8x1xf32>
    %193 = tpu.reciprocal %192 {approx = true} : vector<2x8x1xf32> -> vector<2x8x1xf32>
    %194 = vector.broadcast %193 : vector<2x8x1xf32> to vector<2x8x8xf32>
    %195 = arith.mulf %190, %194 : vector<2x8x8xf32>
    %c0_103 = arith.constant 0 : index
    %c1_104 = arith.constant 1 : index
    %c0_105 = arith.constant 0 : index
    %c0_106 = arith.constant 0 : index
    %c0_107 = arith.constant 0 : index
    %196 = vector.load %arg16[%c0_103, %c1_104, %c0_105, %c0_106, %c0_107] : memref<2x4x2x8x8xf32, #tpu.memory_space<vmem>>, vector<1x1x2x8x8xf32>
    %197 = vector.shape_cast %196 : vector<1x1x2x8x8xf32> to vector<2x8x8xf32>
    %198 = vector.shape_cast %195 : vector<2x8x8xf32> to vector<1x1x2x8x8xf32>
    tpu.vector_store %arg16[%c0_103, %c1_104, %c0_105, %c0_106, %c0_107], %198 {strides = array<i32>} : memref<2x4x2x8x8xf32, #tpu.memory_space<vmem>>, vector<1x1x2x8x8xf32>,
    %199 = vector.extract_strided_slice %153 {offsets = [0, 0, 8], sizes = [2, 8, 8], strides = [1, 1, 1]} : vector<2x8x32xf32> to vector<2x8x8xf32>
    "tpu.trace_start"() <{level = 10 : i32, message = "bqk,bkd->bqd"}> : () -> ()
    %cst_108 = arith.constant dense<0.000000e+00> : vector<2x8x8xf32>
    %200 = tpu.matmul %195, %199, %cst_108 {dimension_numbers = #tpu.dot_dimension_numbers<[2], [1], [1], [2], [0, 0, 0, 1, 1, 2], [0], [0]>} : vector<2x8x8xf32>, vector<2x8x8xf32>, vector<2x8x8xf32> -> vector<2x8x8xf32>
    "tpu.trace_stop"() : () -> ()
    %201 = vector.shape_cast %200 : vector<2x8x8xf32> to vector<16x8xf32>
    %202 = vector.extract_strided_slice %147 {offsets = [8, 0], sizes = [8, 32], strides = [1, 1]} : vector<32x32xf32> to vector<8x32xf32>
    %cst_109 = arith.constant dense<0.000000e+00> : vector<16x32xf32>
    %203 = tpu.matmul %201, %202, %cst_109 {dimension_numbers = #tpu.dot_dimension_numbers<[1], [0], [0], [1], [0, 0, 1, 1], [], []>} : vector<16x8xf32>, vector<8x32xf32>, vector<16x32xf32> -> vector<16x32xf32>
    %204 = arith.addf %179, %203 : vector<16x32xf32>
    %205 = vector.extract_strided_slice %149 {offsets = [0, 0, 16], sizes = [2, 8, 8], strides = [1, 1, 1]} : vector<2x8x32xf32> to vector<2x8x8xf32>
    %206 = vector.extract_strided_slice %151 {offsets = [0, 0, 16], sizes = [2, 8, 8], strides = [1, 1, 1]} : vector<2x8x32xf32> to vector<2x8x8xf32>
    "tpu.trace_start"() <{level = 10 : i32, message = "bqd,bkd->bqk"}> : () -> ()
    %cst_110 = arith.constant dense<0.000000e+00> : vector<2x8x8xf32>
    %207 = tpu.matmul %205, %206, %cst_110 {dimension_numbers = #tpu.dot_dimension_numbers<[2], [2], [1], [1], [0, 0, 0, 1, 1, 1], [0], [0]>} : vector<2x8x8xf32>, vector<2x8x8xf32>, vector<2x8x8xf32> -> vector<2x8x8xf32>
    "tpu.trace_stop"() : () -> ()
    %cst_111 = arith.constant 0.353553385 : f32
    %208 = vector.broadcast %cst_111 : f32 to vector<2x8x8xf32>
    %209 = arith.mulf %207, %208 : vector<2x8x8xf32>
    %210 = arith.addf %209, %5 : vector<2x8x8xf32>
    %cst_112 = arith.constant dense<0xFF800000> : vector<2x8xf32>
    %211 = vector.multi_reduction <maximumf>, %210, %cst_112 [2] : vector<2x8x8xf32> to vector<2x8xf32>
    %212 = vector.shape_cast %211 : vector<2x8xf32> to vector<2x8x1xf32>
    %213 = vector.broadcast %212 : vector<2x8x1xf32> to vector<2x8x8xf32>
    %214 = arith.subf %210, %213 : vector<2x8x8xf32>
    %215 = math.exp %214 : vector<2x8x8xf32>
    %cst_113 = arith.constant dense<0.000000e+00> : vector<2x8xf32>
    %216 = vector.multi_reduction <add>, %215, %cst_113 [2] : vector<2x8x8xf32> to vector<2x8xf32>
    %217 = vector.shape_cast %216 : vector<2x8xf32> to vector<2x8x1xf32>
    %218 = tpu.reciprocal %217 {approx = true} : vector<2x8x1xf32> -> vector<2x8x1xf32>
    %219 = vector.broadcast %218 : vector<2x8x1xf32> to vector<2x8x8xf32>
    %220 = arith.mulf %215, %219 : vector<2x8x8xf32>
    %c0_114 = arith.constant 0 : index
    %c2_115 = arith.constant 2 : index
    %c0_116 = arith.constant 0 : index
    %c0_117 = arith.constant 0 : index
    %c0_118 = arith.constant 0 : index
    %221 = vector.load %arg16[%c0_114, %c2_115, %c0_116, %c0_117, %c0_118] : memref<2x4x2x8x8xf32, #tpu.memory_space<vmem>>, vector<1x1x2x8x8xf32>
    %222 = vector.shape_cast %221 : vector<1x1x2x8x8xf32> to vector<2x8x8xf32>
    %223 = vector.shape_cast %220 : vector<2x8x8xf32> to vector<1x1x2x8x8xf32>
    tpu.vector_store %arg16[%c0_114, %c2_115, %c0_116, %c0_117, %c0_118], %223 {strides = array<i32>} : memref<2x4x2x8x8xf32, #tpu.memory_space<vmem>>, vector<1x1x2x8x8xf32>,
    %224 = vector.extract_strided_slice %153 {offsets = [0, 0, 16], sizes = [2, 8, 8], strides = [1, 1, 1]} : vector<2x8x32xf32> to vector<2x8x8xf32>
    "tpu.trace_start"() <{level = 10 : i32, message = "bqk,bkd->bqd"}> : () -> ()
    %cst_119 = arith.constant dense<0.000000e+00> : vector<2x8x8xf32>
    %225 = tpu.matmul %220, %224, %cst_119 {dimension_numbers = #tpu.dot_dimension_numbers<[2], [1], [1], [2], [0, 0, 0, 1, 1, 2], [0], [0]>} : vector<2x8x8xf32>, vector<2x8x8xf32>, vector<2x8x8xf32> -> vector<2x8x8xf32>
    "tpu.trace_stop"() : () -> ()
    %226 = vector.shape_cast %225 : vector<2x8x8xf32> to vector<16x8xf32>
    %227 = vector.extract_strided_slice %147 {offsets = [16, 0], sizes = [8, 32], strides = [1, 1]} : vector<32x32xf32> to vector<8x32xf32>
    %cst_120 = arith.constant dense<0.000000e+00> : vector<16x32xf32>
    %228 = tpu.matmul %226, %227, %cst_120 {dimension_numbers = #tpu.dot_dimension_numbers<[1], [0], [0], [1], [0, 0, 1, 1], [], []>} : vector<16x8xf32>, vector<8x32xf32>, vector<16x32xf32> -> vector<16x32xf32>
    %229 = arith.addf %204, %228 : vector<16x32xf32>
    %230 = vector.extract_strided_slice %149 {offsets = [0, 0, 24], sizes = [2, 8, 8], strides = [1, 1, 1]} : vector<2x8x32xf32> to vector<2x8x8xf32>
    %231 = vector.extract_strided_slice %151 {offsets = [0, 0, 24], sizes = [2, 8, 8], strides = [1, 1, 1]} : vector<2x8x32xf32> to vector<2x8x8xf32>
    "tpu.trace_start"() <{level = 10 : i32, message = "bqd,bkd->bqk"}> : () -> ()
    %cst_121 = arith.constant dense<0.000000e+00> : vector<2x8x8xf32>
    %232 = tpu.matmul %230, %231, %cst_121 {dimension_numbers = #tpu.dot_dimension_numbers<[2], [2], [1], [1], [0, 0, 0, 1, 1, 1], [0], [0]>} : vector<2x8x8xf32>, vector<2x8x8xf32>, vector<2x8x8xf32> -> vector<2x8x8xf32>
    "tpu.trace_stop"() : () -> ()
    %cst_122 = arith.constant 0.353553385 : f32
    %233 = vector.broadcast %cst_122 : f32 to vector<2x8x8xf32>
    %234 = arith.mulf %232, %233 : vector<2x8x8xf32>
    %235 = arith.addf %234, %5 : vector<2x8x8xf32>
    %cst_123 = arith.constant dense<0xFF800000> : vector<2x8xf32>
    %236 = vector.multi_reduction <maximumf>, %235, %cst_123 [2] : vector<2x8x8xf32> to vector<2x8xf32>
    %237 = vector.shape_cast %236 : vector<2x8xf32> to vector<2x8x1xf32>
    %238 = vector.broadcast %237 : vector<2x8x1xf32> to vector<2x8x8xf32>
    %239 = arith.subf %235, %238 : vector<2x8x8xf32>
    %240 = math.exp %239 : vector<2x8x8xf32>
    %cst_124 = arith.constant dense<0.000000e+00> : vector<2x8xf32>
    %241 = vector.multi_reduction <add>, %240, %cst_124 [2] : vector<2x8x8xf32> to vector<2x8xf32>
    %242 = vector.shape_cast %241 : vector<2x8xf32> to vector<2x8x1xf32>
    %243 = tpu.reciprocal %242 {approx = true} : vector<2x8x1xf32> -> vector<2x8x1xf32>
    %244 = vector.broadcast %243 : vector<2x8x1xf32> to vector<2x8x8xf32>
    %245 = arith.mulf %240, %244 : vector<2x8x8xf32>
    %c0_125 = arith.constant 0 : index
    %c3_126 = arith.constant 3 : index
    %c0_127 = arith.constant 0 : index
    %c0_128 = arith.constant 0 : index
    %c0_129 = arith.constant 0 : index
    %246 = vector.load %arg16[%c0_125, %c3_126, %c0_127, %c0_128, %c0_129] : memref<2x4x2x8x8xf32, #tpu.memory_space<vmem>>, vector<1x1x2x8x8xf32>
    %247 = vector.shape_cast %246 : vector<1x1x2x8x8xf32> to vector<2x8x8xf32>
    %248 = vector.shape_cast %245 : vector<2x8x8xf32> to vector<1x1x2x8x8xf32>
    tpu.vector_store %arg16[%c0_125, %c3_126, %c0_127, %c0_128, %c0_129], %248 {strides = array<i32>} : memref<2x4x2x8x8xf32, #tpu.memory_space<vmem>>, vector<1x1x2x8x8xf32>,
    %249 = vector.extract_strided_slice %153 {offsets = [0, 0, 24], sizes = [2, 8, 8], strides = [1, 1, 1]} : vector<2x8x32xf32> to vector<2x8x8xf32>
    "tpu.trace_start"() <{level = 10 : i32, message = "bqk,bkd->bqd"}> : () -> ()
    %cst_130 = arith.constant dense<0.000000e+00> : vector<2x8x8xf32>
    %250 = tpu.matmul %245, %249, %cst_130 {dimension_numbers = #tpu.dot_dimension_numbers<[2], [1], [1], [2], [0, 0, 0, 1, 1, 2], [0], [0]>} : vector<2x8x8xf32>, vector<2x8x8xf32>, vector<2x8x8xf32> -> vector<2x8x8xf32>
    "tpu.trace_stop"() : () -> ()
    %251 = vector.shape_cast %250 : vector<2x8x8xf32> to vector<16x8xf32>
    %252 = vector.extract_strided_slice %147 {offsets = [24, 0], sizes = [8, 32], strides = [1, 1]} : vector<32x32xf32> to vector<8x32xf32>
    %cst_131 = arith.constant dense<0.000000e+00> : vector<16x32xf32>
    %253 = tpu.matmul %251, %252, %cst_131 {dimension_numbers = #tpu.dot_dimension_numbers<[1], [0], [0], [1], [0, 0, 1, 1], [], []>} : vector<16x8xf32>, vector<8x32xf32>, vector<16x32xf32> -> vector<16x32xf32>
    %254 = arith.addf %229, %253 : vector<16x32xf32>
    %255 = arith.addf %254, %139 : vector<16x32xf32>
    %cst_132 = arith.constant dense<0.000000e+00> : vector<16xf32>
    %256 = vector.multi_reduction <add>, %255, %cst_132 [1] : vector<16x32xf32> to vector<16xf32>
    %257 = vector.shape_cast %256 : vector<16xf32> to vector<16x1xf32>
    %cst_133 = arith.constant 3.200000e+01 : f32
    %258 = vector.broadcast %cst_133 : f32 to vector<16x1xf32>
    %259 = arith.divf %257, %258 : vector<16x1xf32>
    %260 = vector.broadcast %259 : vector<16x1xf32> to vector<16x32xf32>
    %261 = arith.subf %255, %260 : vector<16x32xf32>
    %262 = arith.mulf %261, %261 : vector<16x32xf32>
    %cst_134 = arith.constant dense<0.000000e+00> : vector<16xf32>
    %263 = vector.multi_reduction <add>, %262, %cst_134 [1] : vector<16x32xf32> to vector<16xf32>
    %264 = vector.shape_cast %263 : vector<16xf32> to vector<16x1xf32>
    %cst_135 = arith.constant 3.200000e+01 : f32
    %265 = vector.broadcast %cst_135 : f32 to vector<16x1xf32>
    %266 = arith.divf %264, %265 : vector<16x1xf32>
    %267 = vector.broadcast %259 : vector<16x1xf32> to vector<16x32xf32>
    %268 = arith.subf %255, %267 : vector<16x32xf32>
    %cst_136 = arith.constant 9.99999974E-6 : f32
    %269 = vector.broadcast %cst_136 : f32 to vector<16x1xf32>
    %270 = arith.addf %266, %269 : vector<16x1xf32>
    %271 = math.rsqrt %270 : vector<16x1xf32>
    %272 = vector.broadcast %271 : vector<16x1xf32> to vector<16x32xf32>
    %273 = arith.mulf %268, %272 : vector<16x32xf32>
    %c0_137 = arith.constant 0 : index
    %c0_138 = arith.constant 0 : index
    %c0_139 = arith.constant 0 : index
    %274 = vector.load %arg12[%c0_137, %c0_138, %c0_139] : memref<2x32x64xf32, #tpu.memory_space<vmem>>, vector<1x32x64xf32>
    %275 = vector.shape_cast %274 : vector<1x32x64xf32> to vector<32x64xf32>
    %cst_140 = arith.constant dense<0.000000e+00> : vector<16x64xf32>
    %276 = tpu.matmul %273, %275, %cst_140 {dimension_numbers = #tpu.dot_dimension_numbers<[1], [0], [0], [1], [0, 0, 1, 1], [], []>} : vector<16x32xf32>, vector<32x64xf32>, vector<16x64xf32> -> vector<16x64xf32>
    %cst_141 = arith.constant 0.000000e+00 : f32
    %277 = vector.broadcast %cst_141 : f32 to vector<16x64xf32>
    %278 = arith.maximumf %276, %277 : vector<16x64xf32>
    %c0_142 = arith.constant 0 : index
    %c0_143 = arith.constant 0 : index
    %c0_144 = arith.constant 0 : index
    %279 = vector.load %arg13[%c0_142, %c0_143, %c0_144] : memref<2x64x32xf32, #tpu.memory_space<vmem>>, vector<1x64x32xf32>
    %280 = vector.shape_cast %279 : vector<1x64x32xf32> to vector<64x32xf32>
    %cst_145 = arith.constant dense<0.000000e+00> : vector<16x32xf32>
    %281 = tpu.matmul %278, %280, %cst_145 {dimension_numbers = #tpu.dot_dimension_numbers<[1], [0], [0], [1], [0, 0, 1, 1], [], []>} : vector<16x64xf32>, vector<64x32xf32>, vector<16x32xf32> -> vector<16x32xf32>
    %282 = arith.addf %281, %273 : vector<16x32xf32>
    %cst_146 = arith.constant dense<0.000000e+00> : vector<16xf32>
    %283 = vector.multi_reduction <add>, %282, %cst_146 [1] : vector<16x32xf32> to vector<16xf32>
    %284 = vector.shape_cast %283 : vector<16xf32> to vector<16x1xf32>
    %cst_147 = arith.constant 3.200000e+01 : f32
    %285 = vector.broadcast %cst_147 : f32 to vector<16x1xf32>
    %286 = arith.divf %284, %285 : vector<16x1xf32>
    %287 = vector.broadcast %286 : vector<16x1xf32> to vector<16x32xf32>
    %288 = arith.subf %282, %287 : vector<16x32xf32>
    %289 = arith.mulf %288, %288 : vector<16x32xf32>
    %cst_148 = arith.constant dense<0.000000e+00> : vector<16xf32>
    %290 = vector.multi_reduction <add>, %289, %cst_148 [1] : vector<16x32xf32> to vector<16xf32>
    %291 = vector.shape_cast %290 : vector<16xf32> to vector<16x1xf32>
    %cst_149 = arith.constant 3.200000e+01 : f32
    %292 = vector.broadcast %cst_149 : f32 to vector<16x1xf32>
    %293 = arith.divf %291, %292 : vector<16x1xf32>
    %294 = vector.broadcast %286 : vector<16x1xf32> to vector<16x32xf32>
    %295 = arith.subf %282, %294 : vector<16x32xf32>
    %cst_150 = arith.constant 9.99999974E-6 : f32
    %296 = vector.broadcast %cst_150 : f32 to vector<16x1xf32>
    %297 = arith.addf %293, %296 : vector<16x1xf32>
    %298 = math.rsqrt %297 : vector<16x1xf32>
    %299 = vector.broadcast %298 : vector<16x1xf32> to vector<16x32xf32>
    %300 = arith.mulf %295, %299 : vector<16x32xf32>
    %c1_151 = arith.constant 1 : index
    %c0_152 = arith.constant 0 : index
    %c0_153 = arith.constant 0 : index
    %301 = vector.load %arg4[%c1_151, %c0_152, %c0_153] : memref<2x32x32xf32, #tpu.memory_space<vmem>>, vector<1x32x32xf32>
    %302 = vector.shape_cast %301 : vector<1x32x32xf32> to vector<32x32xf32>
    %c1_154 = arith.constant 1 : index
    %c0_155 = arith.constant 0 : index
    %c0_156 = arith.constant 0 : index
    %303 = vector.load %arg5[%c1_154, %c0_155, %c0_156] : memref<2x32x32xf32, #tpu.memory_space<vmem>>, vector<1x32x32xf32>
    %304 = vector.shape_cast %303 : vector<1x32x32xf32> to vector<32x32xf32>
    %c1_157 = arith.constant 1 : index
    %c0_158 = arith.constant 0 : index
    %c0_159 = arith.constant 0 : index
    %305 = vector.load %arg6[%c1_157, %c0_158, %c0_159] : memref<2x32x32xf32, #tpu.memory_space<vmem>>, vector<1x32x32xf32>
    %306 = vector.shape_cast %305 : vector<1x32x32xf32> to vector<32x32xf32>
    %c1_160 = arith.constant 1 : index
    %c0_161 = arith.constant 0 : index
    %c0_162 = arith.constant 0 : index
    %307 = vector.load %arg7[%c1_160, %c0_161, %c0_162] : memref<2x32x32xf32, #tpu.memory_space<vmem>>, vector<1x32x32xf32>
    %308 = vector.shape_cast %307 : vector<1x32x32xf32> to vector<32x32xf32>
    %cst_163 = arith.constant dense<0.000000e+00> : vector<16x32xf32>
    %309 = tpu.matmul %300, %302, %cst_163 {dimension_numbers = #tpu.dot_dimension_numbers<[1], [0], [0], [1], [0, 0, 1, 1], [], []>} : vector<16x32xf32>, vector<32x32xf32>, vector<16x32xf32> -> vector<16x32xf32>
    %310 = vector.shape_cast %309 : vector<16x32xf32> to vector<2x8x32xf32>
    %cst_164 = arith.constant dense<0.000000e+00> : vector<16x32xf32>
    %311 = tpu.matmul %300, %304, %cst_164 {dimension_numbers = #tpu.dot_dimension_numbers<[1], [0], [0], [1], [0, 0, 1, 1], [], []>} : vector<16x32xf32>, vector<32x32xf32>, vector<16x32xf32> -> vector<16x32xf32>
    %312 = vector.shape_cast %311 : vector<16x32xf32> to vector<2x8x32xf32>
    %cst_165 = arith.constant dense<0.000000e+00> : vector<16x32xf32>
    %313 = tpu.matmul %300, %306, %cst_165 {dimension_numbers = #tpu.dot_dimension_numbers<[1], [0], [0], [1], [0, 0, 1, 1], [], []>} : vector<16x32xf32>, vector<32x32xf32>, vector<16x32xf32> -> vector<16x32xf32>
    %314 = vector.shape_cast %313 : vector<16x32xf32> to vector<2x8x32xf32>
    %cst_166 = arith.constant 0.000000e+00 : f32
    %315 = vector.broadcast %cst_166 : f32 to vector<16x32xf32>
    %316 = vector.extract_strided_slice %310 {offsets = [0, 0, 0], sizes = [2, 8, 8], strides = [1, 1, 1]} : vector<2x8x32xf32> to vector<2x8x8xf32>
    %317 = vector.extract_strided_slice %312 {offsets = [0, 0, 0], sizes = [2, 8, 8], strides = [1, 1, 1]} : vector<2x8x32xf32> to vector<2x8x8xf32>
    "tpu.trace_start"() <{level = 10 : i32, message = "bqd,bkd->bqk"}> : () -> ()
    %cst_167 = arith.constant dense<0.000000e+00> : vector<2x8x8xf32>
    %318 = tpu.matmul %316, %317, %cst_167 {dimension_numbers = #tpu.dot_dimension_numbers<[2], [2], [1], [1], [0, 0, 0, 1, 1, 1], [0], [0]>} : vector<2x8x8xf32>, vector<2x8x8xf32>, vector<2x8x8xf32> -> vector<2x8x8xf32>
    "tpu.trace_stop"() : () -> ()
    %cst_168 = arith.constant 0.353553385 : f32
    %319 = vector.broadcast %cst_168 : f32 to vector<2x8x8xf32>
    %320 = arith.mulf %318, %319 : vector<2x8x8xf32>
    %321 = arith.addf %320, %4 : vector<2x8x8xf32>
    %cst_169 = arith.constant dense<0xFF800000> : vector<2x8xf32>
    %322 = vector.multi_reduction <maximumf>, %321, %cst_169 [2] : vector<2x8x8xf32> to vector<2x8xf32>
    %323 = vector.shape_cast %322 : vector<2x8xf32> to vector<2x8x1xf32>
    %324 = vector.broadcast %323 : vector<2x8x1xf32> to vector<2x8x8xf32>
    %325 = arith.subf %321, %324 : vector<2x8x8xf32>
    %326 = math.exp %325 : vector<2x8x8xf32>
    %cst_170 = arith.constant dense<0.000000e+00> : vector<2x8xf32>
    %327 = vector.multi_reduction <add>, %326, %cst_170 [2] : vector<2x8x8xf32> to vector<2x8xf32>
    %328 = vector.shape_cast %327 : vector<2x8xf32> to vector<2x8x1xf32>
    %329 = tpu.reciprocal %328 {approx = true} : vector<2x8x1xf32> -> vector<2x8x1xf32>
    %330 = vector.broadcast %329 : vector<2x8x1xf32> to vector<2x8x8xf32>
    %331 = arith.mulf %326, %330 : vector<2x8x8xf32>
    %c1_171 = arith.constant 1 : index
    %c0_172 = arith.constant 0 : index
    %c0_173 = arith.constant 0 : index
    %c0_174 = arith.constant 0 : index
    %c0_175 = arith.constant 0 : index
    %332 = vector.load %arg15[%c1_171, %c0_172, %c0_173, %c0_174, %c0_175] : memref<2x4x2x8x8xf32, #tpu.memory_space<vmem>>, vector<1x1x2x8x8xf32>
    %333 = vector.shape_cast %332 : vector<1x1x2x8x8xf32> to vector<2x8x8xf32>
    %334 = vector.shape_cast %331 : vector<2x8x8xf32> to vector<1x1x2x8x8xf32>
    tpu.vector_store %arg15[%c1_171, %c0_172, %c0_173, %c0_174, %c0_175], %334 {strides = array<i32>} : memref<2x4x2x8x8xf32, #tpu.memory_space<vmem>>, vector<1x1x2x8x8xf32>,
    %335 = vector.extract_strided_slice %314 {offsets = [0, 0, 0], sizes = [2, 8, 8], strides = [1, 1, 1]} : vector<2x8x32xf32> to vector<2x8x8xf32>
    "tpu.trace_start"() <{level = 10 : i32, message = "bqk,bkd->bqd"}> : () -> ()
    %cst_176 = arith.constant dense<0.000000e+00> : vector<2x8x8xf32>
    %336 = tpu.matmul %331, %335, %cst_176 {dimension_numbers = #tpu.dot_dimension_numbers<[2], [1], [1], [2], [0, 0, 0, 1, 1, 2], [0], [0]>} : vector<2x8x8xf32>, vector<2x8x8xf32>, vector<2x8x8xf32> -> vector<2x8x8xf32>
    "tpu.trace_stop"() : () -> ()
    %337 = vector.shape_cast %336 : vector<2x8x8xf32> to vector<16x8xf32>
    %338 = vector.extract_strided_slice %308 {offsets = [0, 0], sizes = [8, 32], strides = [1, 1]} : vector<32x32xf32> to vector<8x32xf32>
    %cst_177 = arith.constant dense<0.000000e+00> : vector<16x32xf32>
    %339 = tpu.matmul %337, %338, %cst_177 {dimension_numbers = #tpu.dot_dimension_numbers<[1], [0], [0], [1], [0, 0, 1, 1], [], []>} : vector<16x8xf32>, vector<8x32xf32>, vector<16x32xf32> -> vector<16x32xf32>
    %340 = arith.addf %315, %339 : vector<16x32xf32>
    %341 = vector.extract_strided_slice %310 {offsets = [0, 0, 8], sizes = [2, 8, 8], strides = [1, 1, 1]} : vector<2x8x32xf32> to vector<2x8x8xf32>
    %342 = vector.extract_strided_slice %312 {offsets = [0, 0, 8], sizes = [2, 8, 8], strides = [1, 1, 1]} : vector<2x8x32xf32> to vector<2x8x8xf32>
    "tpu.trace_start"() <{level = 10 : i32, message = "bqd,bkd->bqk"}> : () -> ()
    %cst_178 = arith.constant dense<0.000000e+00> : vector<2x8x8xf32>
    %343 = tpu.matmul %341, %342, %cst_178 {dimension_numbers = #tpu.dot_dimension_numbers<[2], [2], [1], [1], [0, 0, 0, 1, 1, 1], [0], [0]>} : vector<2x8x8xf32>, vector<2x8x8xf32>, vector<2x8x8xf32> -> vector<2x8x8xf32>
    "tpu.trace_stop"() : () -> ()
    %cst_179 = arith.constant 0.353553385 : f32
    %344 = vector.broadcast %cst_179 : f32 to vector<2x8x8xf32>
    %345 = arith.mulf %343, %344 : vector<2x8x8xf32>
    %346 = arith.addf %345, %4 : vector<2x8x8xf32>
    %cst_180 = arith.constant dense<0xFF800000> : vector<2x8xf32>
    %347 = vector.multi_reduction <maximumf>, %346, %cst_180 [2] : vector<2x8x8xf32> to vector<2x8xf32>
    %348 = vector.shape_cast %347 : vector<2x8xf32> to vector<2x8x1xf32>
    %349 = vector.broadcast %348 : vector<2x8x1xf32> to vector<2x8x8xf32>
    %350 = arith.subf %346, %349 : vector<2x8x8xf32>
    %351 = math.exp %350 : vector<2x8x8xf32>
    %cst_181 = arith.constant dense<0.000000e+00> : vector<2x8xf32>
    %352 = vector.multi_reduction <add>, %351, %cst_181 [2] : vector<2x8x8xf32> to vector<2x8xf32>
    %353 = vector.shape_cast %352 : vector<2x8xf32> to vector<2x8x1xf32>
    %354 = tpu.reciprocal %353 {approx = true} : vector<2x8x1xf32> -> vector<2x8x1xf32>
    %355 = vector.broadcast %354 : vector<2x8x1xf32> to vector<2x8x8xf32>
    %356 = arith.mulf %351, %355 : vector<2x8x8xf32>
    %c1_182 = arith.constant 1 : index
    %c1_183 = arith.constant 1 : index
    %c0_184 = arith.constant 0 : index
    %c0_185 = arith.constant 0 : index
    %c0_186 = arith.constant 0 : index
    %357 = vector.load %arg15[%c1_182, %c1_183, %c0_184, %c0_185, %c0_186] : memref<2x4x2x8x8xf32, #tpu.memory_space<vmem>>, vector<1x1x2x8x8xf32>
    %358 = vector.shape_cast %357 : vector<1x1x2x8x8xf32> to vector<2x8x8xf32>
    %359 = vector.shape_cast %356 : vector<2x8x8xf32> to vector<1x1x2x8x8xf32>
    tpu.vector_store %arg15[%c1_182, %c1_183, %c0_184, %c0_185, %c0_186], %359 {strides = array<i32>} : memref<2x4x2x8x8xf32, #tpu.memory_space<vmem>>, vector<1x1x2x8x8xf32>,
    %360 = vector.extract_strided_slice %314 {offsets = [0, 0, 8], sizes = [2, 8, 8], strides = [1, 1, 1]} : vector<2x8x32xf32> to vector<2x8x8xf32>
    "tpu.trace_start"() <{level = 10 : i32, message = "bqk,bkd->bqd"}> : () -> ()
    %cst_187 = arith.constant dense<0.000000e+00> : vector<2x8x8xf32>
    %361 = tpu.matmul %356, %360, %cst_187 {dimension_numbers = #tpu.dot_dimension_numbers<[2], [1], [1], [2], [0, 0, 0, 1, 1, 2], [0], [0]>} : vector<2x8x8xf32>, vector<2x8x8xf32>, vector<2x8x8xf32> -> vector<2x8x8xf32>
    "tpu.trace_stop"() : () -> ()
    %362 = vector.shape_cast %361 : vector<2x8x8xf32> to vector<16x8xf32>
    %363 = vector.extract_strided_slice %308 {offsets = [8, 0], sizes = [8, 32], strides = [1, 1]} : vector<32x32xf32> to vector<8x32xf32>
    %cst_188 = arith.constant dense<0.000000e+00> : vector<16x32xf32>
    %364 = tpu.matmul %362, %363, %cst_188 {dimension_numbers = #tpu.dot_dimension_numbers<[1], [0], [0], [1], [0, 0, 1, 1], [], []>} : vector<16x8xf32>, vector<8x32xf32>, vector<16x32xf32> -> vector<16x32xf32>
    %365 = arith.addf %340, %364 : vector<16x32xf32>
    %366 = vector.extract_strided_slice %310 {offsets = [0, 0, 16], sizes = [2, 8, 8], strides = [1, 1, 1]} : vector<2x8x32xf32> to vector<2x8x8xf32>
    %367 = vector.extract_strided_slice %312 {offsets = [0, 0, 16], sizes = [2, 8, 8], strides = [1, 1, 1]} : vector<2x8x32xf32> to vector<2x8x8xf32>
    "tpu.trace_start"() <{level = 10 : i32, message = "bqd,bkd->bqk"}> : () -> ()
    %cst_189 = arith.constant dense<0.000000e+00> : vector<2x8x8xf32>
    %368 = tpu.matmul %366, %367, %cst_189 {dimension_numbers = #tpu.dot_dimension_numbers<[2], [2], [1], [1], [0, 0, 0, 1, 1, 1], [0], [0]>} : vector<2x8x8xf32>, vector<2x8x8xf32>, vector<2x8x8xf32> -> vector<2x8x8xf32>
    "tpu.trace_stop"() : () -> ()
    %cst_190 = arith.constant 0.353553385 : f32
    %369 = vector.broadcast %cst_190 : f32 to vector<2x8x8xf32>
    %370 = arith.mulf %368, %369 : vector<2x8x8xf32>
    %371 = arith.addf %370, %4 : vector<2x8x8xf32>
    %cst_191 = arith.constant dense<0xFF800000> : vector<2x8xf32>
    %372 = vector.multi_reduction <maximumf>, %371, %cst_191 [2] : vector<2x8x8xf32> to vector<2x8xf32>
    %373 = vector.shape_cast %372 : vector<2x8xf32> to vector<2x8x1xf32>
    %374 = vector.broadcast %373 : vector<2x8x1xf32> to vector<2x8x8xf32>
    %375 = arith.subf %371, %374 : vector<2x8x8xf32>
    %376 = math.exp %375 : vector<2x8x8xf32>
    %cst_192 = arith.constant dense<0.000000e+00> : vector<2x8xf32>
    %377 = vector.multi_reduction <add>, %376, %cst_192 [2] : vector<2x8x8xf32> to vector<2x8xf32>
    %378 = vector.shape_cast %377 : vector<2x8xf32> to vector<2x8x1xf32>
    %379 = tpu.reciprocal %378 {approx = true} : vector<2x8x1xf32> -> vector<2x8x1xf32>
    %380 = vector.broadcast %379 : vector<2x8x1xf32> to vector<2x8x8xf32>
    %381 = arith.mulf %376, %380 : vector<2x8x8xf32>
    %c1_193 = arith.constant 1 : index
    %c2_194 = arith.constant 2 : index
    %c0_195 = arith.constant 0 : index
    %c0_196 = arith.constant 0 : index
    %c0_197 = arith.constant 0 : index
    %382 = vector.load %arg15[%c1_193, %c2_194, %c0_195, %c0_196, %c0_197] : memref<2x4x2x8x8xf32, #tpu.memory_space<vmem>>, vector<1x1x2x8x8xf32>
    %383 = vector.shape_cast %382 : vector<1x1x2x8x8xf32> to vector<2x8x8xf32>
    %384 = vector.shape_cast %381 : vector<2x8x8xf32> to vector<1x1x2x8x8xf32>
    tpu.vector_store %arg15[%c1_193, %c2_194, %c0_195, %c0_196, %c0_197], %384 {strides = array<i32>} : memref<2x4x2x8x8xf32, #tpu.memory_space<vmem>>, vector<1x1x2x8x8xf32>,
    %385 = vector.extract_strided_slice %314 {offsets = [0, 0, 16], sizes = [2, 8, 8], strides = [1, 1, 1]} : vector<2x8x32xf32> to vector<2x8x8xf32>
    "tpu.trace_start"() <{level = 10 : i32, message = "bqk,bkd->bqd"}> : () -> ()
    %cst_198 = arith.constant dense<0.000000e+00> : vector<2x8x8xf32>
    %386 = tpu.matmul %381, %385, %cst_198 {dimension_numbers = #tpu.dot_dimension_numbers<[2], [1], [1], [2], [0, 0, 0, 1, 1, 2], [0], [0]>} : vector<2x8x8xf32>, vector<2x8x8xf32>, vector<2x8x8xf32> -> vector<2x8x8xf32>
    "tpu.trace_stop"() : () -> ()
    %387 = vector.shape_cast %386 : vector<2x8x8xf32> to vector<16x8xf32>
    %388 = vector.extract_strided_slice %308 {offsets = [16, 0], sizes = [8, 32], strides = [1, 1]} : vector<32x32xf32> to vector<8x32xf32>
    %cst_199 = arith.constant dense<0.000000e+00> : vector<16x32xf32>
    %389 = tpu.matmul %387, %388, %cst_199 {dimension_numbers = #tpu.dot_dimension_numbers<[1], [0], [0], [1], [0, 0, 1, 1], [], []>} : vector<16x8xf32>, vector<8x32xf32>, vector<16x32xf32> -> vector<16x32xf32>
    %390 = arith.addf %365, %389 : vector<16x32xf32>
    %391 = vector.extract_strided_slice %310 {offsets = [0, 0, 24], sizes = [2, 8, 8], strides = [1, 1, 1]} : vector<2x8x32xf32> to vector<2x8x8xf32>
    %392 = vector.extract_strided_slice %312 {offsets = [0, 0, 24], sizes = [2, 8, 8], strides = [1, 1, 1]} : vector<2x8x32xf32> to vector<2x8x8xf32>
    "tpu.trace_start"() <{level = 10 : i32, message = "bqd,bkd->bqk"}> : () -> ()
    %cst_200 = arith.constant dense<0.000000e+00> : vector<2x8x8xf32>
    %393 = tpu.matmul %391, %392, %cst_200 {dimension_numbers = #tpu.dot_dimension_numbers<[2], [2], [1], [1], [0, 0, 0, 1, 1, 1], [0], [0]>} : vector<2x8x8xf32>, vector<2x8x8xf32>, vector<2x8x8xf32> -> vector<2x8x8xf32>
    "tpu.trace_stop"() : () -> ()
    %cst_201 = arith.constant 0.353553385 : f32
    %394 = vector.broadcast %cst_201 : f32 to vector<2x8x8xf32>
    %395 = arith.mulf %393, %394 : vector<2x8x8xf32>
    %396 = arith.addf %395, %4 : vector<2x8x8xf32>
    %cst_202 = arith.constant dense<0xFF800000> : vector<2x8xf32>
    %397 = vector.multi_reduction <maximumf>, %396, %cst_202 [2] : vector<2x8x8xf32> to vector<2x8xf32>
    %398 = vector.shape_cast %397 : vector<2x8xf32> to vector<2x8x1xf32>
    %399 = vector.broadcast %398 : vector<2x8x1xf32> to vector<2x8x8xf32>
    %400 = arith.subf %396, %399 : vector<2x8x8xf32>
    %401 = math.exp %400 : vector<2x8x8xf32>
    %cst_203 = arith.constant dense<0.000000e+00> : vector<2x8xf32>
    %402 = vector.multi_reduction <add>, %401, %cst_203 [2] : vector<2x8x8xf32> to vector<2x8xf32>
    %403 = vector.shape_cast %402 : vector<2x8xf32> to vector<2x8x1xf32>
    %404 = tpu.reciprocal %403 {approx = true} : vector<2x8x1xf32> -> vector<2x8x1xf32>
    %405 = vector.broadcast %404 : vector<2x8x1xf32> to vector<2x8x8xf32>
    %406 = arith.mulf %401, %405 : vector<2x8x8xf32>
    %c1_204 = arith.constant 1 : index
    %c3_205 = arith.constant 3 : index
    %c0_206 = arith.constant 0 : index
    %c0_207 = arith.constant 0 : index
    %c0_208 = arith.constant 0 : index
    %407 = vector.load %arg15[%c1_204, %c3_205, %c0_206, %c0_207, %c0_208] : memref<2x4x2x8x8xf32, #tpu.memory_space<vmem>>, vector<1x1x2x8x8xf32>
    %408 = vector.shape_cast %407 : vector<1x1x2x8x8xf32> to vector<2x8x8xf32>
    %409 = vector.shape_cast %406 : vector<2x8x8xf32> to vector<1x1x2x8x8xf32>
    tpu.vector_store %arg15[%c1_204, %c3_205, %c0_206, %c0_207, %c0_208], %409 {strides = array<i32>} : memref<2x4x2x8x8xf32, #tpu.memory_space<vmem>>, vector<1x1x2x8x8xf32>,
    %410 = vector.extract_strided_slice %314 {offsets = [0, 0, 24], sizes = [2, 8, 8], strides = [1, 1, 1]} : vector<2x8x32xf32> to vector<2x8x8xf32>
    "tpu.trace_start"() <{level = 10 : i32, message = "bqk,bkd->bqd"}> : () -> ()
    %cst_209 = arith.constant dense<0.000000e+00> : vector<2x8x8xf32>
    %411 = tpu.matmul %406, %410, %cst_209 {dimension_numbers = #tpu.dot_dimension_numbers<[2], [1], [1], [2], [0, 0, 0, 1, 1, 2], [0], [0]>} : vector<2x8x8xf32>, vector<2x8x8xf32>, vector<2x8x8xf32> -> vector<2x8x8xf32>
    "tpu.trace_stop"() : () -> ()
    %412 = vector.shape_cast %411 : vector<2x8x8xf32> to vector<16x8xf32>
    %413 = vector.extract_strided_slice %308 {offsets = [24, 0], sizes = [8, 32], strides = [1, 1]} : vector<32x32xf32> to vector<8x32xf32>
    %cst_210 = arith.constant dense<0.000000e+00> : vector<16x32xf32>
    %414 = tpu.matmul %412, %413, %cst_210 {dimension_numbers = #tpu.dot_dimension_numbers<[1], [0], [0], [1], [0, 0, 1, 1], [], []>} : vector<16x8xf32>, vector<8x32xf32>, vector<16x32xf32> -> vector<16x32xf32>
    %415 = arith.addf %390, %414 : vector<16x32xf32>
    %416 = arith.addf %415, %300 : vector<16x32xf32>
    %cst_211 = arith.constant dense<0.000000e+00> : vector<16xf32>
    %417 = vector.multi_reduction <add>, %416, %cst_211 [1] : vector<16x32xf32> to vector<16xf32>
    %418 = vector.shape_cast %417 : vector<16xf32> to vector<16x1xf32>
    %cst_212 = arith.constant 3.200000e+01 : f32
    %419 = vector.broadcast %cst_212 : f32 to vector<16x1xf32>
    %420 = arith.divf %418, %419 : vector<16x1xf32>
    %421 = vector.broadcast %420 : vector<16x1xf32> to vector<16x32xf32>
    %422 = arith.subf %416, %421 : vector<16x32xf32>
    %423 = arith.mulf %422, %422 : vector<16x32xf32>
    %cst_213 = arith.constant dense<0.000000e+00> : vector<16xf32>
    %424 = vector.multi_reduction <add>, %423, %cst_213 [1] : vector<16x32xf32> to vector<16xf32>
    %425 = vector.shape_cast %424 : vector<16xf32> to vector<16x1xf32>
    %cst_214 = arith.constant 3.200000e+01 : f32
    %426 = vector.broadcast %cst_214 : f32 to vector<16x1xf32>
    %427 = arith.divf %425, %426 : vector<16x1xf32>
    %428 = vector.broadcast %420 : vector<16x1xf32> to vector<16x32xf32>
    %429 = arith.subf %416, %428 : vector<16x32xf32>
    %cst_215 = arith.constant 9.99999974E-6 : f32
    %430 = vector.broadcast %cst_215 : f32 to vector<16x1xf32>
    %431 = arith.addf %427, %430 : vector<16x1xf32>
    %432 = math.rsqrt %431 : vector<16x1xf32>
    %433 = vector.broadcast %432 : vector<16x1xf32> to vector<16x32xf32>
    %434 = arith.mulf %429, %433 : vector<16x32xf32>
    %c1_216 = arith.constant 1 : index
    %c0_217 = arith.constant 0 : index
    %c0_218 = arith.constant 0 : index
    %435 = vector.load %arg8[%c1_216, %c0_217, %c0_218] : memref<2x32x32xf32, #tpu.memory_space<vmem>>, vector<1x32x32xf32>
    %436 = vector.shape_cast %435 : vector<1x32x32xf32> to vector<32x32xf32>
    %c1_219 = arith.constant 1 : index
    %c0_220 = arith.constant 0 : index
    %c0_221 = arith.constant 0 : index
    %437 = vector.load %arg9[%c1_219, %c0_220, %c0_221] : memref<2x32x32xf32, #tpu.memory_space<vmem>>, vector<1x32x32xf32>
    %438 = vector.shape_cast %437 : vector<1x32x32xf32> to vector<32x32xf32>
    %c1_222 = arith.constant 1 : index
    %c0_223 = arith.constant 0 : index
    %c0_224 = arith.constant 0 : index
    %439 = vector.load %arg10[%c1_222, %c0_223, %c0_224] : memref<2x32x32xf32, #tpu.memory_space<vmem>>, vector<1x32x32xf32>
    %440 = vector.shape_cast %439 : vector<1x32x32xf32> to vector<32x32xf32>
    %c1_225 = arith.constant 1 : index
    %c0_226 = arith.constant 0 : index
    %c0_227 = arith.constant 0 : index
    %441 = vector.load %arg11[%c1_225, %c0_226, %c0_227] : memref<2x32x32xf32, #tpu.memory_space<vmem>>, vector<1x32x32xf32>
    %442 = vector.shape_cast %441 : vector<1x32x32xf32> to vector<32x32xf32>
    %cst_228 = arith.constant dense<0.000000e+00> : vector<16x32xf32>
    %443 = tpu.matmul %434, %436, %cst_228 {dimension_numbers = #tpu.dot_dimension_numbers<[1], [0], [0], [1], [0, 0, 1, 1], [], []>} : vector<16x32xf32>, vector<32x32xf32>, vector<16x32xf32> -> vector<16x32xf32>
    %444 = vector.shape_cast %443 : vector<16x32xf32> to vector<2x8x32xf32>
    %cst_229 = arith.constant dense<0.000000e+00> : vector<16x32xf32>
    %445 = tpu.matmul %3, %438, %cst_229 {dimension_numbers = #tpu.dot_dimension_numbers<[1], [0], [0], [1], [0, 0, 1, 1], [], []>} : vector<16x32xf32>, vector<32x32xf32>, vector<16x32xf32> -> vector<16x32xf32>
    %446 = vector.shape_cast %445 : vector<16x32xf32> to vector<2x8x32xf32>
    %cst_230 = arith.constant dense<0.000000e+00> : vector<16x32xf32>
    %447 = tpu.matmul %3, %440, %cst_230 {dimension_numbers = #tpu.dot_dimension_numbers<[1], [0], [0], [1], [0, 0, 1, 1], [], []>} : vector<16x32xf32>, vector<32x32xf32>, vector<16x32xf32> -> vector<16x32xf32>
    %448 = vector.shape_cast %447 : vector<16x32xf32> to vector<2x8x32xf32>
    %cst_231 = arith.constant 0.000000e+00 : f32
    %449 = vector.broadcast %cst_231 : f32 to vector<16x32xf32>
    %450 = vector.extract_strided_slice %444 {offsets = [0, 0, 0], sizes = [2, 8, 8], strides = [1, 1, 1]} : vector<2x8x32xf32> to vector<2x8x8xf32>
    %451 = vector.extract_strided_slice %446 {offsets = [0, 0, 0], sizes = [2, 8, 8], strides = [1, 1, 1]} : vector<2x8x32xf32> to vector<2x8x8xf32>
    "tpu.trace_start"() <{level = 10 : i32, message = "bqd,bkd->bqk"}> : () -> ()
    %cst_232 = arith.constant dense<0.000000e+00> : vector<2x8x8xf32>
    %452 = tpu.matmul %450, %451, %cst_232 {dimension_numbers = #tpu.dot_dimension_numbers<[2], [2], [1], [1], [0, 0, 0, 1, 1, 1], [0], [0]>} : vector<2x8x8xf32>, vector<2x8x8xf32>, vector<2x8x8xf32> -> vector<2x8x8xf32>
    "tpu.trace_stop"() : () -> ()
    %cst_233 = arith.constant 0.353553385 : f32
    %453 = vector.broadcast %cst_233 : f32 to vector<2x8x8xf32>
    %454 = arith.mulf %452, %453 : vector<2x8x8xf32>
    %455 = arith.addf %454, %5 : vector<2x8x8xf32>
    %cst_234 = arith.constant dense<0xFF800000> : vector<2x8xf32>
    %456 = vector.multi_reduction <maximumf>, %455, %cst_234 [2] : vector<2x8x8xf32> to vector<2x8xf32>
    %457 = vector.shape_cast %456 : vector<2x8xf32> to vector<2x8x1xf32>
    %458 = vector.broadcast %457 : vector<2x8x1xf32> to vector<2x8x8xf32>
    %459 = arith.subf %455, %458 : vector<2x8x8xf32>
    %460 = math.exp %459 : vector<2x8x8xf32>
    %cst_235 = arith.constant dense<0.000000e+00> : vector<2x8xf32>
    %461 = vector.multi_reduction <add>, %460, %cst_235 [2] : vector<2x8x8xf32> to vector<2x8xf32>
    %462 = vector.shape_cast %461 : vector<2x8xf32> to vector<2x8x1xf32>
    %463 = tpu.reciprocal %462 {approx = true} : vector<2x8x1xf32> -> vector<2x8x1xf32>
    %464 = vector.broadcast %463 : vector<2x8x1xf32> to vector<2x8x8xf32>
    %465 = arith.mulf %460, %464 : vector<2x8x8xf32>
    %c1_236 = arith.constant 1 : index
    %c0_237 = arith.constant 0 : index
    %c0_238 = arith.constant 0 : index
    %c0_239 = arith.constant 0 : index
    %c0_240 = arith.constant 0 : index
    %466 = vector.load %arg16[%c1_236, %c0_237, %c0_238, %c0_239, %c0_240] : memref<2x4x2x8x8xf32, #tpu.memory_space<vmem>>, vector<1x1x2x8x8xf32>
    %467 = vector.shape_cast %466 : vector<1x1x2x8x8xf32> to vector<2x8x8xf32>
    %468 = vector.shape_cast %465 : vector<2x8x8xf32> to vector<1x1x2x8x8xf32>
    tpu.vector_store %arg16[%c1_236, %c0_237, %c0_238, %c0_239, %c0_240], %468 {strides = array<i32>} : memref<2x4x2x8x8xf32, #tpu.memory_space<vmem>>, vector<1x1x2x8x8xf32>,
    %469 = vector.extract_strided_slice %448 {offsets = [0, 0, 0], sizes = [2, 8, 8], strides = [1, 1, 1]} : vector<2x8x32xf32> to vector<2x8x8xf32>
    "tpu.trace_start"() <{level = 10 : i32, message = "bqk,bkd->bqd"}> : () -> ()
    %cst_241 = arith.constant dense<0.000000e+00> : vector<2x8x8xf32>
    %470 = tpu.matmul %465, %469, %cst_241 {dimension_numbers = #tpu.dot_dimension_numbers<[2], [1], [1], [2], [0, 0, 0, 1, 1, 2], [0], [0]>} : vector<2x8x8xf32>, vector<2x8x8xf32>, vector<2x8x8xf32> -> vector<2x8x8xf32>
    "tpu.trace_stop"() : () -> ()
    %471 = vector.shape_cast %470 : vector<2x8x8xf32> to vector<16x8xf32>
    %472 = vector.extract_strided_slice %442 {offsets = [0, 0], sizes = [8, 32], strides = [1, 1]} : vector<32x32xf32> to vector<8x32xf32>
    %cst_242 = arith.constant dense<0.000000e+00> : vector<16x32xf32>
    %473 = tpu.matmul %471, %472, %cst_242 {dimension_numbers = #tpu.dot_dimension_numbers<[1], [0], [0], [1], [0, 0, 1, 1], [], []>} : vector<16x8xf32>, vector<8x32xf32>, vector<16x32xf32> -> vector<16x32xf32>
    %474 = arith.addf %449, %473 : vector<16x32xf32>
    %475 = vector.extract_strided_slice %444 {offsets = [0, 0, 8], sizes = [2, 8, 8], strides = [1, 1, 1]} : vector<2x8x32xf32> to vector<2x8x8xf32>
    %476 = vector.extract_strided_slice %446 {offsets = [0, 0, 8], sizes = [2, 8, 8], strides = [1, 1, 1]} : vector<2x8x32xf32> to vector<2x8x8xf32>
    "tpu.trace_start"() <{level = 10 : i32, message = "bqd,bkd->bqk"}> : () -> ()
    %cst_243 = arith.constant dense<0.000000e+00> : vector<2x8x8xf32>
    %477 = tpu.matmul %475, %476, %cst_243 {dimension_numbers = #tpu.dot_dimension_numbers<[2], [2], [1], [1], [0, 0, 0, 1, 1, 1], [0], [0]>} : vector<2x8x8xf32>, vector<2x8x8xf32>, vector<2x8x8xf32> -> vector<2x8x8xf32>
    "tpu.trace_stop"() : () -> ()
    %cst_244 = arith.constant 0.353553385 : f32
    %478 = vector.broadcast %cst_244 : f32 to vector<2x8x8xf32>
    %479 = arith.mulf %477, %478 : vector<2x8x8xf32>
    %480 = arith.addf %479, %5 : vector<2x8x8xf32>
    %cst_245 = arith.constant dense<0xFF800000> : vector<2x8xf32>
    %481 = vector.multi_reduction <maximumf>, %480, %cst_245 [2] : vector<2x8x8xf32> to vector<2x8xf32>
    %482 = vector.shape_cast %481 : vector<2x8xf32> to vector<2x8x1xf32>
    %483 = vector.broadcast %482 : vector<2x8x1xf32> to vector<2x8x8xf32>
    %484 = arith.subf %480, %483 : vector<2x8x8xf32>
    %485 = math.exp %484 : vector<2x8x8xf32>
    %cst_246 = arith.constant dense<0.000000e+00> : vector<2x8xf32>
    %486 = vector.multi_reduction <add>, %485, %cst_246 [2] : vector<2x8x8xf32> to vector<2x8xf32>
    %487 = vector.shape_cast %486 : vector<2x8xf32> to vector<2x8x1xf32>
    %488 = tpu.reciprocal %487 {approx = true} : vector<2x8x1xf32> -> vector<2x8x1xf32>
    %489 = vector.broadcast %488 : vector<2x8x1xf32> to vector<2x8x8xf32>
    %490 = arith.mulf %485, %489 : vector<2x8x8xf32>
    %c1_247 = arith.constant 1 : index
    %c1_248 = arith.constant 1 : index
    %c0_249 = arith.constant 0 : index
    %c0_250 = arith.constant 0 : index
    %c0_251 = arith.constant 0 : index
    %491 = vector.load %arg16[%c1_247, %c1_248, %c0_249, %c0_250, %c0_251] : memref<2x4x2x8x8xf32, #tpu.memory_space<vmem>>, vector<1x1x2x8x8xf32>
    %492 = vector.shape_cast %491 : vector<1x1x2x8x8xf32> to vector<2x8x8xf32>
    %493 = vector.shape_cast %490 : vector<2x8x8xf32> to vector<1x1x2x8x8xf32>
    tpu.vector_store %arg16[%c1_247, %c1_248, %c0_249, %c0_250, %c0_251], %493 {strides = array<i32>} : memref<2x4x2x8x8xf32, #tpu.memory_space<vmem>>, vector<1x1x2x8x8xf32>,
    %494 = vector.extract_strided_slice %448 {offsets = [0, 0, 8], sizes = [2, 8, 8], strides = [1, 1, 1]} : vector<2x8x32xf32> to vector<2x8x8xf32>
    "tpu.trace_start"() <{level = 10 : i32, message = "bqk,bkd->bqd"}> : () -> ()
    %cst_252 = arith.constant dense<0.000000e+00> : vector<2x8x8xf32>
    %495 = tpu.matmul %490, %494, %cst_252 {dimension_numbers = #tpu.dot_dimension_numbers<[2], [1], [1], [2], [0, 0, 0, 1, 1, 2], [0], [0]>} : vector<2x8x8xf32>, vector<2x8x8xf32>, vector<2x8x8xf32> -> vector<2x8x8xf32>
    "tpu.trace_stop"() : () -> ()
    %496 = vector.shape_cast %495 : vector<2x8x8xf32> to vector<16x8xf32>
    %497 = vector.extract_strided_slice %442 {offsets = [8, 0], sizes = [8, 32], strides = [1, 1]} : vector<32x32xf32> to vector<8x32xf32>
    %cst_253 = arith.constant dense<0.000000e+00> : vector<16x32xf32>
    %498 = tpu.matmul %496, %497, %cst_253 {dimension_numbers = #tpu.dot_dimension_numbers<[1], [0], [0], [1], [0, 0, 1, 1], [], []>} : vector<16x8xf32>, vector<8x32xf32>, vector<16x32xf32> -> vector<16x32xf32>
    %499 = arith.addf %474, %498 : vector<16x32xf32>
    %500 = vector.extract_strided_slice %444 {offsets = [0, 0, 16], sizes = [2, 8, 8], strides = [1, 1, 1]} : vector<2x8x32xf32> to vector<2x8x8xf32>
    %501 = vector.extract_strided_slice %446 {offsets = [0, 0, 16], sizes = [2, 8, 8], strides = [1, 1, 1]} : vector<2x8x32xf32> to vector<2x8x8xf32>
    "tpu.trace_start"() <{level = 10 : i32, message = "bqd,bkd->bqk"}> : () -> ()
    %cst_254 = arith.constant dense<0.000000e+00> : vector<2x8x8xf32>
    %502 = tpu.matmul %500, %501, %cst_254 {dimension_numbers = #tpu.dot_dimension_numbers<[2], [2], [1], [1], [0, 0, 0, 1, 1, 1], [0], [0]>} : vector<2x8x8xf32>, vector<2x8x8xf32>, vector<2x8x8xf32> -> vector<2x8x8xf32>
    "tpu.trace_stop"() : () -> ()
    %cst_255 = arith.constant 0.353553385 : f32
    %503 = vector.broadcast %cst_255 : f32 to vector<2x8x8xf32>
    %504 = arith.mulf %502, %503 : vector<2x8x8xf32>
    %505 = arith.addf %504, %5 : vector<2x8x8xf32>
    %cst_256 = arith.constant dense<0xFF800000> : vector<2x8xf32>
    %506 = vector.multi_reduction <maximumf>, %505, %cst_256 [2] : vector<2x8x8xf32> to vector<2x8xf32>
    %507 = vector.shape_cast %506 : vector<2x8xf32> to vector<2x8x1xf32>
    %508 = vector.broadcast %507 : vector<2x8x1xf32> to vector<2x8x8xf32>
    %509 = arith.subf %505, %508 : vector<2x8x8xf32>
    %510 = math.exp %509 : vector<2x8x8xf32>
    %cst_257 = arith.constant dense<0.000000e+00> : vector<2x8xf32>
    %511 = vector.multi_reduction <add>, %510, %cst_257 [2] : vector<2x8x8xf32> to vector<2x8xf32>
    %512 = vector.shape_cast %511 : vector<2x8xf32> to vector<2x8x1xf32>
    %513 = tpu.reciprocal %512 {approx = true} : vector<2x8x1xf32> -> vector<2x8x1xf32>
    %514 = vector.broadcast %513 : vector<2x8x1xf32> to vector<2x8x8xf32>
    %515 = arith.mulf %510, %514 : vector<2x8x8xf32>
    %c1_258 = arith.constant 1 : index
    %c2_259 = arith.constant 2 : index
    %c0_260 = arith.constant 0 : index
    %c0_261 = arith.constant 0 : index
    %c0_262 = arith.constant 0 : index
    %516 = vector.load %arg16[%c1_258, %c2_259, %c0_260, %c0_261, %c0_262] : memref<2x4x2x8x8xf32, #tpu.memory_space<vmem>>, vector<1x1x2x8x8xf32>
    %517 = vector.shape_cast %516 : vector<1x1x2x8x8xf32> to vector<2x8x8xf32>
    %518 = vector.shape_cast %515 : vector<2x8x8xf32> to vector<1x1x2x8x8xf32>
    tpu.vector_store %arg16[%c1_258, %c2_259, %c0_260, %c0_261, %c0_262], %518 {strides = array<i32>} : memref<2x4x2x8x8xf32, #tpu.memory_space<vmem>>, vector<1x1x2x8x8xf32>,
    %519 = vector.extract_strided_slice %448 {offsets = [0, 0, 16], sizes = [2, 8, 8], strides = [1, 1, 1]} : vector<2x8x32xf32> to vector<2x8x8xf32>
    "tpu.trace_start"() <{level = 10 : i32, message = "bqk,bkd->bqd"}> : () -> ()
    %cst_263 = arith.constant dense<0.000000e+00> : vector<2x8x8xf32>
    %520 = tpu.matmul %515, %519, %cst_263 {dimension_numbers = #tpu.dot_dimension_numbers<[2], [1], [1], [2], [0, 0, 0, 1, 1, 2], [0], [0]>} : vector<2x8x8xf32>, vector<2x8x8xf32>, vector<2x8x8xf32> -> vector<2x8x8xf32>
    "tpu.trace_stop"() : () -> ()
    %521 = vector.shape_cast %520 : vector<2x8x8xf32> to vector<16x8xf32>
    %522 = vector.extract_strided_slice %442 {offsets = [16, 0], sizes = [8, 32], strides = [1, 1]} : vector<32x32xf32> to vector<8x32xf32>
    %cst_264 = arith.constant dense<0.000000e+00> : vector<16x32xf32>
    %523 = tpu.matmul %521, %522, %cst_264 {dimension_numbers = #tpu.dot_dimension_numbers<[1], [0], [0], [1], [0, 0, 1, 1], [], []>} : vector<16x8xf32>, vector<8x32xf32>, vector<16x32xf32> -> vector<16x32xf32>
    %524 = arith.addf %499, %523 : vector<16x32xf32>
    %525 = vector.extract_strided_slice %444 {offsets = [0, 0, 24], sizes = [2, 8, 8], strides = [1, 1, 1]} : vector<2x8x32xf32> to vector<2x8x8xf32>
    %526 = vector.extract_strided_slice %446 {offsets = [0, 0, 24], sizes = [2, 8, 8], strides = [1, 1, 1]} : vector<2x8x32xf32> to vector<2x8x8xf32>
    "tpu.trace_start"() <{level = 10 : i32, message = "bqd,bkd->bqk"}> : () -> ()
    %cst_265 = arith.constant dense<0.000000e+00> : vector<2x8x8xf32>
    %527 = tpu.matmul %525, %526, %cst_265 {dimension_numbers = #tpu.dot_dimension_numbers<[2], [2], [1], [1], [0, 0, 0, 1, 1, 1], [0], [0]>} : vector<2x8x8xf32>, vector<2x8x8xf32>, vector<2x8x8xf32> -> vector<2x8x8xf32>
    "tpu.trace_stop"() : () -> ()
    %cst_266 = arith.constant 0.353553385 : f32
    %528 = vector.broadcast %cst_266 : f32 to vector<2x8x8xf32>
    %529 = arith.mulf %527, %528 : vector<2x8x8xf32>
    %530 = arith.addf %529, %5 : vector<2x8x8xf32>
    %cst_267 = arith.constant dense<0xFF800000> : vector<2x8xf32>
    %531 = vector.multi_reduction <maximumf>, %530, %cst_267 [2] : vector<2x8x8xf32> to vector<2x8xf32>
    %532 = vector.shape_cast %531 : vector<2x8xf32> to vector<2x8x1xf32>
    %533 = vector.broadcast %532 : vector<2x8x1xf32> to vector<2x8x8xf32>
    %534 = arith.subf %530, %533 : vector<2x8x8xf32>
    %535 = math.exp %534 : vector<2x8x8xf32>
    %cst_268 = arith.constant dense<0.000000e+00> : vector<2x8xf32>
    %536 = vector.multi_reduction <add>, %535, %cst_268 [2] : vector<2x8x8xf32> to vector<2x8xf32>
    %537 = vector.shape_cast %536 : vector<2x8xf32> to vector<2x8x1xf32>
    %538 = tpu.reciprocal %537 {approx = true} : vector<2x8x1xf32> -> vector<2x8x1xf32>
    %539 = vector.broadcast %538 : vector<2x8x1xf32> to vector<2x8x8xf32>
    %540 = arith.mulf %535, %539 : vector<2x8x8xf32>
    %c1_269 = arith.constant 1 : index
    %c3_270 = arith.constant 3 : index
    %c0_271 = arith.constant 0 : index
    %c0_272 = arith.constant 0 : index
    %c0_273 = arith.constant 0 : index
    %541 = vector.load %arg16[%c1_269, %c3_270, %c0_271, %c0_272, %c0_273] : memref<2x4x2x8x8xf32, #tpu.memory_space<vmem>>, vector<1x1x2x8x8xf32>
    %542 = vector.shape_cast %541 : vector<1x1x2x8x8xf32> to vector<2x8x8xf32>
    %543 = vector.shape_cast %540 : vector<2x8x8xf32> to vector<1x1x2x8x8xf32>
    tpu.vector_store %arg16[%c1_269, %c3_270, %c0_271, %c0_272, %c0_273], %543 {strides = array<i32>} : memref<2x4x2x8x8xf32, #tpu.memory_space<vmem>>, vector<1x1x2x8x8xf32>,
    %544 = vector.extract_strided_slice %448 {offsets = [0, 0, 24], sizes = [2, 8, 8], strides = [1, 1, 1]} : vector<2x8x32xf32> to vector<2x8x8xf32>
    "tpu.trace_start"() <{level = 10 : i32, message = "bqk,bkd->bqd"}> : () -> ()
    %cst_274 = arith.constant dense<0.000000e+00> : vector<2x8x8xf32>
    %545 = tpu.matmul %540, %544, %cst_274 {dimension_numbers = #tpu.dot_dimension_numbers<[2], [1], [1], [2], [0, 0, 0, 1, 1, 2], [0], [0]>} : vector<2x8x8xf32>, vector<2x8x8xf32>, vector<2x8x8xf32> -> vector<2x8x8xf32>
    "tpu.trace_stop"() : () -> ()
    %546 = vector.shape_cast %545 : vector<2x8x8xf32> to vector<16x8xf32>
    %547 = vector.extract_strided_slice %442 {offsets = [24, 0], sizes = [8, 32], strides = [1, 1]} : vector<32x32xf32> to vector<8x32xf32>
    %cst_275 = arith.constant dense<0.000000e+00> : vector<16x32xf32>
    %548 = tpu.matmul %546, %547, %cst_275 {dimension_numbers = #tpu.dot_dimension_numbers<[1], [0], [0], [1], [0, 0, 1, 1], [], []>} : vector<16x8xf32>, vector<8x32xf32>, vector<16x32xf32> -> vector<16x32xf32>
    %549 = arith.addf %524, %548 : vector<16x32xf32>
    %550 = arith.addf %549, %434 : vector<16x32xf32>
    %cst_276 = arith.constant dense<0.000000e+00> : vector<16xf32>
    %551 = vector.multi_reduction <add>, %550, %cst_276 [1] : vector<16x32xf32> to vector<16xf32>
    %552 = vector.shape_cast %551 : vector<16xf32> to vector<16x1xf32>
    %cst_277 = arith.constant 3.200000e+01 : f32
    %553 = vector.broadcast %cst_277 : f32 to vector<16x1xf32>
    %554 = arith.divf %552, %553 : vector<16x1xf32>
    %555 = vector.broadcast %554 : vector<16x1xf32> to vector<16x32xf32>
    %556 = arith.subf %550, %555 : vector<16x32xf32>
    %557 = arith.mulf %556, %556 : vector<16x32xf32>
    %cst_278 = arith.constant dense<0.000000e+00> : vector<16xf32>
    %558 = vector.multi_reduction <add>, %557, %cst_278 [1] : vector<16x32xf32> to vector<16xf32>
    %559 = vector.shape_cast %558 : vector<16xf32> to vector<16x1xf32>
    %cst_279 = arith.constant 3.200000e+01 : f32
    %560 = vector.broadcast %cst_279 : f32 to vector<16x1xf32>
    %561 = arith.divf %559, %560 : vector<16x1xf32>
    %562 = vector.broadcast %554 : vector<16x1xf32> to vector<16x32xf32>
    %563 = arith.subf %550, %562 : vector<16x32xf32>
    %cst_280 = arith.constant 9.99999974E-6 : f32
    %564 = vector.broadcast %cst_280 : f32 to vector<16x1xf32>
    %565 = arith.addf %561, %564 : vector<16x1xf32>
    %566 = math.rsqrt %565 : vector<16x1xf32>
    %567 = vector.broadcast %566 : vector<16x1xf32> to vector<16x32xf32>
    %568 = arith.mulf %563, %567 : vector<16x32xf32>
    %c1_281 = arith.constant 1 : index
    %c0_282 = arith.constant 0 : index
    %c0_283 = arith.constant 0 : index
    %569 = vector.load %arg12[%c1_281, %c0_282, %c0_283] : memref<2x32x64xf32, #tpu.memory_space<vmem>>, vector<1x32x64xf32>
    %570 = vector.shape_cast %569 : vector<1x32x64xf32> to vector<32x64xf32>
    %cst_284 = arith.constant dense<0.000000e+00> : vector<16x64xf32>
    %571 = tpu.matmul %568, %570, %cst_284 {dimension_numbers = #tpu.dot_dimension_numbers<[1], [0], [0], [1], [0, 0, 1, 1], [], []>} : vector<16x32xf32>, vector<32x64xf32>, vector<16x64xf32> -> vector<16x64xf32>
    %cst_285 = arith.constant 0.000000e+00 : f32
    %572 = vector.broadcast %cst_285 : f32 to vector<16x64xf32>
    %573 = arith.maximumf %571, %572 : vector<16x64xf32>
    %c1_286 = arith.constant 1 : index
    %c0_287 = arith.constant 0 : index
    %c0_288 = arith.constant 0 : index
    %574 = vector.load %arg13[%c1_286, %c0_287, %c0_288] : memref<2x64x32xf32, #tpu.memory_space<vmem>>, vector<1x64x32xf32>
    %575 = vector.shape_cast %574 : vector<1x64x32xf32> to vector<64x32xf32>
    %cst_289 = arith.constant dense<0.000000e+00> : vector<16x32xf32>
    %576 = tpu.matmul %573, %575, %cst_289 {dimension_numbers = #tpu.dot_dimension_numbers<[1], [0], [0], [1], [0, 0, 1, 1], [], []>} : vector<16x64xf32>, vector<64x32xf32>, vector<16x32xf32> -> vector<16x32xf32>
    %577 = arith.addf %576, %568 : vector<16x32xf32>
    %cst_290 = arith.constant dense<0.000000e+00> : vector<16xf32>
    %578 = vector.multi_reduction <add>, %577, %cst_290 [1] : vector<16x32xf32> to vector<16xf32>
    %579 = vector.shape_cast %578 : vector<16xf32> to vector<16x1xf32>
    %cst_291 = arith.constant 3.200000e+01 : f32
    %580 = vector.broadcast %cst_291 : f32 to vector<16x1xf32>
    %581 = arith.divf %579, %580 : vector<16x1xf32>
    %582 = vector.broadcast %581 : vector<16x1xf32> to vector<16x32xf32>
    %583 = arith.subf %577, %582 : vector<16x32xf32>
    %584 = arith.mulf %583, %583 : vector<16x32xf32>
    %cst_292 = arith.constant dense<0.000000e+00> : vector<16xf32>
    %585 = vector.multi_reduction <add>, %584, %cst_292 [1] : vector<16x32xf32> to vector<16xf32>
    %586 = vector.shape_cast %585 : vector<16xf32> to vector<16x1xf32>
    %cst_293 = arith.constant 3.200000e+01 : f32
    %587 = vector.broadcast %cst_293 : f32 to vector<16x1xf32>
    %588 = arith.divf %586, %587 : vector<16x1xf32>
    %589 = vector.broadcast %581 : vector<16x1xf32> to vector<16x32xf32>
    %590 = arith.subf %577, %589 : vector<16x32xf32>
    %cst_294 = arith.constant 9.99999974E-6 : f32
    %591 = vector.broadcast %cst_294 : f32 to vector<16x1xf32>
    %592 = arith.addf %588, %591 : vector<16x1xf32>
    %593 = math.rsqrt %592 : vector<16x1xf32>
    %594 = vector.broadcast %593 : vector<16x1xf32> to vector<16x32xf32>
    %595 = arith.mulf %590, %594 : vector<16x32xf32>
    %596 = vector.shape_cast %595 : vector<16x32xf32> to vector<2x8x32xf32>
    %c0_295 = arith.constant 0 : index
    %c0_296 = arith.constant 0 : index
    %c0_297 = arith.constant 0 : index
    %597 = vector.load %arg14[%c0_295, %c0_296, %c0_297] : memref<2x8x32xf32, #tpu.memory_space<vmem>>, vector<2x8x32xf32>
    tpu.vector_store %arg14[%c0_295, %c0_296, %c0_297], %596 {strides = array<i32>} : memref<2x8x32xf32, #tpu.memory_space<vmem>>, vector<2x8x32xf32>,
    return
  }
}

</mosaic_0001>

<bundles_post_ra>
// kernel: decoder_forward.1
= control target key start
LH: loop header
LB: loop body
LE: loop exit
PB: predicated region body
PF: predicated region fallthrough
CT: control target
= control target key end

     0   :  { %s10899_s0 = inlined_call_operand.vmem [shape: f32[2,8,32], index: 0, kind: input, shape index: {}]   ;;  %s10900_s1 = inlined_call_operand.vmem [shape: f32[2,8,32], index: 1, kind: input, shape index: {}]   ;;  %s10901_s2 = inlined_call_operand.vmem [shape: f32[2,8,8], index: 2, kind: input, shape index: {}]   ;;  %s10902_s3 = inlined_call_operand.vmem [shape: f32[2,8,8], index: 3, kind: input, shape index: {}]   ;;  %s10903_s4 = inlined_call_operand.vmem [shape: f32[2,32,32], index: 4, kind: input, shape index: {}]   ;;  %s10904_s5 = inlined_call_operand.vmem [shape: f32[2,32,32], index: 5, kind: input, shape index: {}]   ;;  %s10905_s6 = inlined_call_operand.vmem [shape: f32[2,32,32], index: 6, kind: input, shape index: {}]   ;;  %s10906_s7 = inlined_call_operand.vmem [shape: f32[2,32,32], index: 7, kind: input, shape index: {}]   ;;  %s10907_s8 = inlined_call_operand.vmem [shape: f32[2,32,32], index: 8, kind: input, shape index: {}]   ;;  %s10908_s9 = inlined_call_operand.vmem [shape: f32[2,32,32], index: 9, kind: input, shape index: {}]   ;;  %s10909_s10 = inlined_call_operand.vmem [shape: f32[2,32,32], index: 10, kind: input, shape index: {}]   ;;  %s10910_s11 = inlined_call_operand.vmem [shape: f32[2,32,32], index: 11, kind: input, shape index: {}]   ;;  %s10911_s12 = inlined_call_operand.vmem [shape: f32[2,32,64], index: 12, kind: input, shape index: {}]   ;;  %s10912_s13 = inlined_call_operand.vmem [shape: f32[2,64,32], index: 13, kind: input, shape index: {}]   ;;  %s10913_s14 = inlined_call_operand.hbm [shape: f32[2,8,32], index: 14, kind: output, shape index: {0}]   ;;  %s10914_s15 = inlined_call_operand.vmem [shape: f32[2,4,2,8,8], index: 15, kind: output, shape index: {1}]   ;;  %s10915_s16 = inlined_call_operand.vmem [shape: f32[2,4,2,8,8], index: 16, kind: output, shape index: {2}]  }
   0x1   :  { %10917 = sst [smem:[#allocation5_spill]] %s10899_s0 }
   0x2   :  { %v66_v0 = vld [vmem:[%s10904_s5 + $0x18] sm:$0xff]  ;;  %v65_v2 = vld [vmem:[%s10904_s5 + $0x10] sm:$0xff]  ;;  %v64_v4 = vld [vmem:[%s10904_s5 + $0x8] sm:$0xff] }
   0x3   :  { %v62_v1 = vld [vmem:[%s10903_s4 + $0x18] sm:$0xff]  ;;  %8802 = vmatprep.subr.mxu1 %v66_v0  ;;  %v61_v3 = vld [vmem:[%s10903_s4 + $0x10] sm:$0xff]  ;;  %v60_v5 = vld [vmem:[%s10903_s4 + $0x8] sm:$0xff] }
   0x4   :  { %8791 = vmatprep.subr.mxu0 %v62_v1  ;;  %8803 = vmatpush3.msra.mxu1 %v66_v0  ;;  %v63_v6 = vld [vmem:[%s10904_s5] sm:$0xff] }
   0x5   :  { %8792 = vmatpush3.msra.mxu0 %v62_v1  ;;  %8804 = vmatprep.subr.mxu1 %v65_v2  ;;  %v59_v7 = vld [vmem:[%s10903_s4] sm:$0xff] }
   0x6   :  { %8793 = vmatprep.subr.mxu0 %v61_v3  ;;  %8805 = vmatpush3.msra.mxu1 %v65_v2 }
   0x7   :  { %8794 = vmatpush3.msra.mxu0 %v61_v3 }
   0x8   :  { %22 = vsyncpa [#allocation3], 0  ;;  %8806 = vmatprep.subr.mxu1 %v64_v4  ;;  %8795 = vmatprep.subr.mxu0 %v60_v5  ;;  %s10918_s24 = sld [smem:[#allocation5_spill]]  ;;  %vm75_vm0 = vcmask 261120   ;;  %v70_v10 = vld [vmem:[%s10905_s6 + $0x18] sm:$0xff]  ;;  %v69_v11 = vld [vmem:[%s10905_s6 + $0x10] sm:$0xff] }
   0x9   :  { %8807 = vmatpush3.msra.mxu1 %v64_v4  ;;  %8796 = vmatpush3.msra.mxu0 %v60_v5  ;;  %v68_v12 = vld [vmem:[%s10905_s6 + $0x8] sm:$0xff]  ;;  %v67_v13 = vld [vmem:[%s10905_s6] sm:$0xff]  ;;  %v9571_v14 = vmov 0.0   ;;  %vm9572_vm1 = vmmov 0   ;;  %vm307_vm2 = vcmask 64512   ;;  %s9573_s20 = smov 120  }
   0xa   :  { %8808 = vmatprep.subr.mxu1 %v63_v6  ;;  %8797 = vmatprep.subr.mxu0 %v59_v7  ;;  %v9765_v24 = vld [vmem:[%s10901_s2] sm:$0xff]  ;;  %v9770_v28 = vld [vmem:[%s10901_s2 + $0x8] sm:$0xff]  ;;  %s9574_s29 = smov 112   ;;  %vm4047_vm3 = vcmask 523264  }
   0xb   :  { %8809 = vmatpush3.msra.mxu1 %v63_v6  ;;  %8798 = vmatpush3.msra.mxu0 %v59_v7 }
   0xc   :  { %8813 = vmatprep.subr.mxu0 %v70_v10  ;;  %8829 = vmatprep.subr.mxu1 %v9571_v14 }
   0xe   :  { %v9691_v8 = vld [vmem:[%s10918_s24] sm:$0xff]  ;;  %v9696_v9 = vld [vmem:[%s10918_s24 + $0x8] sm:$0xff]  ;;  %s9575_s24 = smov 104  }
   0xf   :  { %8810 = vmatprep.mubr.msk.f32.mxu1 %vm75_vm0, %v9691_v8  ;;  %8799 = vmatprep.mubr.msk.f32.mxu0 %vm75_vm0, %v9691_v8 }
  0x10   :  { %8811 = vmatmul.mubr.msk.f32.vlgmr.msra.gmra.mxu1 %vm75_vm0, %v9696_v9  ;;  %8800 = vmatmul.mubr.msk.f32.vlgmr.msra.gmra.mxu0 %vm75_vm0, %v9696_v9 }
  0x11   :  { %8821 = vmatprep.mubr.msk.f32.mxu0 %vm75_vm0, %v9691_v8  ;;  %8814 = vmatpush3.msra.mxu0 %v70_v10 }
  0x12   :  { %8815 = vmatprep.subr.mxu0 %v69_v11  ;;  %8831 = vmatprep.mubr.msk.f32.mxu1 %vm9572_vm1, %v9571_v14 }
  0x13   :  { %8816 = vmatpush3.msra.mxu0 %v69_v11 }
  0x14   :  { %8817 = vmatprep.subr.mxu0 %v68_v12 }
  0x15   :  { %8818 = vmatpush3.msra.mxu0 %v68_v12 }
  0x16   :  { %8819 = vmatprep.subr.mxu0 %v67_v13 }
  0x17   :  { %8820 = vmatpush3.msra.mxu0 %v67_v13 }
  0x18   :  { %8822 = vmatmul.mubr.msk.f32.vlgmr.msra.gmra.mxu0 %vm75_vm0, %v9696_v9  ;;  %8824 = vmatprep.subr.mxu0 %v9571_v14 }
  0x19   :  { %8826 = vmatprep.mubr.msk.f32.mxu0 %vm9572_vm1, %v9571_v14 }
  0xd0   :  { %v9728_v15 = vpop.f32.mrf.mxu1  ;;  %v9730_v16 = vpop.f32.mrf.mxu0 }
  0xd1   :  { %714 = vrot.lane.b32.xlu1 %v9728_v15, %s9573_s20  ;;  %8830 = vmatpush3.xpose.msk.msra.mxu1 %vm307_vm2, %v9728_v15 }
  0xd2   :  { %v9736_v17 = vpop.f32.mrf.mxu1  ;;  %v9738_v18 = vpop.f32.mrf.mxu0  ;;  %8839 = vmatprep.subr.mxu1 %v9571_v14 }
  0xd3   :  { %8825 = vmatpush3.xpose.msk.msra.mxu0 %vm307_vm2, %v9736_v17 }
  0xd4   :  { %8832 = vmatmul.mubr.msk.f32.vlgmr.msra.gmra.mxu1 %vm307_vm2, %v9730_v16  ;;  %8834 = vmatprep.subr.mxu0 %v9571_v14 }
  0xd5   :  { %634 = vrot.lane.b32.xlu1 %v9738_v18, %s9573_s20  ;;  %8841 = vmatprep.mubr.msk.f32.mxu1 %vm9572_vm1, %v9571_v14 }
  0xd6   :  { %8827 = vmatmul.mubr.msk.f32.vlgmr.msra.gmra.mxu0 %vm307_vm2, %v9738_v18 }
  0xd7   :  { %8836 = vmatprep.mubr.msk.f32.mxu0 %vm9572_vm1, %v9571_v14 }
  0xd8   :  { %v9754_v19 = vpop.f32.mrf.mxu0 }
  0xd9   :  { %8840 = vmatpush3.msra.mxu1 %v9754_v19 }
  0xda   :  { %v9757_v20 = vpop.f32.mrf.mxu0  ;;  %8849 = vmatprep.subr.mxu1 %v9571_v14 }
  0xdb   :  { %8835 = vmatpush3.msra.mxu0 %v9757_v20 }
  0xdc   :  { %8844 = vmatprep.subr.mxu0 %v9571_v14 }
 0x143   :  { %v715_v43 = vpop.permute.xlu1 %714 }
 0x147   :  { %v635_v44 = vpop.permute.xlu1 %634 }
 0x194   :  { %v456_v21 = vpop.f32.mrf.mxu1 }
 0x195   :  { %v461_v25 = vmul.f32 0.35355338, %v456_v21 }
 0x196   :  { %v380_v22 = vpop.f32.mrf.mxu0  ;;  %v8833_v23 = vpop.f32.mrf.mxu1 }
 0x197   :  { %v460_v26 = vmul.f32 0.35355338, %v380_v22  ;;  %v463_v31 = vadd.f32 %v461_v25, %v9770_v28  ;;  %v71_v23 = vld [vmem:[%s10906_s7] sm:$0xff] }
 0x198   :  { %v8828_v27 = vpop.f32.mrf.mxu0 }
 0x199   :  { %v462_v29 = vadd.f32 %v460_v26, %v9765_v24  ;;  %v467_v32 = vsel %vm307_vm2, %v463_v31, -inf }
 0x19b   :  { %v464_v30 = vsel %vm307_vm2, %v462_v29, -inf }
 0x19c   :  { %465 = vmax.xlane.f32.xlu0 %v464_v30 }
 0x1a0   :  { %468 = vmax.xlane.f32.xlu0 %v467_v32 }
 0x1b6   :  { %636 = vrot.lane.b32.xlu0 %v9736_v17, %s9573_s20 }
 0x225   :  { %v466_v33 = vpop.xlane.xlu0 %465 }
 0x226   :  { %v470_v34 = vsub.f32 %v462_v29, %v466_v33 }
 0x228   :  { %v472_v37 = vmul.f32 1.442695, %v470_v34 }
 0x229   :  { %v469_v35 = vpop.xlane.xlu0 %468 }
 0x22a   :  { %v471_v36 = vsub.f32 %v463_v31, %v469_v35 }
 0x22c   :  { %v474_v38 = vmul.f32 1.442695, %v471_v36  ;;  %v72_v36 = vld [vmem:[%s10906_s7 + $0x8] sm:$0xff] }
 0x22d   :  { %v637_v52 = vpop.permute.xlu0 %636 }
 0x22e   :  { %9391 = vpow2.f32 %v474_v38 }
 0x22f   :  { %9393 = vpow2.f32 %v472_v37 }
 0x23b   :  { %v9392_v39 = vpop.eup %9391 }
 0x23c   :  { %v479_v40 = vsel %vm307_vm2, %v9392_v39, 0.0  ;;  %v9394_v41 = vpop.eup %9393 }
 0x23d   :  { %480 = vadd.xlane.f32.xlu1 %v479_v40  ;;  %v476_v42 = vsel %vm307_vm2, %v9394_v41, 0.0 }
 0x241   :  { %477 = vadd.xlane.f32.xlu1 %v476_v42 }
 0x252   :  { %712 = vrot.lane.b32.xlu1 %v9730_v16, %s9573_s20 }
 0x2c6   :  { %v481_v45 = vpop.xlane.xlu1 %480 }
 0x2c7   :  { %9395 = vrcp.f32 %v481_v45 }
 0x2ca   :  { %v478_v46 = vpop.xlane.xlu1 %477 }
 0x2cb   :  { %9397 = vrcp.f32 %v478_v46 }
 0x2ce   :  { %v713_v51 = vpop.permute.xlu1 %712 }
 0x2d4   :  { %v9396_v47 = vpop.eup %9395 }
 0x2d5   :  { %v485_v48 = vmul.f32 %v9396_v47, %v9392_v39 }
 0x2d7   :  { %487 = vst.msk [vmem:[%s10914_s15 + $0x8] sm:$0xff] %vm307_vm2, %v485_v48  ;;  %8842 = vmatmul.mubr.msk.f32.vlgmr.msra.gmra.mxu1 %vm307_vm2, %v485_v48 }
 0x2d8   :  { %v9398_v49 = vpop.eup %9397  ;;  %8850 = vmatpush3.xpose.msk.msra.mxu1 %vm307_vm2, %v715_v43  ;;  %8851 = vmatprep.mubr.msk.f32.mxu1 %vm9572_vm1, %v9571_v14 }
 0x2d9   :  { %v484_v50 = vmul.f32 %v9398_v49, %v9394_v41  ;;  %8859 = vmatprep.subr.mxu1 %v9571_v14 }
 0x2db   :  { %486 = vst.msk [vmem:[%s10914_s15] sm:$0xff] %vm307_vm2, %v484_v50  ;;  %8837 = vmatmul.mubr.msk.f32.vlgmr.msra.gmra.mxu0 %vm307_vm2, %v484_v50  ;;  %8852 = vmatmul.mubr.msk.f32.vlgmr.msra.gmra.mxu1 %vm307_vm2, %v713_v51 }
 0x2dc   :  { %8845 = vmatpush3.xpose.msk.msra.mxu0 %vm307_vm2, %v637_v52  ;;  %8846 = vmatprep.mubr.msk.f32.mxu0 %vm9572_vm1, %v9571_v14 }
 0x2dd   :  { %8854 = vmatprep.subr.mxu0 %v9571_v14  ;;  %8861 = vmatprep.mubr.msk.f32.mxu1 %vm9572_vm1, %v9571_v14 }
 0x2df   :  { %8847 = vmatmul.mubr.msk.f32.vlgmr.msra.gmra.mxu0 %vm307_vm2, %v635_v44 }
 0x2e0   :  { %8856 = vmatprep.mubr.msk.f32.mxu0 %vm9572_vm1, %v9571_v14 }
 0x397   :  { %v630_v53 = vpop.f32.mrf.mxu1 }
 0x399   :  { %v8843_v54 = vpop.f32.mrf.mxu1 }
 0x39b   :  { %v557_v55 = vpop.f32.mrf.mxu0  ;;  %v786_v56 = vpop.f32.mrf.mxu1 }
 0x39c   :  { %v791_v57 = vmul.f32 0.35355338, %v786_v56 }
 0x39d   :  { %v8838_v58 = vpop.f32.mrf.mxu0  ;;  %v8853_v59 = vpop.f32.mrf.mxu1 }
 0x39e   :  { %v793_v60 = vadd.f32 %v791_v57, %v9770_v28 }
 0x39f   :  { %v708_v61 = vpop.f32.mrf.mxu0 }
 0x3a0   :  { %v790_v62 = vmul.f32 0.35355338, %v708_v61  ;;  %v797_v63 = vsel %vm307_vm2, %v793_v60, -inf }
 0x3a1   :  { %798 = vmax.xlane.f32.xlu1 %v797_v63  ;;  %v8848_v0 = vpop.f32.mrf.mxu0 }
 0x3a2   :  { %v792_v1 = vadd.f32 %v790_v62, %v9765_v24 }
 0x3a4   :  { %v794_v2 = vsel %vm307_vm2, %v792_v1, -inf }
 0x3a5   :  { %795 = vmax.xlane.f32.xlu0 %v794_v2 }
 0x3b2   :  { %897 = vrot.lane.b32.xlu1 %v9754_v19, %s9573_s20 }
 0x3b6   :  { %1137 = vrot.lane.b32.xlu1 %v9736_v17, %s9574_s29 }
 0x3ba   :  { %1215 = vrot.lane.b32.xlu1 %v9728_v15, %s9574_s29 }
 0x3be   :  { %1213 = vrot.lane.b32.xlu1 %v9730_v16, %s9574_s29 }
 0x42a   :  { %v799_v3 = vpop.xlane.xlu1 %798 }
 0x42b   :  { %v801_v4 = vsub.f32 %v793_v60, %v799_v3 }
 0x42d   :  { %v804_v5 = vmul.f32 1.442695, %v801_v4 }
 0x42e   :  { %v898_v6 = vpop.permute.xlu1 %897  ;;  %v796_v7 = vpop.xlane.xlu0 %795 }
 0x42f   :  { %9399 = vpow2.f32 %v804_v5  ;;  %v800_v10 = vsub.f32 %v792_v1, %v796_v7  ;;  %8860 = vmatpush3.msra.mxu1 %v898_v6 }
 0x430   :  { %8869 = vmatprep.subr.mxu1 %v71_v23 }
 0x431   :  { %v802_v11 = vmul.f32 1.442695, %v800_v10 }
 0x432   :  { %v1138_v29 = vpop.permute.xlu1 %1137 }
 0x433   :  { %9401 = vpow2.f32 %v802_v11 }
 0x436   :  { %v1216_v33 = vpop.permute.xlu1 %1215 }
 0x43a   :  { %v1214_v35 = vpop.permute.xlu1 %1213 }
 0x43c   :  { %v9400_v12 = vpop.eup %9399 }
 0x43d   :  { %v809_v13 = vsel %vm307_vm2, %v9400_v12, 0.0 }
 0x43e   :  { %810 = vadd.xlane.f32.xlu0 %v809_v13 }
 0x440   :  { %v9402_v21 = vpop.eup %9401 }
 0x441   :  { %v806_v22 = vsel %vm307_vm2, %v9402_v21, 0.0 }
 0x442   :  { %807 = vadd.xlane.f32.xlu0 %v806_v22 }
 0x458   :  { %820 = vrot.lane.b32.xlu0 %v9757_v20, %s9573_s20 }
 0x45c   :  { %1135 = vrot.lane.b32.xlu0 %v9738_v18, %s9574_s29 }
 0x4c7   :  { %v811_v25 = vpop.xlane.xlu0 %810 }
 0x4c8   :  { %9403 = vrcp.f32 %v811_v25 }
 0x4cb   :  { %v808_v26 = vpop.xlane.xlu0 %807 }
 0x4cc   :  { %9405 = vrcp.f32 %v808_v26 }
 0x4cf   :  { %v821_v27 = vpop.permute.xlu0 %820 }
 0x4d0   :  { %8855 = vmatpush3.msra.mxu0 %v821_v27 }
 0x4d1   :  { %8864 = vmatprep.subr.mxu0 %v72_v36 }
 0x4d3   :  { %v1136_v44 = vpop.permute.xlu0 %1135 }
 0x4d5   :  { %v9404_v30 = vpop.eup %9403 }
 0x4d6   :  { %v815_v31 = vmul.f32 %v9404_v30, %v9400_v12  ;;  %v73_v12 = vld [vmem:[%s10906_s7 + $0x10] sm:$0xff] }
 0x4d8   :  { %8296 = vst.msk [vmem:[%s10914_s15 + $0x18] sm:$0xff] %vm307_vm2, %v815_v31  ;;  %8862 = vmatmul.mubr.msk.f32.vlgmr.msra.gmra.mxu1 %vm307_vm2, %v815_v31 }
 0x4d9   :  { %v9406_v32 = vpop.eup %9405  ;;  %8871 = vmatprep.mubr.msk.f32.mxu1 %vm307_vm2, %v557_v55  ;;  %8870 = vmatpush3.msra.mxu1 %v71_v23 }
 0x4da   :  { %8879 = vmatprep.subr.mxu1 %v9571_v14  ;;  %v814_v34 = vmul.f32 %v9406_v32, %v9402_v21 }
 0x4dc   :  { %8295 = vst.msk [vmem:[%s10914_s15 + $0x10] sm:$0xff] %vm307_vm2, %v814_v34  ;;  %8857 = vmatmul.mubr.msk.f32.vlgmr.msra.gmra.mxu0 %vm307_vm2, %v814_v34  ;;  %8872 = vmatmul.mubr.msk.f32.vlgmr.msra.gmra.mxu1 %vm307_vm2, %v630_v53 }
 0x4dd   :  { %8880 = vmatpush3.xpose.msk.msra.mxu1 %vm307_vm2, %v1216_v33  ;;  %8881 = vmatprep.mubr.msk.f32.mxu1 %vm9572_vm1, %v9571_v14 }
 0x4de   :  { %8889 = vmatprep.subr.mxu1 %v9571_v14  ;;  %8865 = vmatpush3.msra.mxu0 %v72_v36 }
 0x4df   :  { %8874 = vmatprep.subr.mxu0 %v9571_v14 }
 0x4e0   :  { %8882 = vmatmul.mubr.msk.f32.vlgmr.msra.gmra.mxu1 %vm307_vm2, %v1214_v35 }
 0x4e1   :  { %8891 = vmatprep.mubr.msk.f32.mxu1 %vm9572_vm1, %v9571_v14 }
 0x598   :  { %v969_v37 = vpop.f32.mrf.mxu1 }
 0x59a   :  { %v8863_v38 = vpop.f32.mrf.mxu1 }
 0x59c   :  { %v892_v39 = vpop.f32.mrf.mxu0  ;;  %v9851_v40 = vpop.f32.mrf.mxu1 }
 0x59d   :  { %8866 = vmatprep.mubr.msk.f32.mxu0 %vm307_vm2, %v892_v39 }
 0x59e   :  { %v8858_v41 = vpop.f32.mrf.mxu0  ;;  %8867 = vmatmul.mubr.msk.f32.vlgmr.msra.gmra.mxu0 %vm307_vm2, %v969_v37  ;;  %v9855_v42 = vpop.f32.mrf.mxu1 }
 0x59f   :  { %8875 = vmatpush3.xpose.msk.msra.mxu0 %vm307_vm2, %v1138_v29  ;;  %8876 = vmatprep.mubr.msk.f32.mxu0 %vm9572_vm1, %v9571_v14 }
 0x5a0   :  { %v1287_v43 = vpop.f32.mrf.mxu1  ;;  %8884 = vmatprep.subr.mxu0 %v9571_v14 }
 0x5a1   :  { %v1292_v45 = vmul.f32 0.35355338, %v1287_v43 }
 0x5a2   :  { %8877 = vmatmul.mubr.msk.f32.vlgmr.msra.gmra.mxu0 %vm307_vm2, %v1136_v44  ;;  %v8883_v46 = vpop.f32.mrf.mxu1 }
 0x5a3   :  { %v1294_v47 = vadd.f32 %v1292_v45, %v9770_v28  ;;  %8886 = vmatprep.mubr.msk.f32.mxu0 %vm9572_vm1, %v9571_v14 }
 0x5a5   :  { %v1298_v48 = vsel %vm307_vm2, %v1294_v47, -inf }
 0x5a6   :  { %1299 = vmax.xlane.f32.xlu1 %v1298_v48 }
 0x5b7   :  { %1396 = vrot.lane.b32.xlu1 %v9754_v19, %s9574_s29 }
 0x5bb   :  { %1557 = vrot.lane.b32.xlu1 %v9736_v17, %s9575_s24 }
 0x5bf   :  { %1635 = vrot.lane.b32.xlu1 %v9728_v15, %s9575_s24 }
 0x5c3   :  { %1633 = vrot.lane.b32.xlu1 %v9730_v16, %s9575_s24 }
 0x62f   :  { %v1300_v49 = vpop.xlane.xlu1 %1299 }
 0x630   :  { %v1302_v51 = vsub.f32 %v1294_v47, %v1300_v49 }
 0x632   :  { %v1305_v52 = vmul.f32 1.442695, %v1302_v51 }
 0x633   :  { %v1397_v50 = vpop.permute.xlu1 %1396 }
 0x634   :  { %8890 = vmatpush3.msra.mxu1 %v1397_v50  ;;  %9407 = vpow2.f32 %v1305_v52 }
 0x635   :  { %8899 = vmatprep.subr.mxu1 %v9571_v14 }
 0x637   :  { %v1558_v3 = vpop.permute.xlu1 %1557 }
 0x63b   :  { %v1636_v26 = vpop.permute.xlu1 %1635 }
 0x63f   :  { %v1634_v30 = vpop.permute.xlu1 %1633 }
 0x641   :  { %v9408_v16 = vpop.eup %9407 }
 0x642   :  { %v1310_v58 = vsel %vm307_vm2, %v9408_v16, 0.0 }
 0x65e   :  { %v9875_v53 = vpop.f32.mrf.mxu0 }
 0x65f   :  { %v1132_v35 = vadd.f32 %v9851_v40, %v9875_v53 }
 0x660   :  { %v9877_v54 = vpop.f32.mrf.mxu0 }
 0x661   :  { %v1127_v37 = vadd.f32 %v9855_v42, %v9877_v54 }
 0x662   :  { %v1209_v55 = vpop.f32.mrf.mxu0 }
 0x663   :  { %v1291_v17 = vmul.f32 0.35355338, %v1209_v55 }
 0x664   :  { %v8878_v56 = vpop.f32.mrf.mxu0 }
 0x665   :  { %v1293_v15 = vadd.f32 %v1291_v17, %v9765_v24  ;;  %v74_v56 = vld [vmem:[%s10906_s7 + $0x18] sm:$0xff] }
 0x667   :  { %v1295_v57 = vsel %vm307_vm2, %v1293_v15, -inf }
 0x668   :  { %1296 = vmax.xlane.f32.xlu0 %v1295_v57 }
 0x66c   :  { %1311 = vadd.xlane.f32.xlu0 %v1310_v58 }
 0x6f1   :  { %v1297_v59 = vpop.xlane.xlu0 %1296 }
 0x6f2   :  { %v1301_v60 = vsub.f32 %v1293_v15, %v1297_v59 }
 0x6f4   :  { %v1303_v61 = vmul.f32 1.442695, %v1301_v60 }
 0x6f5   :  { %v1312_v62 = vpop.xlane.xlu0 %1311 }
 0x6f6   :  { %9409 = vpow2.f32 %v1303_v61 }
 0x6f7   :  { %9411 = vrcp.f32 %v1312_v62 }
 0x703   :  { %v9410_v63 = vpop.eup %9409 }
 0x704   :  { %v9412_v0 = vpop.eup %9411  ;;  %v1307_v1 = vsel %vm307_vm2, %v9410_v63, 0.0 }
 0x705   :  { %1308 = vadd.xlane.f32.xlu0 %v1307_v1  ;;  %v1316_v2 = vmul.f32 %v9412_v0, %v9408_v16 }
 0x707   :  { %8308 = vst.msk [vmem:[%s10914_s15 + $0x28] sm:$0xff] %vm307_vm2, %v1316_v2  ;;  %8892 = vmatmul.mubr.msk.f32.vlgmr.msra.gmra.mxu1 %vm307_vm2, %v1316_v2 }
 0x708   :  { %8900 = vmatpush3.xpose.msk.msra.mxu1 %vm307_vm2, %v1558_v3  ;;  %8901 = vmatprep.mubr.msk.f32.mxu1 %vm9572_vm1, %v9571_v14 }
 0x709   :  { %8909 = vmatprep.subr.mxu1 %v9571_v14 }
 0x71b   :  { %1320 = vrot.lane.b32.xlu0 %v9757_v20, %s9574_s29 }
 0x71f   :  { %1555 = vrot.lane.b32.xlu0 %v9738_v18, %s9575_s24 }
 0x78e   :  { %v1309_v4 = vpop.xlane.xlu0 %1308 }
 0x78f   :  { %9413 = vrcp.f32 %v1309_v4 }
 0x792   :  { %v1321_v5 = vpop.permute.xlu0 %1320 }
 0x793   :  { %8885 = vmatpush3.msra.mxu0 %v1321_v5 }
 0x794   :  { %8894 = vmatprep.subr.mxu0 %v73_v12 }
 0x796   :  { %v1556_v6 = vpop.permute.xlu0 %1555 }
 0x797   :  { %8902 = vmatmul.mubr.msk.f32.vlgmr.msra.gmra.mxu1 %vm307_vm2, %v1556_v6 }
 0x798   :  { %8911 = vmatprep.mubr.msk.f32.mxu1 %vm9572_vm1, %v9571_v14 }
 0x79c   :  { %v9414_v7 = vpop.eup %9413 }
 0x79d   :  { %v1315_v10 = vmul.f32 %v9414_v7, %v9410_v63 }
 0x79f   :  { %8307 = vst.msk [vmem:[%s10914_s15 + $0x20] sm:$0xff] %vm307_vm2, %v1315_v10  ;;  %8887 = vmatmul.mubr.msk.f32.vlgmr.msra.gmra.mxu0 %vm307_vm2, %v1315_v10 }
 0x7a0   :  { %8895 = vmatpush3.msra.mxu0 %v73_v12  ;;  %v2010_v12 = vld [vmem:[%s10908_s9 + $0x10] sm:$0xff] }
 0x7a1   :  { %8904 = vmatprep.subr.mxu0 %v9571_v14 }
 0x7c7   :  { %v1468_v18 = vpop.f32.mrf.mxu1 }
 0x7c9   :  { %v8893_v11 = vpop.f32.mrf.mxu1 }
 0x857   :  { %v1629_v13 = vpop.f32.mrf.mxu1 }
 0x858   :  { %v1711_v21 = vmul.f32 0.35355338, %v1629_v13  ;;  %v2007_v13 = vld [vmem:[%s10907_s8 + $0x18] sm:$0xff] }
 0x859   :  { %v8903_v22 = vpop.f32.mrf.mxu1 }
 0x85a   :  { %v1713_v23 = vadd.f32 %v1711_v21, %v9765_v24  ;;  %v2006_v21 = vld [vmem:[%s10907_s8 + $0x10] sm:$0xff]  ;;  %v2009_v22 = vld [vmem:[%s10908_s9 + $0x8] sm:$0xff] }
 0x85c   :  { %v1715_v25 = vsel %vm307_vm2, %v1713_v23, -inf }
 0x85d   :  { %1716 = vmax.xlane.f32.xlu0 %v1715_v25  ;;  %v2008_v25 = vld [vmem:[%s10908_s9] sm:$0xff] }
 0x85f   :  { %v1392_v27 = vpop.f32.mrf.mxu0 }
 0x860   :  { %8896 = vmatprep.mubr.msk.f32.mxu0 %vm307_vm2, %v1392_v27  ;;  %v54_v27 = vld [vmem:[%s10900_s1 + $0x8] sm:$0xff] }
 0x861   :  { %v8888_v29 = vpop.f32.mrf.mxu0  ;;  %8897 = vmatmul.mubr.msk.f32.vlgmr.msra.gmra.mxu0 %vm307_vm2, %v1468_v18 }
 0x862   :  { %8905 = vmatpush3.xpose.msk.msra.mxu0 %vm307_vm2, %v1636_v26  ;;  %8906 = vmatprep.mubr.msk.f32.mxu0 %vm9572_vm1, %v9571_v14  ;;  %v2005_v26 = vld [vmem:[%s10907_s8 + $0x8] sm:$0xff]  ;;  %v2004_v29 = vld [vmem:[%s10907_s8] sm:$0xff] }
 0x863   :  { %8914 = vmatprep.subr.mxu0 %v9571_v14 }
 0x865   :  { %8907 = vmatmul.mubr.msk.f32.vlgmr.msra.gmra.mxu0 %vm307_vm2, %v1634_v30 }
 0x866   :  { %8916 = vmatprep.mubr.msk.f32.mxu0 %vm9572_vm1, %v9571_v14 }
 0x8e6   :  { %v1717_v24 = vpop.xlane.xlu0 %1716 }
 0x8e7   :  { %v1721_v31 = vsub.f32 %v1713_v23, %v1717_v24  ;;  %v53_v23 = vld [vmem:[%s10900_s1] sm:$0xff] }
 0x8e9   :  { %v1723_v32 = vmul.f32 1.442695, %v1721_v31 }
 0x8eb   :  { %9415 = vpow2.f32 %v1723_v32 }
 0x8f8   :  { %v9416_v33 = vpop.eup %9415 }
 0x8f9   :  { %v1727_v34 = vsel %vm307_vm2, %v9416_v33, 0.0 }
 0x8fa   :  { %1728 = vadd.xlane.f32.xlu0 %v1727_v34 }
 0x921   :  { %v8898_v36 = vpop.f32.mrf.mxu0 }
 0x922   :  { %v1554_v38 = vadd.f32 %v8898_v36, %v1132_v35 }
 0x923   :  { %v1544_v39 = vpop.f32.mrf.mxu0 }
 0x924   :  { %v1553_v41 = vadd.f32 %v1544_v39, %v1127_v37 }
 0x925   :  { %v1707_v43 = vpop.f32.mrf.mxu0 }
 0x926   :  { %v1712_v44 = vmul.f32 0.35355338, %v1707_v43 }
 0x927   :  { %v8908_v45 = vpop.f32.mrf.mxu0 }
 0x928   :  { %v1714_v46 = vadd.f32 %v1712_v44, %v9770_v28  ;;  %v2015_v45 = vld [vmem:[%s10909_s10 + $0x18] sm:$0xff] }
 0x92a   :  { %v1718_v47 = vsel %vm307_vm2, %v1714_v46, -inf }
 0x92b   :  { %1719 = vmax.xlane.f32.xlu1 %v1718_v47  ;;  %v2013_v47 = vld [vmem:[%s10909_s10 + $0x8] sm:$0xff] }
 0x93c   :  { %1816 = vrot.lane.b32.xlu1 %v9754_v19, %s9575_s24 }
 0x983   :  { %v1729_v48 = vpop.xlane.xlu0 %1728 }
 0x984   :  { %9417 = vrcp.f32 %v1729_v48  ;;  %v2012_v48 = vld [vmem:[%s10909_s10] sm:$0xff] }
 0x991   :  { %v9418_v40 = vpop.eup %9417 }
 0x992   :  { %v1735_v49 = vmul.f32 %v9418_v40, %v9416_v33 }
 0x994   :  { %8317 = vst.msk [vmem:[%s10914_s15 + $0x30] sm:$0xff] %vm307_vm2, %v1735_v49 }
 0x9b4   :  { %v1720_v42 = vpop.xlane.xlu1 %1719 }
 0x9b5   :  { %v1722_v50 = vsub.f32 %v1714_v46, %v1720_v42  ;;  %v2014_v46 = vld [vmem:[%s10909_s10 + $0x10] sm:$0xff] }
 0x9b7   :  { %v1725_v51 = vmul.f32 1.442695, %v1722_v50 }
 0x9b8   :  { %v1817_v52 = vpop.permute.xlu1 %1816 }
 0x9b9   :  { %9419 = vpow2.f32 %v1725_v51  ;;  %8915 = vmatpush3.msra.mxu0 %v1817_v52 }
 0x9ba   :  { %8924 = vmatprep.subr.mxu0 %v2007_v13 }
 0x9c6   :  { %v9420_v28 = vpop.eup %9419 }
 0x9c7   :  { %v1730_v53 = vsel %vm307_vm2, %v9420_v28, 0.0 }
 0x9c8   :  { %1731 = vadd.xlane.f32.xlu0 %v1730_v53 }
 0x9de   :  { %1740 = vrot.lane.b32.xlu0 %v9757_v20, %s9575_s24 }
 0xa51   :  { %v1732_v19 = vpop.xlane.xlu0 %1731 }
 0xa52   :  { %9421 = vrcp.f32 %v1732_v19 }
 0xa55   :  { %v1741_v54 = vpop.permute.xlu0 %1740 }
 0xa56   :  { %8910 = vmatpush3.msra.mxu1 %v1741_v54 }
 0xa57   :  { %8912 = vmatmul.mubr.msk.f32.vlgmr.msra.gmra.mxu1 %vm307_vm2, %v1735_v49  ;;  %8919 = vmatprep.subr.mxu1 %v74_v56  ;;  %v10037_v49 = vld [vmem:[%s10902_s3] sm:$0xff] }
 0xa58   :  { %8920 = vmatpush3.msra.mxu1 %v74_v56 }
 0xa5f   :  { %v9422_v55 = vpop.eup %9421 }
 0xa60   :  { %v1736_v17 = vmul.f32 %v9422_v55, %v9420_v28  ;;  %v10043_v28 = vld [vmem:[%s10902_s3 + $0x8] sm:$0xff] }
 0xa62   :  { %8318 = vst.msk [vmem:[%s10914_s15 + $0x38] sm:$0xff] %vm307_vm2, %v1736_v17  ;;  %8917 = vmatmul.mubr.msk.f32.vlgmr.msra.gmra.mxu0 %vm307_vm2, %v1736_v17 }
 0xa63   :  { %8925 = vmatpush3.msra.mxu0 %v2007_v13 }
 0xa64   :  { %8926 = vmatprep.subr.mxu0 %v2006_v21 }
 0xa65   :  { %8927 = vmatpush3.msra.mxu0 %v2006_v21 }
 0xa66   :  { %8928 = vmatprep.subr.mxu0 %v2005_v26 }
 0xa67   :  { %8929 = vmatpush3.msra.mxu0 %v2005_v26 }
 0xa68   :  { %8930 = vmatprep.subr.mxu0 %v2004_v29 }
 0xa69   :  { %8931 = vmatpush3.msra.mxu0 %v2004_v29 }
 0xa6a   :  { %8946 = vmatprep.subr.mxu0 %v2015_v45 }
 0xb17   :  { %v1812_v20 = vpop.f32.mrf.mxu1 }
 0xb18   :  { %8921 = vmatprep.mubr.msk.f32.mxu1 %vm307_vm2, %v1812_v20 }
 0xb19   :  { %v8913_v15 = vpop.f32.mrf.mxu1 }
 0xb22   :  { %v1888_v57 = vpop.f32.mrf.mxu0 }
 0xb23   :  { %8922 = vmatmul.mubr.msk.f32.vlgmr.msra.gmra.mxu1 %vm307_vm2, %v1888_v57 }
 0xb24   :  { %v8918_v16 = vpop.f32.mrf.mxu0  ;;  %8943 = vmatprep.mubr.msk.f32.mxu1 %vm75_vm0, %v53_v23 }
 0xbe3   :  { %v8923_v58 = vpop.f32.mrf.mxu1 }
 0xbe4   :  { %v1974_v59 = vadd.f32 %v8923_v58, %v1554_v38 }
 0xbe5   :  { %v1964_v60 = vpop.f32.mrf.mxu1 }
 0xbe6   :  { %v1973_v61 = vadd.f32 %v1964_v60, %v1553_v41  ;;  %v1976_v62 = vadd.f32 %v1974_v59, %v9696_v9 }
 0xbe8   :  { %v1980_v63 = vsel %vm75_vm0, %v1976_v62, 0.0  ;;  %v1975_v0 = vadd.f32 %v1973_v61, %v9691_v8  ;;  %v2011_v8 = vld [vmem:[%s10908_s9 + $0x18] sm:$0xff] }
 0xbe9   :  { %1981 = vadd.xlane.f32.xlu0 %v1980_v63  ;;  %8935 = vmatprep.subr.mxu1 %v2011_v8 }
 0xbea   :  { %v1977_v1 = vsel %vm75_vm0, %v1975_v0, 0.0  ;;  %8936 = vmatpush3.msra.mxu1 %v2011_v8 }
 0xbeb   :  { %1978 = vadd.xlane.f32.xlu1 %v1977_v1  ;;  %8937 = vmatprep.subr.mxu1 %v2010_v12 }
 0xbec   :  { %8938 = vmatpush3.msra.mxu1 %v2010_v12 }
 0xbed   :  { %8939 = vmatprep.subr.mxu1 %v2009_v22 }
 0xbee   :  { %8940 = vmatpush3.msra.mxu1 %v2009_v22 }
 0xbef   :  { %8941 = vmatprep.subr.mxu1 %v2008_v25 }
 0xbf0   :  { %8942 = vmatpush3.msra.mxu1 %v2008_v25 }
 0xbf1   :  { %8944 = vmatmul.mubr.msk.f32.vlgmr.msra.gmra.mxu1 %vm75_vm0, %v54_v27  ;;  %8957 = vmatprep.subr.mxu1 %v9571_v14 }
 0xbf2   :  { %8959 = vmatprep.mubr.msk.f32.mxu1 %vm9572_vm1, %v9571_v14 }
 0xc72   :  { %v1982_v2 = vpop.xlane.xlu0 %1981 }
 0xc73   :  { %v1985_v3 = vmul.f32 0.03125, %v1982_v2 }
 0xc74   :  { %v1979_v4 = vpop.xlane.xlu1 %1978 }
 0xc75   :  { %v1987_v5 = vsub.f32 %v1976_v62, %v1985_v3  ;;  %v1984_v6 = vmul.f32 0.03125, %v1979_v4 }
 0xc77   :  { %v1986_v7 = vsub.f32 %v1975_v0, %v1984_v6  ;;  %v1989_v10 = vmul.f32 %v1987_v5, %v1987_v5 }
 0xc79   :  { %v1993_v18 = vsel %vm75_vm0, %v1989_v10, 0.0  ;;  %v1988_v11 = vmul.f32 %v1986_v7, %v1986_v7 }
 0xc7a   :  { %1994 = vadd.xlane.f32.xlu1 %v1993_v18 }
 0xc7b   :  { %v1990_v9 = vsel %vm75_vm0, %v1988_v11, 0.0 }
 0xc7c   :  { %1991 = vadd.xlane.f32.xlu0 %v1990_v9 }
 0xcb1   :  { %v9996_v39 = vpop.f32.mrf.mxu1 }
 0xcb3   :  { %v9998_v41 = vpop.f32.mrf.mxu1 }
 0xcb4   :  { %8958 = vmatpush3.xpose.msk.msra.mxu1 %vm307_vm2, %v9998_v41 }
 0xcb5   :  { %8962 = vmatprep.subr.mxu1 %v9571_v14 }
 0xd03   :  { %v1995_v30 = vpop.xlane.xlu1 %1994 }
 0xd04   :  { %v1997_v24 = vmul.f32 0.03125, %v1995_v30 }
 0xd05   :  { %v1992_v31 = vpop.xlane.xlu0 %1991 }
 0xd06   :  { %v1999_v32 = vadd.f32 1e-05, %v1997_v24  ;;  %v1996_v33 = vmul.f32 0.03125, %v1992_v31 }
 0xd08   :  { %v1998_v34 = vadd.f32 1e-05, %v1996_v33  ;;  %9423 = vrsqrt.f32 %v1999_v32 }
 0xd0a   :  { %9425 = vrsqrt.f32 %v1998_v34 }
 0xd15   :  { %v9424_v35 = vpop.eup %9423 }
 0xd16   :  { %v9989_v38 = vmul.f32 %v9424_v35, %v1987_v5 }
 0xd17   :  { %v9426_v36 = vpop.eup %9425 }
 0xd18   :  { %v9987_v37 = vmul.f32 %v9426_v36, %v1986_v7 }
 0xd1a   :  { %8932 = vmatprep.mubr.msk.f32.mxu0 %vm75_vm0, %v9987_v37 }
 0xd1b   :  { %8933 = vmatmul.mubr.msk.f32.vlgmr.msra.gmra.mxu0 %vm75_vm0, %v9989_v38 }
 0xd1c   :  { %8954 = vmatprep.mubr.msk.f32.mxu0 %vm75_vm0, %v53_v23  ;;  %8947 = vmatpush3.msra.mxu0 %v2015_v45 }
 0xd1d   :  { %8948 = vmatprep.subr.mxu0 %v2014_v46 }
 0xd1e   :  { %8949 = vmatpush3.msra.mxu0 %v2014_v46 }
 0xd1f   :  { %8950 = vmatprep.subr.mxu0 %v2013_v47 }
 0xd20   :  { %8951 = vmatpush3.msra.mxu0 %v2013_v47 }
 0xd21   :  { %8952 = vmatprep.subr.mxu0 %v2012_v48 }
 0xd22   :  { %8953 = vmatpush3.msra.mxu0 %v2012_v48 }
 0xd23   :  { %8955 = vmatmul.mubr.msk.f32.vlgmr.msra.gmra.mxu0 %vm75_vm0, %v54_v27  ;;  %8967 = vmatprep.subr.mxu0 %v9571_v14 }
 0xd24   :  { %8969 = vmatprep.mubr.msk.f32.mxu0 %vm9572_vm1, %v9571_v14 }
 0xddb   :  { %v10003_v43 = vpop.f32.mrf.mxu0 }
 0xddd   :  { %v10005_v44 = vpop.f32.mrf.mxu0 }
 0xdde   :  { %8960 = vmatmul.mubr.msk.f32.vlgmr.msra.gmra.mxu1 %vm307_vm2, %v10005_v44 }
 0xddf   :  { %8963 = vmatpush3.xpose.msk.msra.mxu1 %vm307_vm2, %v9996_v39  ;;  %8964 = vmatprep.mubr.msk.f32.mxu1 %vm9572_vm1, %v9571_v14 }
 0xde0   :  { %8972 = vmatprep.subr.mxu1 %v9571_v14 }
 0xde2   :  { %8965 = vmatmul.mubr.msk.f32.vlgmr.msra.gmra.mxu1 %vm307_vm2, %v10003_v43 }
 0xde3   :  { %8974 = vmatprep.mubr.msk.f32.mxu1 %vm9572_vm1, %v9571_v14  ;;  %v10054_v63 = vpop.f32.mrf.mxu0 }
 0xde4   :  { %8973 = vmatpush3.msra.mxu1 %v10054_v63 }
 0xde5   :  { %v10057_v0 = vpop.f32.mrf.mxu0  ;;  %8982 = vmatprep.subr.mxu1 %v9571_v14 }
 0xde6   :  { %8968 = vmatpush3.msra.mxu0 %v10057_v0 }
 0xde7   :  { %8977 = vmatprep.subr.mxu0 %v9571_v14 }
 0xe9e   :  { %v2329_v40 = vpop.f32.mrf.mxu1 }
 0xe9f   :  { %v2409_v42 = vmul.f32 0.35355338, %v2329_v40 }
 0xea0   :  { %v8961_v50 = vpop.f32.mrf.mxu1 }
 0xea1   :  { %v2411_v51 = vadd.f32 %v2409_v42, %v10037_v49  ;;  %v2016_v50 = vld [vmem:[%s10910_s11] sm:$0xff] }
 0xea2   :  { %v2405_v52 = vpop.f32.mrf.mxu1 }
 0xea3   :  { %v2410_v53 = vmul.f32 0.35355338, %v2405_v52  ;;  %v2413_v19 = vsel %vm307_vm2, %v2411_v51, -inf }
 0xea4   :  { %2414 = vmax.xlane.f32.xlu0 %v2413_v19  ;;  %v8966_v54 = vpop.f32.mrf.mxu1 }
 0xea5   :  { %v2412_v55 = vadd.f32 %v2410_v53, %v10043_v28 }
 0xea7   :  { %v2416_v17 = vsel %vm307_vm2, %v2412_v55, -inf }
 0xea8   :  { %2417 = vmax.xlane.f32.xlu1 %v2416_v17 }
 0xeb9   :  { %2663 = vrot.lane.b32.xlu1 %v9996_v39, %s9573_s20 }
 0xebd   :  { %2583 = vrot.lane.b32.xlu1 %v10005_v44, %s9573_s20 }
 0xf2d   :  { %v2415_v56 = vpop.xlane.xlu0 %2414 }
 0xf2e   :  { %v2419_v20 = vsub.f32 %v2411_v51, %v2415_v56 }
 0xf30   :  { %v2421_v15 = vmul.f32 1.442695, %v2419_v20 }
 0xf31   :  { %v2418_v57 = vpop.xlane.xlu1 %2417 }
 0xf32   :  { %9427 = vpow2.f32 %v2421_v15  ;;  %v2420_v16 = vsub.f32 %v2412_v55, %v2418_v57  ;;  %v2017_v57 = vld [vmem:[%s10910_s11 + $0x8] sm:$0xff] }
 0xf34   :  { %v2423_v58 = vmul.f32 1.442695, %v2420_v16 }
 0xf35   :  { %v2664_v1 = vpop.permute.xlu1 %2663 }
 0xf36   :  { %9429 = vpow2.f32 %v2423_v58 }
 0xf39   :  { %v2584_v2 = vpop.permute.xlu1 %2583 }
 0xf3f   :  { %v9428_v59 = vpop.eup %9427 }
 0xf40   :  { %v2425_v60 = vsel %vm307_vm2, %v9428_v59, 0.0 }
 0xf41   :  { %2426 = vadd.xlane.f32.xlu0 %v2425_v60 }
 0xf43   :  { %v9430_v61 = vpop.eup %9429 }
 0xf44   :  { %v2428_v62 = vsel %vm307_vm2, %v9430_v61, 0.0 }
 0xf45   :  { %2429 = vadd.xlane.f32.xlu1 %v2428_v62 }
 0xf56   :  { %2661 = vrot.lane.b32.xlu1 %v10003_v43, %s9573_s20 }
 0xf57   :  { %2585 = vrot.lane.b32.xlu0 %v9998_v41, %s9573_s20 }
 0xfca   :  { %v2427_v3 = vpop.xlane.xlu0 %2426 }
 0xfcb   :  { %9431 = vrcp.f32 %v2427_v3 }
 0xfce   :  { %v2430_v4 = vpop.xlane.xlu1 %2429  ;;  %v2586_v7 = vpop.permute.xlu0 %2585 }
 0xfcf   :  { %9433 = vrcp.f32 %v2430_v4 }
 0xfd2   :  { %v2662_v11 = vpop.permute.xlu1 %2661 }
 0xfd8   :  { %v9432_v5 = vpop.eup %9431 }
 0xfd9   :  { %v2433_v6 = vmul.f32 %v9432_v5, %v9428_v59 }
 0xfdb   :  { %2435 = vst.msk [vmem:[%s10915_s16] sm:$0xff] %vm307_vm2, %v2433_v6  ;;  %8970 = vmatmul.mubr.msk.f32.vlgmr.msra.gmra.mxu0 %vm307_vm2, %v2433_v6 }
 0xfdc   :  { %v9434_v10 = vpop.eup %9433  ;;  %8978 = vmatpush3.xpose.msk.msra.mxu0 %vm307_vm2, %v2586_v7  ;;  %8979 = vmatprep.mubr.msk.f32.mxu0 %vm9572_vm1, %v9571_v14 }
 0xfdd   :  { %v2434_v18 = vmul.f32 %v9434_v10, %v9430_v61  ;;  %8987 = vmatprep.subr.mxu0 %v9571_v14 }
 0xfdf   :  { %2436 = vst.msk [vmem:[%s10915_s16 + $0x8] sm:$0xff] %vm307_vm2, %v2434_v18  ;;  %8975 = vmatmul.mubr.msk.f32.vlgmr.msra.gmra.mxu1 %vm307_vm2, %v2434_v18  ;;  %8980 = vmatmul.mubr.msk.f32.vlgmr.msra.gmra.mxu0 %vm307_vm2, %v2584_v2 }
 0xfe0   :  { %8983 = vmatpush3.xpose.msk.msra.mxu1 %vm307_vm2, %v2664_v1  ;;  %8984 = vmatprep.mubr.msk.f32.mxu1 %vm9572_vm1, %v9571_v14 }
 0xfe1   :  { %8992 = vmatprep.subr.mxu1 %v9571_v14  ;;  %8989 = vmatprep.mubr.msk.f32.mxu0 %vm9572_vm1, %v9571_v14 }
 0xfe3   :  { %8985 = vmatmul.mubr.msk.f32.vlgmr.msra.gmra.mxu1 %vm307_vm2, %v2662_v11 }
 0xfe4   :  { %8994 = vmatprep.mubr.msk.f32.mxu1 %vm9572_vm1, %v9571_v14 }
0x109b   :  { %v2506_v9 = vpop.f32.mrf.mxu0 }
0x109d   :  { %v8971_v8 = vpop.f32.mrf.mxu0 }
0x109f   :  { %v2579_v12 = vpop.f32.mrf.mxu1  ;;  %v2657_v13 = vpop.f32.mrf.mxu0 }
0x10a0   :  { %v2739_v21 = vmul.f32 0.35355338, %v2657_v13 }
0x10a1   :  { %v8976_v22 = vpop.f32.mrf.mxu1  ;;  %v8981_v23 = vpop.f32.mrf.mxu0 }
0x10a2   :  { %v2741_v25 = vadd.f32 %v2739_v21, %v10037_v49 }
0x10a3   :  { %v2735_v26 = vpop.f32.mrf.mxu1 }
0x10a4   :  { %v2740_v27 = vmul.f32 0.35355338, %v2735_v26  ;;  %v2743_v29 = vsel %vm307_vm2, %v2741_v25, -inf }
0x10a5   :  { %v8986_v30 = vpop.f32.mrf.mxu1  ;;  %2744 = vmax.xlane.f32.xlu0 %v2743_v29 }
0x10a6   :  { %v2742_v24 = vadd.f32 %v2740_v27, %v10043_v28 }
0x10a8   :  { %v2746_v31 = vsel %vm307_vm2, %v2742_v24, -inf }
0x10a9   :  { %2747 = vmax.xlane.f32.xlu1 %v2746_v31 }
0x10ba   :  { %2846 = vrot.lane.b32.xlu1 %v10054_v63, %s9573_s20 }
0x10be   :  { %3086 = vrot.lane.b32.xlu1 %v9998_v41, %s9574_s29 }
0x10c2   :  { %3164 = vrot.lane.b32.xlu1 %v9996_v39, %s9574_s29 }
0x10c6   :  { %3162 = vrot.lane.b32.xlu1 %v10003_v43, %s9574_s29 }
0x112e   :  { %v2745_v32 = vpop.xlane.xlu0 %2744 }
0x112f   :  { %v2749_v33 = vsub.f32 %v2741_v25, %v2745_v32 }
0x1131   :  { %v2751_v34 = vmul.f32 1.442695, %v2749_v33 }
0x1132   :  { %v2748_v35 = vpop.xlane.xlu1 %2747 }
0x1133   :  { %9435 = vpow2.f32 %v2751_v34  ;;  %v2750_v36 = vsub.f32 %v2742_v24, %v2748_v35 }
0x1135   :  { %v2753_v45 = vmul.f32 1.442695, %v2750_v36 }
0x1136   :  { %v2847_v46 = vpop.permute.xlu1 %2846 }
0x1137   :  { %9437 = vpow2.f32 %v2753_v45  ;;  %8993 = vmatpush3.msra.mxu1 %v2847_v46 }
0x1138   :  { %9002 = vmatprep.subr.mxu1 %v2016_v50 }
0x113a   :  { %v3087_v55 = vpop.permute.xlu1 %3086 }
0x113e   :  { %v3165_v20 = vpop.permute.xlu1 %3164 }
0x1140   :  { %v9436_v47 = vpop.eup %9435 }
0x1141   :  { %v2755_v48 = vsel %vm307_vm2, %v9436_v47, 0.0 }
0x1142   :  { %2756 = vadd.xlane.f32.xlu0 %v2755_v48  ;;  %v3163_v15 = vpop.permute.xlu1 %3162 }
0x1144   :  { %v9438_v40 = vpop.eup %9437 }
0x1145   :  { %v2758_v42 = vsel %vm307_vm2, %v9438_v40, 0.0 }
0x1146   :  { %2759 = vadd.xlane.f32.xlu0 %v2758_v42 }
0x115c   :  { %2769 = vrot.lane.b32.xlu0 %v10057_v0, %s9573_s20 }
0x1160   :  { %3084 = vrot.lane.b32.xlu0 %v10005_v44, %s9574_s29 }
0x11cb   :  { %v2757_v51 = vpop.xlane.xlu0 %2756 }
0x11cc   :  { %9439 = vrcp.f32 %v2757_v51 }
0x11cf   :  { %v2760_v52 = vpop.xlane.xlu0 %2759 }
0x11d0   :  { %9441 = vrcp.f32 %v2760_v52 }
0x11d3   :  { %v2770_v53 = vpop.permute.xlu0 %2769 }
0x11d4   :  { %8988 = vmatpush3.msra.mxu0 %v2770_v53 }
0x11d5   :  { %8997 = vmatprep.subr.mxu0 %v2017_v57 }
0x11d7   :  { %v3085_v61 = vpop.permute.xlu0 %3084 }
0x11d9   :  { %v9440_v19 = vpop.eup %9439 }
0x11da   :  { %v2763_v54 = vmul.f32 %v9440_v19, %v9436_v47  ;;  %v2018_v47 = vld [vmem:[%s10910_s11 + $0x10] sm:$0xff] }
0x11dc   :  { %8339 = vst.msk [vmem:[%s10915_s16 + $0x10] sm:$0xff] %vm307_vm2, %v2763_v54  ;;  %8990 = vmatmul.mubr.msk.f32.vlgmr.msra.gmra.mxu0 %vm307_vm2, %v2763_v54 }
0x11dd   :  { %v9442_v17 = vpop.eup %9441  ;;  %8998 = vmatpush3.msra.mxu0 %v2017_v57 }
0x11de   :  { %v2764_v56 = vmul.f32 %v9442_v17, %v9438_v40  ;;  %9007 = vmatprep.subr.mxu0 %v9571_v14 }
0x11e0   :  { %8340 = vst.msk [vmem:[%s10915_s16 + $0x18] sm:$0xff] %vm307_vm2, %v2764_v56  ;;  %8995 = vmatmul.mubr.msk.f32.vlgmr.msra.gmra.mxu1 %vm307_vm2, %v2764_v56 }
0x11e1   :  { %9004 = vmatprep.mubr.msk.f32.mxu1 %vm307_vm2, %v2506_v9  ;;  %9003 = vmatpush3.msra.mxu1 %v2016_v50 }
0x11e2   :  { %9012 = vmatprep.subr.mxu1 %v9571_v14 }
0x11e4   :  { %9005 = vmatmul.mubr.msk.f32.vlgmr.msra.gmra.mxu1 %vm307_vm2, %v2579_v12 }
0x11e5   :  { %9013 = vmatpush3.xpose.msk.msra.mxu1 %vm307_vm2, %v3165_v20  ;;  %9014 = vmatprep.mubr.msk.f32.mxu1 %vm9572_vm1, %v9571_v14 }
0x11e6   :  { %9022 = vmatprep.subr.mxu1 %v9571_v14 }
0x11e8   :  { %9015 = vmatmul.mubr.msk.f32.vlgmr.msra.gmra.mxu1 %vm307_vm2, %v3163_v15 }
0x11e9   :  { %9024 = vmatprep.mubr.msk.f32.mxu1 %vm9572_vm1, %v9571_v14 }
0x129c   :  { %v2841_v16 = vpop.f32.mrf.mxu0 }
0x129d   :  { %8999 = vmatprep.mubr.msk.f32.mxu0 %vm307_vm2, %v2841_v16 }
0x129e   :  { %v8991_v58 = vpop.f32.mrf.mxu0 }
0x12a0   :  { %v2918_v59 = vpop.f32.mrf.mxu1 }
0x12a1   :  { %9000 = vmatmul.mubr.msk.f32.vlgmr.msra.gmra.mxu0 %vm307_vm2, %v2918_v59 }
0x12a2   :  { %9008 = vmatpush3.xpose.msk.msra.mxu0 %vm307_vm2, %v3087_v55  ;;  %v8996_v60 = vpop.f32.mrf.mxu1  ;;  %9009 = vmatprep.mubr.msk.f32.mxu0 %vm9572_vm1, %v9571_v14 }
0x12a3   :  { %9017 = vmatprep.subr.mxu0 %v9571_v14 }
0x12a4   :  { %v10141_v62 = vpop.f32.mrf.mxu1 }
0x12a5   :  { %9010 = vmatmul.mubr.msk.f32.vlgmr.msra.gmra.mxu0 %vm307_vm2, %v3085_v61 }
0x12a6   :  { %v10144_v1 = vpop.f32.mrf.mxu1  ;;  %9019 = vmatprep.mubr.msk.f32.mxu0 %vm9572_vm1, %v9571_v14 }
0x12a8   :  { %v3236_v2 = vpop.f32.mrf.mxu1 }
0x12a9   :  { %v3241_v3 = vmul.f32 0.35355338, %v3236_v2 }
0x12aa   :  { %v9016_v4 = vpop.f32.mrf.mxu1 }
0x12ab   :  { %v3243_v5 = vadd.f32 %v3241_v3, %v10043_v28 }
0x12ad   :  { %v3247_v6 = vsel %vm307_vm2, %v3243_v5, -inf }
0x12ae   :  { %3248 = vmax.xlane.f32.xlu1 %v3247_v6 }
0x12bf   :  { %3345 = vrot.lane.b32.xlu1 %v10054_v63, %s9574_s29 }
0x12c3   :  { %3506 = vrot.lane.b32.xlu1 %v9998_v41, %s9575_s24 }
0x12c7   :  { %3584 = vrot.lane.b32.xlu1 %v9996_v39, %s9575_s24 }
0x12cb   :  { %3582 = vrot.lane.b32.xlu1 %v10003_v43, %s9575_s24 }
0x1337   :  { %v3249_v7 = vpop.xlane.xlu1 %3248 }
0x1338   :  { %v3251_v18 = vsub.f32 %v3243_v5, %v3249_v7 }
0x133a   :  { %v3254_v11 = vmul.f32 1.442695, %v3251_v18 }
0x133b   :  { %v3346_v10 = vpop.permute.xlu1 %3345 }
0x133c   :  { %9023 = vmatpush3.msra.mxu1 %v3346_v10  ;;  %9443 = vpow2.f32 %v3254_v11 }
0x133d   :  { %9032 = vmatprep.subr.mxu1 %v9571_v14 }
0x133f   :  { %v3507_v32 = vpop.permute.xlu1 %3506 }
0x1343   :  { %v3585_v52 = vpop.permute.xlu1 %3584 }
0x1347   :  { %v3583_v54 = vpop.permute.xlu1 %3582 }
0x1349   :  { %v9444_v43 = vpop.eup %9443 }
0x134a   :  { %v3259_v22 = vsel %vm307_vm2, %v9444_v43, 0.0 }
0x1361   :  { %v10159_v9 = vpop.f32.mrf.mxu0 }
0x1362   :  { %v3081_v15 = vadd.f32 %v10141_v62, %v10159_v9 }
0x1363   :  { %v10161_v8 = vpop.f32.mrf.mxu0 }
0x1364   :  { %v3076_v16 = vadd.f32 %v10144_v1, %v10161_v8 }
0x1365   :  { %v3158_v12 = vpop.f32.mrf.mxu0 }
0x1366   :  { %v3240_v41 = vmul.f32 0.35355338, %v3158_v12 }
0x1367   :  { %v9011_v13 = vpop.f32.mrf.mxu0 }
0x1368   :  { %v3242_v39 = vadd.f32 %v3240_v41, %v10037_v49  ;;  %v2019_v13 = vld [vmem:[%s10910_s11 + $0x18] sm:$0xff] }
0x136a   :  { %v3244_v21 = vsel %vm307_vm2, %v3242_v39, -inf }
0x136b   :  { %3245 = vmax.xlane.f32.xlu0 %v3244_v21 }
0x136f   :  { %3260 = vadd.xlane.f32.xlu0 %v3259_v22 }
0x13f4   :  { %v3246_v23 = vpop.xlane.xlu0 %3245 }
0x13f5   :  { %v3250_v25 = vsub.f32 %v3242_v39, %v3246_v23 }
0x13f7   :  { %v3252_v26 = vmul.f32 1.442695, %v3250_v25 }
0x13f8   :  { %v3261_v27 = vpop.xlane.xlu0 %3260 }
0x13f9   :  { %9445 = vpow2.f32 %v3252_v26 }
0x13fa   :  { %9447 = vrcp.f32 %v3261_v27 }
0x1406   :  { %v9446_v29 = vpop.eup %9445 }
0x1407   :  { %v9448_v30 = vpop.eup %9447  ;;  %v3256_v24 = vsel %vm307_vm2, %v9446_v29, 0.0 }
0x1408   :  { %3257 = vadd.xlane.f32.xlu0 %v3256_v24  ;;  %v3265_v31 = vmul.f32 %v9448_v30, %v9444_v43 }
0x140a   :  { %8352 = vst.msk [vmem:[%s10915_s16 + $0x28] sm:$0xff] %vm307_vm2, %v3265_v31  ;;  %9025 = vmatmul.mubr.msk.f32.vlgmr.msra.gmra.mxu1 %vm307_vm2, %v3265_v31 }
0x140b   :  { %9033 = vmatpush3.xpose.msk.msra.mxu1 %vm307_vm2, %v3507_v32  ;;  %9034 = vmatprep.mubr.msk.f32.mxu1 %vm9572_vm1, %v9571_v14 }
0x140c   :  { %9042 = vmatprep.subr.mxu1 %v9571_v14 }
0x141e   :  { %3269 = vrot.lane.b32.xlu0 %v10057_v0, %s9574_s29 }
0x1422   :  { %3504 = vrot.lane.b32.xlu0 %v10005_v44, %s9575_s24 }
0x1491   :  { %v3258_v33 = vpop.xlane.xlu0 %3257 }
0x1492   :  { %9449 = vrcp.f32 %v3258_v33 }
0x1495   :  { %v3270_v34 = vpop.permute.xlu0 %3269 }
0x1496   :  { %9018 = vmatpush3.msra.mxu0 %v3270_v34 }
0x1497   :  { %9027 = vmatprep.subr.mxu0 %v2018_v47 }
0x1499   :  { %v3505_v35 = vpop.permute.xlu0 %3504 }
0x149a   :  { %9035 = vmatmul.mubr.msk.f32.vlgmr.msra.gmra.mxu1 %vm307_vm2, %v3505_v35 }
0x149b   :  { %9044 = vmatprep.mubr.msk.f32.mxu1 %vm9572_vm1, %v9571_v14 }
0x149f   :  { %v9450_v36 = vpop.eup %9449 }
0x14a0   :  { %v3264_v45 = vmul.f32 %v9450_v36, %v9446_v29 }
0x14a2   :  { %8351 = vst.msk [vmem:[%s10915_s16 + $0x20] sm:$0xff] %vm307_vm2, %v3264_v45  ;;  %9020 = vmatmul.mubr.msk.f32.vlgmr.msra.gmra.mxu0 %vm307_vm2, %v3264_v45 }
0x14a3   :  { %9028 = vmatpush3.msra.mxu0 %v2018_v47  ;;  %v3954_v47 = vld [vmem:[%s10911_s12 + $0x10] sm:$0xff] }
0x14a4   :  { %9037 = vmatprep.subr.mxu0 %v9571_v14 }
0x14ca   :  { %v3417_v44 = vpop.f32.mrf.mxu1 }
0x14cc   :  { %v9026_v46 = vpop.f32.mrf.mxu1 }
0x155a   :  { %v3578_v48 = vpop.f32.mrf.mxu1 }
0x155b   :  { %v3660_v40 = vmul.f32 0.35355338, %v3578_v48  ;;  %v3953_v48 = vld [vmem:[%s10911_s12 + $0x8] sm:$0xff] }
0x155c   :  { %v9036_v42 = vpop.f32.mrf.mxu1 }
0x155d   :  { %v3662_v50 = vadd.f32 %v3660_v40, %v10037_v49  ;;  %v3952_v40 = vld [vmem:[%s10911_s12] sm:$0xff]  ;;  %v4046_v42 = vld [vmem:[%s10912_s13 + $0x38] sm:$0xff] }
0x155f   :  { %v3664_v51 = vsel %vm307_vm2, %v3662_v50, -inf }
0x1560   :  { %3665 = vmax.xlane.f32.xlu0 %v3664_v51  ;;  %v4044_v51 = vld [vmem:[%s10912_s13 + $0x28] sm:$0xff] }
0x1562   :  { %v3341_v53 = vpop.f32.mrf.mxu0 }
0x1563   :  { %9029 = vmatprep.mubr.msk.f32.mxu0 %vm307_vm2, %v3341_v53  ;;  %v4042_v53 = vld [vmem:[%s10912_s13 + $0x18] sm:$0xff] }
0x1564   :  { %v9021_v19 = vpop.f32.mrf.mxu0  ;;  %9030 = vmatmul.mubr.msk.f32.vlgmr.msra.gmra.mxu0 %vm307_vm2, %v3417_v44 }
0x1565   :  { %9038 = vmatpush3.xpose.msk.msra.mxu0 %vm307_vm2, %v3585_v52  ;;  %9039 = vmatprep.mubr.msk.f32.mxu0 %vm9572_vm1, %v9571_v14  ;;  %v4043_v52 = vld [vmem:[%s10912_s13 + $0x20] sm:$0xff] }
0x1566   :  { %9047 = vmatprep.subr.mxu0 %v9571_v14 }
0x1568   :  { %9040 = vmatmul.mubr.msk.f32.vlgmr.msra.gmra.mxu0 %vm307_vm2, %v3583_v54 }
0x1569   :  { %9049 = vmatprep.mubr.msk.f32.mxu0 %vm9572_vm1, %v9571_v14 }
0x15e9   :  { %v3666_v49 = vpop.xlane.xlu0 %3665 }
0x15ea   :  { %v3670_v55 = vsub.f32 %v3662_v50, %v3666_v49  ;;  %v4045_v50 = vld [vmem:[%s10912_s13 + $0x30] sm:$0xff] }
0x15ec   :  { %v3672_v17 = vmul.f32 1.442695, %v3670_v55 }
0x15ee   :  { %9451 = vpow2.f32 %v3672_v17 }
0x15fb   :  { %v9452_v56 = vpop.eup %9451 }
0x15fc   :  { %v3676_v20 = vsel %vm307_vm2, %v9452_v56, 0.0 }
0x15fd   :  { %3677 = vadd.xlane.f32.xlu0 %v3676_v20 }
0x1624   :  { %v9031_v57 = vpop.f32.mrf.mxu0 }
0x1625   :  { %v3503_v58 = vadd.f32 %v9031_v57, %v3081_v15 }
0x1626   :  { %v3493_v59 = vpop.f32.mrf.mxu0 }
0x1627   :  { %v3502_v60 = vadd.f32 %v3493_v59, %v3076_v16  ;;  %v4040_v59 = vld [vmem:[%s10912_s13 + $0x8] sm:$0xff] }
0x1628   :  { %v3656_v61 = vpop.f32.mrf.mxu0 }
0x1629   :  { %v3661_v2 = vmul.f32 0.35355338, %v3656_v61 }
0x162a   :  { %v9041_v3 = vpop.f32.mrf.mxu0 }
0x162b   :  { %v3663_v4 = vadd.f32 %v3661_v2, %v10043_v28 }
0x162d   :  { %v3667_v5 = vsel %vm307_vm2, %v3663_v4, -inf }
0x162e   :  { %3668 = vmax.xlane.f32.xlu1 %v3667_v5 }
0x163f   :  { %3765 = vrot.lane.b32.xlu1 %v10054_v63, %s9575_s24 }
0x1686   :  { %v3678_v6 = vpop.xlane.xlu0 %3677 }
0x1687   :  { %9453 = vrcp.f32 %v3678_v6 }
0x1694   :  { %v9454_v62 = vpop.eup %9453 }
0x1695   :  { %v3684_v7 = vmul.f32 %v9454_v62, %v9452_v56 }
0x1697   :  { %8361 = vst.msk [vmem:[%s10915_s16 + $0x30] sm:$0xff] %vm307_vm2, %v3684_v7 }
0x16b7   :  { %v3669_v1 = vpop.xlane.xlu1 %3668 }
0x16b8   :  { %v3671_v10 = vsub.f32 %v3663_v4, %v3669_v1 }
0x16ba   :  { %v3674_v18 = vmul.f32 1.442695, %v3671_v10 }
0x16bb   :  { %v3766_v11 = vpop.permute.xlu1 %3765 }
0x16bc   :  { %9455 = vpow2.f32 %v3674_v18  ;;  %9048 = vmatpush3.msra.mxu0 %v3766_v11 }
0x16c9   :  { %v9456_v28 = vpop.eup %9455 }
0x16ca   :  { %v3679_v9 = vsel %vm307_vm2, %v9456_v28, 0.0 }
0x16cb   :  { %3680 = vadd.xlane.f32.xlu0 %v3679_v9 }
0x16e1   :  { %3689 = vrot.lane.b32.xlu0 %v10057_v0, %s9575_s24 }
0x1754   :  { %v3681_v63 = vpop.xlane.xlu0 %3680 }
0x1755   :  { %9457 = vrcp.f32 %v3681_v63 }
0x1758   :  { %v3690_v8 = vpop.permute.xlu0 %3689 }
0x1759   :  { %9043 = vmatpush3.msra.mxu1 %v3690_v8 }
0x175a   :  { %9045 = vmatmul.mubr.msk.f32.vlgmr.msra.gmra.mxu1 %vm307_vm2, %v3684_v7  ;;  %9052 = vmatprep.subr.mxu1 %v2019_v13 }
0x175b   :  { %9053 = vmatpush3.msra.mxu1 %v2019_v13 }
0x175c   :  { %9068 = vmatprep.subr.mxu1 %v4046_v42 }
0x1762   :  { %v9458_v12 = vpop.eup %9457 }
0x1763   :  { %v3685_v41 = vmul.f32 %v9458_v12, %v9456_v28 }
0x1765   :  { %8362 = vst.msk [vmem:[%s10915_s16 + $0x38] sm:$0xff] %vm307_vm2, %v3685_v41  ;;  %9050 = vmatmul.mubr.msk.f32.vlgmr.msra.gmra.mxu0 %vm307_vm2, %v3685_v41 }
0x181a   :  { %v3761_v0 = vpop.f32.mrf.mxu1 }
0x181b   :  { %9054 = vmatprep.mubr.msk.f32.mxu1 %vm307_vm2, %v3761_v0 }
0x181c   :  { %v9046_v39 = vpop.f32.mrf.mxu1 }
0x181d   :  { %v8374_v39 = vld [vmem:[%s10903_s4 + $0x38] sm:$0xff] }
0x1825   :  { %v3837_v21 = vpop.f32.mrf.mxu0 }
0x1826   :  { %9055 = vmatmul.mubr.msk.f32.vlgmr.msra.gmra.mxu1 %vm307_vm2, %v3837_v21  ;;  %v8382_v21 = vld [vmem:[%s10905_s6 + $0x38] sm:$0xff] }
0x1827   :  { %v9051_v43 = vpop.f32.mrf.mxu0  ;;  %9069 = vmatpush3.msra.mxu1 %v4046_v42 }
0x1828   :  { %9070 = vmatprep.subr.mxu1 %v4045_v50  ;;  %v8373_v43 = vld [vmem:[%s10903_s4 + $0x30] sm:$0xff] }
0x1829   :  { %9071 = vmatpush3.msra.mxu1 %v4045_v50 }
0x182a   :  { %9072 = vmatprep.subr.mxu1 %v4044_v51 }
0x182b   :  { %9073 = vmatpush3.msra.mxu1 %v4044_v51 }
0x182c   :  { %9074 = vmatprep.subr.mxu1 %v4043_v52 }
0x182d   :  { %9075 = vmatpush3.msra.mxu1 %v4043_v52 }
0x182e   :  { %9076 = vmatprep.subr.mxu1 %v4042_v53 }
0x182f   :  { %9077 = vmatpush3.msra.mxu1 %v4042_v53 }
0x18e6   :  { %v9056_v22 = vpop.f32.mrf.mxu1 }
0x18e7   :  { %v3923_v23 = vadd.f32 %v9056_v22, %v3503_v58  ;;  %v4041_v58 = vld [vmem:[%s10912_s13 + $0x10] sm:$0xff] }
0x18e8   :  { %v3913_v25 = vpop.f32.mrf.mxu1  ;;  %9078 = vmatprep.subr.mxu1 %v4041_v58  ;;  %v8381_v22 = vld [vmem:[%s10905_s6 + $0x30] sm:$0xff] }
0x18e9   :  { %v3922_v26 = vadd.f32 %v3913_v25, %v3502_v60  ;;  %v3925_v27 = vadd.f32 %v3923_v23, %v9989_v38  ;;  %9079 = vmatpush3.msra.mxu1 %v4041_v58  ;;  %v4039_v60 = vld [vmem:[%s10912_s13] sm:$0xff]  ;;  %v8372_v23 = vld [vmem:[%s10903_s4 + $0x28] sm:$0xff] }
0x18ea   :  { %9080 = vmatprep.subr.mxu1 %v4040_v59  ;;  %v8380_v25 = vld [vmem:[%s10905_s6 + $0x28] sm:$0xff] }
0x18eb   :  { %v3929_v29 = vsel %vm75_vm0, %v3925_v27, 0.0  ;;  %v3924_v30 = vadd.f32 %v3922_v26, %v9987_v37  ;;  %v3955_v37 = vld [vmem:[%s10911_s12 + $0x18] sm:$0xff]  ;;  %9081 = vmatpush3.msra.mxu1 %v4040_v59  ;;  %v8371_v26 = vld [vmem:[%s10903_s4 + $0x20] sm:$0xff] }
0x18ec   :  { %3930 = vadd.xlane.f32.xlu0 %v3929_v29  ;;  %9057 = vmatprep.subr.mxu0 %v3955_v37  ;;  %v8378_v29 = vld [vmem:[%s10904_s5 + $0x38] sm:$0xff] }
0x18ed   :  { %v3926_v24 = vsel %vm75_vm0, %v3924_v30, 0.0  ;;  %9058 = vmatpush3.msra.mxu0 %v3955_v37  ;;  %9082 = vmatprep.subr.mxu1 %v4039_v60  ;;  %v8375_v37 = vld [vmem:[%s10904_s5 + $0x20] sm:$0xff] }
0x18ee   :  { %3927 = vadd.xlane.f32.xlu1 %v3926_v24  ;;  %9059 = vmatprep.subr.mxu0 %v3954_v47 }
0x18ef   :  { %9060 = vmatpush3.msra.mxu0 %v3954_v47  ;;  %9083 = vmatpush3.msra.mxu1 %v4039_v60 }
0x18f0   :  { %9061 = vmatprep.subr.mxu0 %v3953_v48  ;;  %9109 = vmatprep.subr.mxu1 %v8382_v21 }
0x18f1   :  { %9062 = vmatpush3.msra.mxu0 %v3953_v48 }
0x18f2   :  { %9063 = vmatprep.subr.mxu0 %v3952_v40 }
0x18f3   :  { %9064 = vmatpush3.msra.mxu0 %v3952_v40 }
0x18f4   :  { %9087 = vmatprep.subr.mxu0 %v8374_v39 }
0x1975   :  { %v3931_v31 = vpop.xlane.xlu0 %3930 }
0x1976   :  { %v3933_v32 = vmul.f32 0.03125, %v3931_v31 }
0x1977   :  { %v3928_v33 = vpop.xlane.xlu1 %3927 }
0x1978   :  { %v3935_v34 = vsub.f32 %v3925_v27, %v3933_v32  ;;  %v3932_v35 = vmul.f32 0.03125, %v3928_v33  ;;  %v8379_v27 = vld [vmem:[%s10905_s6 + $0x20] sm:$0xff] }
0x197a   :  { %v3934_v36 = vsub.f32 %v3924_v30, %v3932_v35  ;;  %v3937_v45 = vmul.f32 %v3935_v34, %v3935_v34 }
0x197c   :  { %v3941_v44 = vsel %vm75_vm0, %v3937_v45, 0.0  ;;  %v3936_v46 = vmul.f32 %v3934_v36, %v3934_v36 }
0x197d   :  { %3942 = vadd.xlane.f32.xlu1 %v3941_v44 }
0x197e   :  { %v3938_v38 = vsel %vm75_vm0, %v3936_v46, 0.0  ;;  %v8377_v46 = vld [vmem:[%s10904_s5 + $0x30] sm:$0xff] }
0x197f   :  { %3939 = vadd.xlane.f32.xlu0 %v3938_v38  ;;  %v8376_v38 = vld [vmem:[%s10904_s5 + $0x28] sm:$0xff] }
0x1a06   :  { %v3943_v19 = vpop.xlane.xlu1 %3942 }
0x1a07   :  { %v3945_v54 = vmul.f32 0.03125, %v3943_v19 }
0x1a08   :  { %v3940_v49 = vpop.xlane.xlu0 %3939 }
0x1a09   :  { %v3947_v55 = vadd.f32 1e-05, %v3945_v54  ;;  %v3944_v17 = vmul.f32 0.03125, %v3940_v49 }
0x1a0b   :  { %v3946_v56 = vadd.f32 1e-05, %v3944_v17  ;;  %9459 = vrsqrt.f32 %v3947_v55  ;;  %v10371_v55 = vld [vmem:[%s10901_s2 + $0x8] sm:$0xff] }
0x1a0d   :  { %9461 = vrsqrt.f32 %v3946_v56 }
0x1a18   :  { %v9460_v20 = vpop.eup %9459 }
0x1a19   :  { %v3951_v16 = vmul.f32 %v9460_v20, %v3935_v34 }
0x1a1a   :  { %v9462_v15 = vpop.eup %9461 }
0x1a1b   :  { %v3950_v57 = vmul.f32 %v9462_v15, %v3934_v36  ;;  %v10378_v15 = vld [vmem:[%s10901_s2] sm:$0xff] }
0x1a1d   :  { %9065 = vmatprep.mubr.msk.f32.mxu0 %vm75_vm0, %v3950_v57 }
0x1a1e   :  { %9066 = vmatmul.mubr.msk.f32.vlgmr.msra.gmra.mxu0 %vm75_vm0, %v3951_v16 }
0x1a1f   :  { %9088 = vmatpush3.msra.mxu0 %v8374_v39 }
0x1a20   :  { %9089 = vmatprep.subr.mxu0 %v8373_v43 }
0x1a21   :  { %9090 = vmatpush3.msra.mxu0 %v8373_v43 }
0x1a22   :  { %9091 = vmatprep.subr.mxu0 %v8372_v23 }
0x1a23   :  { %9092 = vmatpush3.msra.mxu0 %v8372_v23 }
0x1a24   :  { %9093 = vmatprep.subr.mxu0 %v8371_v26 }
0x1a25   :  { %9094 = vmatpush3.msra.mxu0 %v8371_v26 }
0x1a26   :  { %9098 = vmatprep.subr.mxu0 %v8378_v29 }
0x1ade   :  { %v9067_v61 = vpop.f32.mrf.mxu0 }
0x1adf   :  { %v4038_v4 = vmax.f32 %v9067_v61, 0.0 }
0x1ae0   :  { %v4028_v2 = vpop.f32.mrf.mxu0 }
0x1ae1   :  { %v4037_v3 = vmax.f32 %v4028_v2, 0.0 }
0x1ae3   :  { %9084 = vmatprep.mubr.msk.f32.mxu1 %vm4047_vm3, %v4037_v3 }
0x1ae4   :  { %9085 = vmatmul.mubr.msk.f32.vlgmr.msra.gmra.mxu1 %vm4047_vm3, %v4038_v4 }
0x1ae5   :  { %9110 = vmatpush3.msra.mxu1 %v8382_v21 }
0x1ae6   :  { %9111 = vmatprep.subr.mxu1 %v8381_v22 }
0x1ae7   :  { %9112 = vmatpush3.msra.mxu1 %v8381_v22 }
0x1ae8   :  { %9113 = vmatprep.subr.mxu1 %v8380_v25 }
0x1ae9   :  { %9114 = vmatpush3.msra.mxu1 %v8380_v25 }
0x1aea   :  { %9115 = vmatprep.subr.mxu1 %v8379_v27 }
0x1aeb   :  { %9116 = vmatpush3.msra.mxu1 %v8379_v27 }
0x1aec   :  { %9125 = vmatprep.subr.mxu1 %v9571_v14 }
0x1ba4   :  { %v9086_v5 = vpop.f32.mrf.mxu1 }
0x1ba5   :  { %v4126_v6 = vadd.f32 %v9086_v5, %v3951_v16 }
0x1ba6   :  { %v4120_v62 = vpop.f32.mrf.mxu1 }
0x1ba7   :  { %v4121_v7 = vadd.f32 %v4120_v62, %v3950_v57  ;;  %v4132_v1 = vsel %vm75_vm0, %v4126_v6, 0.0 }
0x1ba8   :  { %4133 = vadd.xlane.f32.xlu1 %v4132_v1 }
0x1ba9   :  { %v4129_v10 = vsel %vm75_vm0, %v4121_v7, 0.0 }
0x1baa   :  { %4130 = vadd.xlane.f32.xlu0 %v4129_v10 }
0x1c31   :  { %v4134_v18 = vpop.xlane.xlu1 %4133 }
0x1c32   :  { %v4136_v11 = vmul.f32 0.03125, %v4134_v18 }
0x1c33   :  { %v4131_v28 = vpop.xlane.xlu0 %4130 }
0x1c34   :  { %v4138_v9 = vsub.f32 %v4126_v6, %v4136_v11  ;;  %v4135_v63 = vmul.f32 0.03125, %v4131_v28 }
0x1c36   :  { %v4137_v8 = vsub.f32 %v4121_v7, %v4135_v63  ;;  %v4140_v12 = vmul.f32 %v4138_v9, %v4138_v9 }
0x1c38   :  { %v4144_v41 = vsel %vm75_vm0, %v4140_v12, 0.0  ;;  %v4139_v13 = vmul.f32 %v4137_v8, %v4137_v8 }
0x1c39   :  { %4145 = vadd.xlane.f32.xlu1 %v4144_v41 }
0x1c3a   :  { %v4141_v0 = vsel %vm75_vm0, %v4139_v13, 0.0 }
0x1c3b   :  { %4142 = vadd.xlane.f32.xlu0 %v4141_v0 }
0x1cc2   :  { %v4146_v30 = vpop.xlane.xlu1 %4145 }
0x1cc3   :  { %v4148_v24 = vmul.f32 0.03125, %v4146_v30 }
0x1cc4   :  { %v4143_v31 = vpop.xlane.xlu0 %4142 }
0x1cc5   :  { %v4150_v32 = vadd.f32 1e-05, %v4148_v24  ;;  %v4147_v33 = vmul.f32 0.03125, %v4143_v31 }
0x1cc7   :  { %v4149_v34 = vadd.f32 1e-05, %v4147_v33  ;;  %9463 = vrsqrt.f32 %v4150_v32 }
0x1cc9   :  { %9465 = vrsqrt.f32 %v4149_v34 }
0x1cd4   :  { %v9464_v35 = vpop.eup %9463 }
0x1cd5   :  { %v10310_v44 = vmul.f32 %v9464_v35, %v4138_v9 }
0x1cd6   :  { %v9466_v36 = vpop.eup %9465 }
0x1cd7   :  { %v10308_v45 = vmul.f32 %v9466_v36, %v4137_v8 }
0x1cd9   :  { %9095 = vmatprep.mubr.msk.f32.mxu0 %vm75_vm0, %v10308_v45  ;;  %9117 = vmatprep.mubr.msk.f32.mxu1 %vm75_vm0, %v10308_v45 }
0x1cda   :  { %9096 = vmatmul.mubr.msk.f32.vlgmr.msra.gmra.mxu0 %vm75_vm0, %v10310_v44  ;;  %9118 = vmatmul.mubr.msk.f32.vlgmr.msra.gmra.mxu1 %vm75_vm0, %v10310_v44 }
0x1cdb   :  { %9099 = vmatpush3.msra.mxu0 %v8378_v29  ;;  %9106 = vmatprep.mubr.msk.f32.mxu0 %vm75_vm0, %v10308_v45 }
0x1cdc   :  { %9100 = vmatprep.subr.mxu0 %v8377_v46  ;;  %9127 = vmatprep.mubr.msk.f32.mxu1 %vm9572_vm1, %v9571_v14 }
0x1cdd   :  { %9101 = vmatpush3.msra.mxu0 %v8377_v46 }
0x1cde   :  { %9102 = vmatprep.subr.mxu0 %v8376_v38 }
0x1cdf   :  { %9103 = vmatpush3.msra.mxu0 %v8376_v38 }
0x1ce0   :  { %9104 = vmatprep.subr.mxu0 %v8375_v37 }
0x1ce1   :  { %9105 = vmatpush3.msra.mxu0 %v8375_v37 }
0x1ce2   :  { %9107 = vmatmul.mubr.msk.f32.vlgmr.msra.gmra.mxu0 %vm75_vm0, %v10310_v44  ;;  %9120 = vmatprep.subr.mxu0 %v9571_v14 }
0x1ce3   :  { %9122 = vmatprep.mubr.msk.f32.mxu0 %vm9572_vm1, %v9571_v14 }
0x1d9a   :  { %v10338_v47 = vpop.f32.mrf.mxu0  ;;  %v10346_v42 = vpop.f32.mrf.mxu1 }
0x1d9c   :  { %v10340_v48 = vpop.f32.mrf.mxu0  ;;  %v10359_v51 = vpop.f32.mrf.mxu1 }
0x1da2   :  { %v10342_v40 = vpop.f32.mrf.mxu0 }
0x1da3   :  { %9126 = vmatpush3.xpose.msk.msra.mxu1 %vm307_vm2, %v10342_v40 }
0x1da4   :  { %v10348_v50 = vpop.f32.mrf.mxu0  ;;  %9135 = vmatprep.subr.mxu1 %v9571_v14 }
0x1da5   :  { %9121 = vmatpush3.xpose.msk.msra.mxu0 %vm307_vm2, %v10348_v50 }
0x1da6   :  { %9128 = vmatmul.mubr.msk.f32.vlgmr.msra.gmra.mxu1 %vm307_vm2, %v10338_v47  ;;  %9130 = vmatprep.subr.mxu0 %v9571_v14 }
0x1da7   :  { %9136 = vmatpush3.msra.mxu1 %v10346_v42  ;;  %9137 = vmatprep.mubr.msk.f32.mxu1 %vm9572_vm1, %v9571_v14 }
0x1da8   :  { %9123 = vmatmul.mubr.msk.f32.vlgmr.msra.gmra.mxu0 %vm307_vm2, %v10340_v48  ;;  %9145 = vmatprep.subr.mxu1 %v9571_v14 }
0x1da9   :  { %9131 = vmatpush3.msra.mxu0 %v10359_v51  ;;  %9132 = vmatprep.mubr.msk.f32.mxu0 %vm9572_vm1, %v9571_v14 }
0x1daa   :  { %9140 = vmatprep.subr.mxu0 %v9571_v14 }
0x1e66   :  { %v4554_v52 = vpop.f32.mrf.mxu1 }
0x1e67   :  { %v4559_v53 = vmul.f32 0.35355338, %v4554_v52 }
0x1e68   :  { %v4478_v19 = vpop.f32.mrf.mxu0  ;;  %v9129_v54 = vpop.f32.mrf.mxu1 }
0x1e69   :  { %v4558_v49 = vmul.f32 0.35355338, %v4478_v19  ;;  %v4561_v17 = vadd.f32 %v10371_v55, %v4559_v53  ;;  %v8383_v19 = vld [vmem:[%s10906_s7 + $0x20] sm:$0xff] }
0x1e6a   :  { %v9124_v56 = vpop.f32.mrf.mxu0 }
0x1e6b   :  { %v4565_v20 = vsel %vm307_vm2, %v4561_v17, -inf  ;;  %v4560_v57 = vadd.f32 %v10378_v15, %v4558_v49 }
0x1e6c   :  { %4566 = vmax.xlane.f32.xlu1 %v4565_v20 }
0x1e6d   :  { %v4562_v16 = vsel %vm307_vm2, %v4560_v57, -inf }
0x1e6e   :  { %4563 = vmax.xlane.f32.xlu0 %v4562_v16 }
0x1ef5   :  { %v4567_v58 = vpop.xlane.xlu1 %4566 }
0x1ef6   :  { %v4569_v59 = vsub.f32 %v4561_v17, %v4567_v58 }
0x1ef7   :  { %v4564_v60 = vpop.xlane.xlu0 %4563 }
0x1ef8   :  { %v4572_v61 = vmul.f32 1.442695, %v4569_v59  ;;  %v4568_v2 = vsub.f32 %v4560_v57, %v4564_v60 }
0x1efa   :  { %9467 = vpow2.f32 %v4572_v61  ;;  %v4570_v3 = vmul.f32 1.442695, %v4568_v2  ;;  %v8384_v61 = vld [vmem:[%s10906_s7 + $0x28] sm:$0xff] }
0x1efc   :  { %9469 = vpow2.f32 %v4570_v3 }
0x1f07   :  { %v9468_v4 = vpop.eup %9467 }
0x1f08   :  { %v4577_v5 = vsel %vm307_vm2, %v9468_v4, 0.0 }
0x1f09   :  { %v9470_v6 = vpop.eup %9469  ;;  %4578 = vadd.xlane.f32.xlu1 %v4577_v5 }
0x1f0a   :  { %v4574_v62 = vsel %vm307_vm2, %v9470_v6, 0.0 }
0x1f0b   :  { %4575 = vadd.xlane.f32.xlu0 %v4574_v62 }
0x1f1a   :  { %4813 = vrot.lane.b32.xlu1 %v10342_v40, %s9573_s20 }
0x1f1e   :  { %4733 = vrot.lane.b32.xlu1 %v10340_v48, %s9573_s20 }
0x1f21   :  { %4735 = vrot.lane.b32.xlu0 %v10348_v50, %s9573_s20 }
0x1f22   :  { %4811 = vrot.lane.b32.xlu1 %v10338_v47, %s9573_s20 }
0x1f92   :  { %v4579_v7 = vpop.xlane.xlu1 %4578 }
0x1f93   :  { %9471 = vrcp.f32 %v4579_v7 }
0x1f94   :  { %v4576_v1 = vpop.xlane.xlu0 %4575 }
0x1f95   :  { %9473 = vrcp.f32 %v4576_v1 }
0x1f96   :  { %v4814_v10 = vpop.permute.xlu1 %4813 }
0x1f98   :  { %v4736_v8 = vpop.permute.xlu0 %4735 }
0x1f9a   :  { %v4734_v11 = vpop.permute.xlu1 %4733 }
0x1f9e   :  { %v4812_v12 = vpop.permute.xlu1 %4811 }
0x1fa0   :  { %v9472_v18 = vpop.eup %9471 }
0x1fa1   :  { %v4583_v28 = vmul.f32 %v9472_v18, %v9468_v4 }
0x1fa2   :  { %v9474_v9 = vpop.eup %9473 }
0x1fa3   :  { %8398 = vst.msk [vmem:[%s10914_s15 + $0x48] sm:$0xff] %vm307_vm2, %v4583_v28  ;;  %9138 = vmatmul.mubr.msk.f32.vlgmr.msra.gmra.mxu1 %vm307_vm2, %v4583_v28  ;;  %v4582_v63 = vmul.f32 %v9474_v9, %v9470_v6 }
0x1fa4   :  { %9146 = vmatpush3.xpose.msk.msra.mxu1 %vm307_vm2, %v4814_v10  ;;  %9147 = vmatprep.mubr.msk.f32.mxu1 %vm9572_vm1, %v9571_v14 }
0x1fa5   :  { %8397 = vst.msk [vmem:[%s10914_s15 + $0x40] sm:$0xff] %vm307_vm2, %v4582_v63  ;;  %9133 = vmatmul.mubr.msk.f32.vlgmr.msra.gmra.mxu0 %vm307_vm2, %v4582_v63  ;;  %9155 = vmatprep.subr.mxu1 %v9571_v14 }
0x1fa6   :  { %9141 = vmatpush3.xpose.msk.msra.mxu0 %vm307_vm2, %v4736_v8  ;;  %9142 = vmatprep.mubr.msk.f32.mxu0 %vm9572_vm1, %v9571_v14 }
0x1fa7   :  { %9148 = vmatmul.mubr.msk.f32.vlgmr.msra.gmra.mxu1 %vm307_vm2, %v4812_v12  ;;  %9150 = vmatprep.subr.mxu0 %v9571_v14 }
0x1fa8   :  { %9157 = vmatprep.mubr.msk.f32.mxu1 %vm9572_vm1, %v9571_v14 }
0x1fa9   :  { %9143 = vmatmul.mubr.msk.f32.vlgmr.msra.gmra.mxu0 %vm307_vm2, %v4734_v11 }
0x1faa   :  { %9152 = vmatprep.mubr.msk.f32.mxu0 %vm9572_vm1, %v9571_v14 }
0x2063   :  { %v4729_v41 = vpop.f32.mrf.mxu1 }
0x2065   :  { %v4656_v13 = vpop.f32.mrf.mxu0  ;;  %v9139_v0 = vpop.f32.mrf.mxu1 }
0x2067   :  { %v9134_v39 = vpop.f32.mrf.mxu0  ;;  %v4885_v21 = vpop.f32.mrf.mxu1 }
0x2068   :  { %v4890_v43 = vmul.f32 0.35355338, %v4885_v21 }
0x2069   :  { %v4807_v22 = vpop.f32.mrf.mxu0  ;;  %v9149_v23 = vpop.f32.mrf.mxu1 }
0x206a   :  { %v4889_v25 = vmul.f32 0.35355338, %v4807_v22  ;;  %v4892_v26 = vadd.f32 %v10371_v55, %v4890_v43 }
0x206b   :  { %v9144_v27 = vpop.f32.mrf.mxu0 }
0x206c   :  { %v4896_v29 = vsel %vm307_vm2, %v4892_v26, -inf  ;;  %v4891_v30 = vadd.f32 %v10378_v15, %v4889_v25 }
0x206d   :  { %4897 = vmax.xlane.f32.xlu1 %v4896_v29 }
0x206e   :  { %v4893_v24 = vsel %vm307_vm2, %v4891_v30, -inf }
0x206f   :  { %4894 = vmax.xlane.f32.xlu0 %v4893_v24 }
0x207e   :  { %4996 = vrot.lane.b32.xlu1 %v10346_v42, %s9573_s20 }
0x2082   :  { %5236 = vrot.lane.b32.xlu1 %v10348_v50, %s9574_s29 }
0x2086   :  { %5314 = vrot.lane.b32.xlu1 %v10342_v40, %s9574_s29 }
0x208a   :  { %5312 = vrot.lane.b32.xlu1 %v10338_v47, %s9574_s29 }
0x20f6   :  { %v4898_v31 = vpop.xlane.xlu1 %4897 }
0x20f7   :  { %v4900_v32 = vsub.f32 %v4892_v26, %v4898_v31 }
0x20f8   :  { %v4895_v33 = vpop.xlane.xlu0 %4894 }
0x20f9   :  { %v4903_v34 = vmul.f32 1.442695, %v4900_v32  ;;  %v4899_v35 = vsub.f32 %v4891_v30, %v4895_v33 }
0x20fa   :  { %v4997_v36 = vpop.permute.xlu1 %4996 }
0x20fb   :  { %9475 = vpow2.f32 %v4903_v34  ;;  %v4901_v46 = vmul.f32 1.442695, %v4899_v35  ;;  %9156 = vmatpush3.msra.mxu1 %v4997_v36 }
0x20fc   :  { %9165 = vmatprep.subr.mxu1 %v8383_v19 }
0x20fd   :  { %9477 = vpow2.f32 %v4901_v46 }
0x20fe   :  { %v5237_v56 = vpop.permute.xlu1 %5236 }
0x2102   :  { %v5315_v58 = vpop.permute.xlu1 %5314 }
0x2106   :  { %v5313_v60 = vpop.permute.xlu1 %5312 }
0x2108   :  { %v9476_v38 = vpop.eup %9475 }
0x2109   :  { %v4908_v37 = vsel %vm307_vm2, %v9476_v38, 0.0 }
0x210a   :  { %v9478_v52 = vpop.eup %9477  ;;  %4909 = vadd.xlane.f32.xlu0 %v4908_v37 }
0x210b   :  { %v4905_v53 = vsel %vm307_vm2, %v9478_v52, 0.0 }
0x210e   :  { %4906 = vadd.xlane.f32.xlu0 %v4905_v53 }
0x2124   :  { %4919 = vrot.lane.b32.xlu0 %v10359_v51, %s9573_s20 }
0x2128   :  { %5234 = vrot.lane.b32.xlu0 %v10340_v48, %s9574_s29 }
0x2193   :  { %v4910_v54 = vpop.xlane.xlu0 %4909 }
0x2194   :  { %9479 = vrcp.f32 %v4910_v54 }
0x2197   :  { %v4907_v49 = vpop.xlane.xlu0 %4906 }
0x2198   :  { %9481 = vrcp.f32 %v4907_v49 }
0x219b   :  { %v4920_v17 = vpop.permute.xlu0 %4919 }
0x219c   :  { %9151 = vmatpush3.msra.mxu0 %v4920_v17 }
0x219d   :  { %9160 = vmatprep.subr.mxu0 %v8384_v61 }
0x219f   :  { %v5235_v1 = vpop.permute.xlu0 %5234 }
0x21a1   :  { %v9480_v20 = vpop.eup %9479 }
0x21a2   :  { %v4914_v57 = vmul.f32 %v9480_v20, %v9476_v38  ;;  %v8385_v38 = vld [vmem:[%s10906_s7 + $0x30] sm:$0xff] }
0x21a4   :  { %8406 = vst.msk [vmem:[%s10914_s15 + $0x58] sm:$0xff] %vm307_vm2, %v4914_v57  ;;  %9158 = vmatmul.mubr.msk.f32.vlgmr.msra.gmra.mxu1 %vm307_vm2, %v4914_v57 }
0x21a5   :  { %v9482_v16 = vpop.eup %9481  ;;  %9167 = vmatprep.mubr.msk.f32.mxu1 %vm307_vm2, %v4656_v13  ;;  %9166 = vmatpush3.msra.mxu1 %v8383_v19 }
0x21a6   :  { %9175 = vmatprep.subr.mxu1 %v9571_v14  ;;  %v4913_v59 = vmul.f32 %v9482_v16, %v9478_v52 }
0x21a8   :  { %8405 = vst.msk [vmem:[%s10914_s15 + $0x50] sm:$0xff] %vm307_vm2, %v4913_v59  ;;  %9153 = vmatmul.mubr.msk.f32.vlgmr.msra.gmra.mxu0 %vm307_vm2, %v4913_v59  ;;  %9168 = vmatmul.mubr.msk.f32.vlgmr.msra.gmra.mxu1 %vm307_vm2, %v4729_v41 }
0x21a9   :  { %9176 = vmatpush3.xpose.msk.msra.mxu1 %vm307_vm2, %v5315_v58  ;;  %9177 = vmatprep.mubr.msk.f32.mxu1 %vm9572_vm1, %v9571_v14 }
0x21aa   :  { %9185 = vmatprep.subr.mxu1 %v9571_v14  ;;  %9161 = vmatpush3.msra.mxu0 %v8384_v61 }
0x21ab   :  { %9170 = vmatprep.subr.mxu0 %v9571_v14 }
0x21ac   :  { %9178 = vmatmul.mubr.msk.f32.vlgmr.msra.gmra.mxu1 %vm307_vm2, %v5313_v60 }
0x21ad   :  { %9187 = vmatprep.mubr.msk.f32.mxu1 %vm9572_vm1, %v9571_v14 }
0x2264   :  { %v5068_v2 = vpop.f32.mrf.mxu1 }
0x2266   :  { %v9159_v3 = vpop.f32.mrf.mxu1 }
0x2268   :  { %v4991_v4 = vpop.f32.mrf.mxu0  ;;  %v10461_v5 = vpop.f32.mrf.mxu1 }
0x2269   :  { %9162 = vmatprep.mubr.msk.f32.mxu0 %vm307_vm2, %v4991_v4 }
0x226a   :  { %v9154_v6 = vpop.f32.mrf.mxu0  ;;  %9163 = vmatmul.mubr.msk.f32.vlgmr.msra.gmra.mxu0 %vm307_vm2, %v5068_v2  ;;  %v10465_v62 = vpop.f32.mrf.mxu1 }
0x226b   :  { %9171 = vmatpush3.xpose.msk.msra.mxu0 %vm307_vm2, %v5237_v56  ;;  %9172 = vmatprep.mubr.msk.f32.mxu0 %vm9572_vm1, %v9571_v14 }
0x226c   :  { %v5386_v7 = vpop.f32.mrf.mxu1  ;;  %9180 = vmatprep.subr.mxu0 %v9571_v14 }
0x226d   :  { %v5391_v10 = vmul.f32 0.35355338, %v5386_v7 }
0x226e   :  { %9173 = vmatmul.mubr.msk.f32.vlgmr.msra.gmra.mxu0 %vm307_vm2, %v5235_v1  ;;  %v9179_v18 = vpop.f32.mrf.mxu1 }
0x226f   :  { %v5393_v11 = vadd.f32 %v10371_v55, %v5391_v10  ;;  %9182 = vmatprep.mubr.msk.f32.mxu0 %vm9572_vm1, %v9571_v14 }
0x2271   :  { %v5397_v28 = vsel %vm307_vm2, %v5393_v11, -inf }
0x2272   :  { %5398 = vmax.xlane.f32.xlu1 %v5397_v28 }
0x2283   :  { %5495 = vrot.lane.b32.xlu1 %v10346_v42, %s9574_s29 }
0x2287   :  { %5656 = vrot.lane.b32.xlu1 %v10348_v50, %s9575_s24 }
0x228b   :  { %5734 = vrot.lane.b32.xlu1 %v10342_v40, %s9575_s24 }
0x228f   :  { %5732 = vrot.lane.b32.xlu1 %v10338_v47, %s9575_s24 }
0x22fb   :  { %v5399_v9 = vpop.xlane.xlu1 %5398 }
0x22fc   :  { %v5401_v8 = vsub.f32 %v5393_v11, %v5399_v9 }
0x22fe   :  { %v5404_v12 = vmul.f32 1.442695, %v5401_v8 }
0x22ff   :  { %v5496_v63 = vpop.permute.xlu1 %5495 }
0x2300   :  { %9186 = vmatpush3.msra.mxu1 %v5496_v63  ;;  %9483 = vpow2.f32 %v5404_v12 }
0x2301   :  { %9195 = vmatprep.subr.mxu1 %v9571_v14 }
0x2303   :  { %v5657_v31 = vpop.permute.xlu1 %5656 }
0x2307   :  { %v5735_v49 = vpop.permute.xlu1 %5734 }
0x230b   :  { %v5733_v20 = vpop.permute.xlu1 %5732 }
0x230d   :  { %v9484_v47 = vpop.eup %9483 }
0x230e   :  { %v5409_v43 = vsel %vm307_vm2, %v9484_v47, 0.0 }
0x232a   :  { %v10485_v41 = vpop.f32.mrf.mxu0 }
0x232b   :  { %v5231_v60 = vadd.f32 %v10461_v5, %v10485_v41 }
0x232c   :  { %v10487_v13 = vpop.f32.mrf.mxu0 }
0x232d   :  { %v5226_v2 = vadd.f32 %v10465_v62, %v10487_v13 }
0x232e   :  { %v5308_v0 = vpop.f32.mrf.mxu0 }
0x232f   :  { %v5390_v50 = vmul.f32 0.35355338, %v5308_v0 }
0x2330   :  { %v9174_v39 = vpop.f32.mrf.mxu0 }
0x2331   :  { %v5392_v40 = vadd.f32 %v10378_v15, %v5390_v50  ;;  %v8386_v39 = vld [vmem:[%s10906_s7 + $0x38] sm:$0xff] }
0x2333   :  { %v5394_v21 = vsel %vm307_vm2, %v5392_v40, -inf }
0x2334   :  { %5395 = vmax.xlane.f32.xlu0 %v5394_v21 }
0x2338   :  { %5410 = vadd.xlane.f32.xlu0 %v5409_v43  ;;  %v10559_v43 = vld [vmem:[%s10900_s1] sm:$0xff] }
0x23bd   :  { %v5396_v22 = vpop.xlane.xlu0 %5395 }
0x23be   :  { %v5400_v23 = vsub.f32 %v5392_v40, %v5396_v22 }
0x23c0   :  { %v5402_v25 = vmul.f32 1.442695, %v5400_v23 }
0x23c1   :  { %v5411_v26 = vpop.xlane.xlu0 %5410 }
0x23c2   :  { %9485 = vpow2.f32 %v5402_v25 }
0x23c3   :  { %9487 = vrcp.f32 %v5411_v26 }
0x23cf   :  { %v9486_v27 = vpop.eup %9485 }
0x23d0   :  { %v9488_v29 = vpop.eup %9487  ;;  %v5406_v30 = vsel %vm307_vm2, %v9486_v27, 0.0 }
0x23d1   :  { %5407 = vadd.xlane.f32.xlu0 %v5406_v30  ;;  %v5415_v24 = vmul.f32 %v9488_v29, %v9484_v47 }
0x23d3   :  { %8418 = vst.msk [vmem:[%s10914_s15 + $0x68] sm:$0xff] %vm307_vm2, %v5415_v24  ;;  %9188 = vmatmul.mubr.msk.f32.vlgmr.msra.gmra.mxu1 %vm307_vm2, %v5415_v24 }
0x23d4   :  { %9196 = vmatpush3.xpose.msk.msra.mxu1 %vm307_vm2, %v5657_v31  ;;  %9197 = vmatprep.mubr.msk.f32.mxu1 %vm9572_vm1, %v9571_v14 }
0x23d5   :  { %9205 = vmatprep.subr.mxu1 %v9571_v14 }
0x23e7   :  { %5419 = vrot.lane.b32.xlu0 %v10359_v51, %s9574_s29 }
0x23eb   :  { %5654 = vrot.lane.b32.xlu0 %v10340_v48, %s9575_s24 }
0x245a   :  { %v5408_v32 = vpop.xlane.xlu0 %5407 }
0x245b   :  { %9489 = vrcp.f32 %v5408_v32 }
0x245e   :  { %v5420_v33 = vpop.permute.xlu0 %5419 }
0x245f   :  { %9181 = vmatpush3.msra.mxu0 %v5420_v33 }
0x2460   :  { %9190 = vmatprep.subr.mxu0 %v8385_v38 }
0x2462   :  { %v5655_v34 = vpop.permute.xlu0 %5654 }
0x2463   :  { %9198 = vmatmul.mubr.msk.f32.vlgmr.msra.gmra.mxu1 %vm307_vm2, %v5655_v34 }
0x2464   :  { %9207 = vmatprep.mubr.msk.f32.mxu1 %vm9572_vm1, %v9571_v14 }
0x2468   :  { %v9490_v35 = vpop.eup %9489 }
0x2469   :  { %v5414_v36 = vmul.f32 %v9490_v35, %v9486_v27 }
0x246b   :  { %8417 = vst.msk [vmem:[%s10914_s15 + $0x60] sm:$0xff] %vm307_vm2, %v5414_v36  ;;  %9183 = vmatmul.mubr.msk.f32.vlgmr.msra.gmra.mxu0 %vm307_vm2, %v5414_v36 }
0x246c   :  { %9191 = vmatpush3.msra.mxu0 %v8385_v38 }
0x246d   :  { %9200 = vmatprep.subr.mxu0 %v9571_v14 }
0x2493   :  { %v5567_v48 = vpop.f32.mrf.mxu1 }
0x2495   :  { %v9189_v46 = vpop.f32.mrf.mxu1 }
0x2523   :  { %v5728_v37 = vpop.f32.mrf.mxu1 }
0x2524   :  { %v5810_v52 = vmul.f32 0.35355338, %v5728_v37  ;;  %v8439_v37 = vld [vmem:[%s10908_s9 + $0x30] sm:$0xff] }
0x2525   :  { %v9199_v53 = vpop.f32.mrf.mxu1 }
0x2526   :  { %v5812_v19 = vadd.f32 %v10378_v15, %v5810_v52  ;;  %v8436_v52 = vld [vmem:[%s10907_s8 + $0x38] sm:$0xff]  ;;  %v8435_v53 = vld [vmem:[%s10907_s8 + $0x30] sm:$0xff] }
0x2528   :  { %v5814_v54 = vsel %vm307_vm2, %v5812_v19, -inf }
0x2529   :  { %5815 = vmax.xlane.f32.xlu0 %v5814_v54  ;;  %v8434_v54 = vld [vmem:[%s10907_s8 + $0x28] sm:$0xff] }
0x252b   :  { %v5491_v17 = vpop.f32.mrf.mxu0 }
0x252c   :  { %9192 = vmatprep.mubr.msk.f32.mxu0 %vm307_vm2, %v5491_v17  ;;  %v8433_v17 = vld [vmem:[%s10907_s8 + $0x20] sm:$0xff] }
0x252d   :  { %v9184_v56 = vpop.f32.mrf.mxu0  ;;  %9193 = vmatmul.mubr.msk.f32.vlgmr.msra.gmra.mxu0 %vm307_vm2, %v5567_v48 }
0x252e   :  { %9201 = vmatpush3.xpose.msk.msra.mxu0 %vm307_vm2, %v5735_v49  ;;  %9202 = vmatprep.mubr.msk.f32.mxu0 %vm9572_vm1, %v9571_v14  ;;  %v8437_v49 = vld [vmem:[%s10908_s9 + $0x20] sm:$0xff]  ;;  %v9546_v56 = vld [vmem:[%s10900_s1 + $0x8] sm:$0xff] }
0x252f   :  { %9210 = vmatprep.subr.mxu0 %v9571_v14 }
0x2531   :  { %9203 = vmatmul.mubr.msk.f32.vlgmr.msra.gmra.mxu0 %vm307_vm2, %v5733_v20 }
0x2532   :  { %9212 = vmatprep.mubr.msk.f32.mxu0 %vm9572_vm1, %v9571_v14 }
0x25b2   :  { %v5816_v15 = vpop.xlane.xlu0 %5815 }
0x25b3   :  { %v5820_v57 = vsub.f32 %v5812_v19, %v5816_v15  ;;  %v8438_v19 = vld [vmem:[%s10908_s9 + $0x28] sm:$0xff] }
0x25b5   :  { %v5822_v16 = vmul.f32 1.442695, %v5820_v57 }
0x25b7   :  { %9491 = vpow2.f32 %v5822_v16 }
0x25c4   :  { %v9492_v58 = vpop.eup %9491 }
0x25c5   :  { %v5826_v59 = vsel %vm307_vm2, %v9492_v58, 0.0 }
0x25c6   :  { %5827 = vadd.xlane.f32.xlu0 %v5826_v59 }
0x25ed   :  { %v9194_v61 = vpop.f32.mrf.mxu0 }
0x25ee   :  { %v5653_v3 = vadd.f32 %v9194_v61, %v5231_v60 }
0x25ef   :  { %v5643_v4 = vpop.f32.mrf.mxu0 }
0x25f0   :  { %v5652_v6 = vadd.f32 %v5643_v4, %v5226_v2 }
0x25f1   :  { %v5806_v7 = vpop.f32.mrf.mxu0 }
0x25f2   :  { %v5811_v1 = vmul.f32 0.35355338, %v5806_v7 }
0x25f3   :  { %v9204_v10 = vpop.f32.mrf.mxu0 }
0x25f4   :  { %v5813_v18 = vadd.f32 %v10371_v55, %v5811_v1  ;;  %v8444_v10 = vld [vmem:[%s10909_s10 + $0x38] sm:$0xff] }
0x25f6   :  { %v5817_v11 = vsel %vm307_vm2, %v5813_v18, -inf }
0x25f7   :  { %5818 = vmax.xlane.f32.xlu1 %v5817_v11  ;;  %v8442_v11 = vld [vmem:[%s10909_s10 + $0x28] sm:$0xff] }
0x2608   :  { %5915 = vrot.lane.b32.xlu1 %v10346_v42, %s9575_s24 }
0x264f   :  { %v5828_v28 = vpop.xlane.xlu0 %5827 }
0x2650   :  { %9493 = vrcp.f32 %v5828_v28  ;;  %v8441_v28 = vld [vmem:[%s10909_s10 + $0x20] sm:$0xff] }
0x265d   :  { %v9494_v5 = vpop.eup %9493 }
0x265e   :  { %v5834_v9 = vmul.f32 %v9494_v5, %v9492_v58 }
0x2660   :  { %8427 = vst.msk [vmem:[%s10914_s15 + $0x70] sm:$0xff] %vm307_vm2, %v5834_v9 }
0x2680   :  { %v5819_v62 = vpop.xlane.xlu1 %5818 }
0x2681   :  { %v5821_v63 = vsub.f32 %v5813_v18, %v5819_v62  ;;  %v8443_v18 = vld [vmem:[%s10909_s10 + $0x30] sm:$0xff] }
0x2683   :  { %v5824_v8 = vmul.f32 1.442695, %v5821_v63  ;;  %v10651_v63 = vld [vmem:[%s10902_s3] sm:$0xff] }
0x2684   :  { %v5916_v12 = vpop.permute.xlu1 %5915 }
0x2685   :  { %9495 = vpow2.f32 %v5824_v8  ;;  %9211 = vmatpush3.msra.mxu0 %v5916_v12 }
0x2686   :  { %9220 = vmatprep.subr.mxu0 %v8436_v52 }
0x2692   :  { %v9496_v55 = vpop.eup %9495 }
0x2693   :  { %v5829_v41 = vsel %vm307_vm2, %v9496_v55, 0.0 }
0x2694   :  { %5830 = vadd.xlane.f32.xlu0 %v5829_v41 }
0x26aa   :  { %5839 = vrot.lane.b32.xlu0 %v10359_v51, %s9575_s24 }
0x271d   :  { %v5831_v42 = vpop.xlane.xlu0 %5830 }
0x271e   :  { %9497 = vrcp.f32 %v5831_v42 }
0x2721   :  { %v5840_v13 = vpop.permute.xlu0 %5839 }
0x2722   :  { %9206 = vmatpush3.msra.mxu1 %v5840_v13  ;;  %v10658_v13 = vld [vmem:[%s10902_s3 + $0x8] sm:$0xff] }
0x2723   :  { %9208 = vmatmul.mubr.msk.f32.vlgmr.msra.gmra.mxu1 %vm307_vm2, %v5834_v9  ;;  %9215 = vmatprep.subr.mxu1 %v8386_v39 }
0x2724   :  { %9216 = vmatpush3.msra.mxu1 %v8386_v39 }
0x272b   :  { %v9498_v0 = vpop.eup %9497 }
0x272c   :  { %v5835_v50 = vmul.f32 %v9498_v0, %v9496_v55 }
0x272e   :  { %8428 = vst.msk [vmem:[%s10914_s15 + $0x78] sm:$0xff] %vm307_vm2, %v5835_v50  ;;  %9213 = vmatmul.mubr.msk.f32.vlgmr.msra.gmra.mxu0 %vm307_vm2, %v5835_v50 }
0x272f   :  { %9221 = vmatpush3.msra.mxu0 %v8436_v52 }
0x2730   :  { %9222 = vmatprep.subr.mxu0 %v8435_v53 }
0x2731   :  { %9223 = vmatpush3.msra.mxu0 %v8435_v53 }
0x2732   :  { %9224 = vmatprep.subr.mxu0 %v8434_v54 }
0x2733   :  { %9225 = vmatpush3.msra.mxu0 %v8434_v54 }
0x2734   :  { %9226 = vmatprep.subr.mxu0 %v8433_v17 }
0x2735   :  { %9227 = vmatpush3.msra.mxu0 %v8433_v17 }
0x2736   :  { %9242 = vmatprep.subr.mxu0 %v8444_v10 }
0x27e3   :  { %v5911_v51 = vpop.f32.mrf.mxu1 }
0x27e4   :  { %9217 = vmatprep.mubr.msk.f32.mxu1 %vm307_vm2, %v5911_v51 }
0x27e5   :  { %v9209_v40 = vpop.f32.mrf.mxu1 }
0x27ee   :  { %v5987_v21 = vpop.f32.mrf.mxu0 }
0x27ef   :  { %9218 = vmatmul.mubr.msk.f32.vlgmr.msra.gmra.mxu1 %vm307_vm2, %v5987_v21 }
0x27f0   :  { %v9214_v47 = vpop.f32.mrf.mxu0  ;;  %9239 = vmatprep.mubr.msk.f32.mxu1 %vm75_vm0, %v10559_v43 }
0x28af   :  { %v9219_v22 = vpop.f32.mrf.mxu1 }
0x28b0   :  { %v6073_v23 = vadd.f32 %v9219_v22, %v5653_v3 }
0x28b1   :  { %v6063_v25 = vpop.f32.mrf.mxu1 }
0x28b2   :  { %v6075_v26 = vadd.f32 %v6073_v23, %v10310_v44  ;;  %v6072_v27 = vadd.f32 %v6063_v25, %v5652_v6 }
0x28b4   :  { %v6074_v29 = vadd.f32 %v6072_v27, %v10308_v45  ;;  %v6079_v30 = vsel %vm75_vm0, %v6075_v26, 0.0  ;;  %v8440_v45 = vld [vmem:[%s10908_s9 + $0x38] sm:$0xff] }
0x28b5   :  { %6080 = vadd.xlane.f32.xlu0 %v6079_v30  ;;  %9231 = vmatprep.subr.mxu1 %v8440_v45 }
0x28b6   :  { %v6076_v24 = vsel %vm75_vm0, %v6074_v29, 0.0  ;;  %9232 = vmatpush3.msra.mxu1 %v8440_v45 }
0x28b7   :  { %6077 = vadd.xlane.f32.xlu1 %v6076_v24  ;;  %9233 = vmatprep.subr.mxu1 %v8439_v37 }
0x28b8   :  { %9234 = vmatpush3.msra.mxu1 %v8439_v37 }
0x28b9   :  { %9235 = vmatprep.subr.mxu1 %v8438_v19 }
0x28ba   :  { %9236 = vmatpush3.msra.mxu1 %v8438_v19 }
0x28bb   :  { %9237 = vmatprep.subr.mxu1 %v8437_v49 }
0x28bc   :  { %9238 = vmatpush3.msra.mxu1 %v8437_v49 }
0x28bd   :  { %9240 = vmatmul.mubr.msk.f32.vlgmr.msra.gmra.mxu1 %vm75_vm0, %v9546_v56  ;;  %9253 = vmatprep.subr.mxu1 %v9571_v14 }
0x28be   :  { %9255 = vmatprep.mubr.msk.f32.mxu1 %vm9572_vm1, %v9571_v14 }
0x293e   :  { %v6081_v31 = vpop.xlane.xlu0 %6080 }
0x293f   :  { %v6083_v32 = vmul.f32 0.03125, %v6081_v31 }
0x2940   :  { %v6078_v33 = vpop.xlane.xlu1 %6077 }
0x2941   :  { %v6085_v34 = vsub.f32 %v6075_v26, %v6083_v32  ;;  %v6082_v35 = vmul.f32 0.03125, %v6078_v33 }
0x2943   :  { %v6084_v36 = vsub.f32 %v6074_v29, %v6082_v35  ;;  %v6087_v48 = vmul.f32 %v6085_v34, %v6085_v34 }
0x2945   :  { %v6091_v46 = vsel %vm75_vm0, %v6087_v48, 0.0  ;;  %v6086_v38 = vmul.f32 %v6084_v36, %v6084_v36 }
0x2946   :  { %6092 = vadd.xlane.f32.xlu1 %v6091_v46 }
0x2947   :  { %v6088_v44 = vsel %vm75_vm0, %v6086_v38, 0.0 }
0x2948   :  { %6089 = vadd.xlane.f32.xlu0 %v6088_v44 }
0x297d   :  { %v10610_v4 = vpop.f32.mrf.mxu1 }
0x297f   :  { %v10612_v6 = vpop.f32.mrf.mxu1 }
0x2980   :  { %9254 = vmatpush3.xpose.msk.msra.mxu1 %vm307_vm2, %v10612_v6 }
0x2981   :  { %9258 = vmatprep.subr.mxu1 %v9571_v14 }
0x29cf   :  { %v6093_v20 = vpop.xlane.xlu1 %6092 }
0x29d0   :  { %v6095_v15 = vmul.f32 0.03125, %v6093_v20 }
0x29d1   :  { %v6090_v57 = vpop.xlane.xlu0 %6089 }
0x29d2   :  { %v6097_v16 = vadd.f32 1e-05, %v6095_v15  ;;  %v6094_v58 = vmul.f32 0.03125, %v6090_v57 }
0x29d4   :  { %v6096_v59 = vadd.f32 1e-05, %v6094_v58  ;;  %9499 = vrsqrt.f32 %v6097_v16 }
0x29d6   :  { %9501 = vrsqrt.f32 %v6096_v59 }
0x29e1   :  { %v9500_v60 = vpop.eup %9499 }
0x29e2   :  { %v10602_v3 = vmul.f32 %v9500_v60, %v6085_v34 }
0x29e3   :  { %v9502_v61 = vpop.eup %9501 }
0x29e4   :  { %v10600_v2 = vmul.f32 %v9502_v61, %v6084_v36 }
0x29e6   :  { %9228 = vmatprep.mubr.msk.f32.mxu0 %vm75_vm0, %v10600_v2 }
0x29e7   :  { %9229 = vmatmul.mubr.msk.f32.vlgmr.msra.gmra.mxu0 %vm75_vm0, %v10602_v3 }
0x29e8   :  { %9250 = vmatprep.mubr.msk.f32.mxu0 %vm75_vm0, %v10559_v43  ;;  %9243 = vmatpush3.msra.mxu0 %v8444_v10 }
0x29e9   :  { %9244 = vmatprep.subr.mxu0 %v8443_v18 }
0x29ea   :  { %9245 = vmatpush3.msra.mxu0 %v8443_v18 }
0x29eb   :  { %9246 = vmatprep.subr.mxu0 %v8442_v11 }
0x29ec   :  { %9247 = vmatpush3.msra.mxu0 %v8442_v11 }
0x29ed   :  { %9248 = vmatprep.subr.mxu0 %v8441_v28 }
0x29ee   :  { %9249 = vmatpush3.msra.mxu0 %v8441_v28 }
0x29ef   :  { %9251 = vmatmul.mubr.msk.f32.vlgmr.msra.gmra.mxu0 %vm75_vm0, %v9546_v56  ;;  %9263 = vmatprep.subr.mxu0 %v9571_v14 }
0x29f0   :  { %9265 = vmatprep.mubr.msk.f32.mxu0 %vm9572_vm1, %v9571_v14 }
0x2aa7   :  { %v10617_v7 = vpop.f32.mrf.mxu0 }
0x2aa9   :  { %v10619_v1 = vpop.f32.mrf.mxu0 }
0x2aaa   :  { %9256 = vmatmul.mubr.msk.f32.vlgmr.msra.gmra.mxu1 %vm307_vm2, %v10619_v1 }
0x2aab   :  { %9259 = vmatpush3.xpose.msk.msra.mxu1 %vm307_vm2, %v10610_v4  ;;  %9260 = vmatprep.mubr.msk.f32.mxu1 %vm9572_vm1, %v9571_v14 }
0x2aac   :  { %9268 = vmatprep.subr.mxu1 %v9571_v14 }
0x2aae   :  { %9261 = vmatmul.mubr.msk.f32.vlgmr.msra.gmra.mxu1 %vm307_vm2, %v10617_v7 }
0x2aaf   :  { %9270 = vmatprep.mubr.msk.f32.mxu1 %vm9572_vm1, %v9571_v14  ;;  %v10668_v27 = vpop.f32.mrf.mxu0 }
0x2ab0   :  { %9269 = vmatpush3.msra.mxu1 %v10668_v27 }
0x2ab1   :  { %v10671_v29 = vpop.f32.mrf.mxu0  ;;  %9278 = vmatprep.subr.mxu1 %v9571_v14 }
0x2ab2   :  { %9264 = vmatpush3.msra.mxu0 %v10671_v29 }
0x2ab3   :  { %9273 = vmatprep.subr.mxu0 %v9571_v14 }
0x2b6a   :  { %v6425_v5 = vpop.f32.mrf.mxu1 }
0x2b6b   :  { %v6505_v9 = vmul.f32 0.35355338, %v6425_v5 }
0x2b6c   :  { %v9257_v62 = vpop.f32.mrf.mxu1 }
0x2b6d   :  { %v6507_v8 = vadd.f32 %v10651_v63, %v6505_v9  ;;  %v8445_v62 = vld [vmem:[%s10910_s11 + $0x20] sm:$0xff] }
0x2b6e   :  { %v6501_v12 = vpop.f32.mrf.mxu1 }
0x2b6f   :  { %v6506_v55 = vmul.f32 0.35355338, %v6501_v12  ;;  %v6509_v41 = vsel %vm307_vm2, %v6507_v8, -inf }
0x2b70   :  { %6510 = vmax.xlane.f32.xlu0 %v6509_v41  ;;  %v9262_v42 = vpop.f32.mrf.mxu1 }
0x2b71   :  { %v6508_v0 = vadd.f32 %v10658_v13, %v6506_v55 }
0x2b73   :  { %v6512_v50 = vsel %vm307_vm2, %v6508_v0, -inf }
0x2b74   :  { %6513 = vmax.xlane.f32.xlu1 %v6512_v50 }
0x2b85   :  { %6760 = vrot.lane.b32.xlu1 %v10610_v4, %s9573_s20 }
0x2b89   :  { %6680 = vrot.lane.b32.xlu1 %v10619_v1, %s9573_s20 }
0x2bf9   :  { %v6511_v39 = vpop.xlane.xlu0 %6510 }
0x2bfa   :  { %v6515_v51 = vsub.f32 %v6507_v8, %v6511_v39 }
0x2bfc   :  { %v6517_v40 = vmul.f32 1.442695, %v6515_v51 }
0x2bfd   :  { %v6514_v21 = vpop.xlane.xlu1 %6513 }
0x2bfe   :  { %9503 = vpow2.f32 %v6517_v40  ;;  %v6516_v47 = vsub.f32 %v6508_v0, %v6514_v21  ;;  %v8446_v21 = vld [vmem:[%s10910_s11 + $0x28] sm:$0xff] }
0x2c00   :  { %v6519_v43 = vmul.f32 1.442695, %v6516_v47 }
0x2c01   :  { %v6761_v30 = vpop.permute.xlu1 %6760 }
0x2c02   :  { %9505 = vpow2.f32 %v6519_v43 }
0x2c05   :  { %v6681_v24 = vpop.permute.xlu1 %6680 }
0x2c0b   :  { %v9504_v22 = vpop.eup %9503 }
0x2c0c   :  { %v6521_v23 = vsel %vm307_vm2, %v9504_v22, 0.0 }
0x2c0d   :  { %6522 = vadd.xlane.f32.xlu0 %v6521_v23 }
0x2c0f   :  { %v9506_v25 = vpop.eup %9505 }
0x2c10   :  { %v6524_v26 = vsel %vm307_vm2, %v9506_v25, 0.0 }
0x2c11   :  { %6525 = vadd.xlane.f32.xlu1 %v6524_v26 }
0x2c22   :  { %6758 = vrot.lane.b32.xlu1 %v10617_v7, %s9573_s20 }
0x2c23   :  { %6682 = vrot.lane.b32.xlu0 %v10612_v6, %s9573_s20 }
0x2c96   :  { %v6523_v31 = vpop.xlane.xlu0 %6522 }
0x2c97   :  { %9507 = vrcp.f32 %v6523_v31 }
0x2c9a   :  { %v6526_v32 = vpop.xlane.xlu1 %6525  ;;  %v6683_v35 = vpop.permute.xlu0 %6682 }
0x2c9b   :  { %9509 = vrcp.f32 %v6526_v32 }
0x2c9e   :  { %v6759_v46 = vpop.permute.xlu1 %6758 }
0x2ca4   :  { %v9508_v33 = vpop.eup %9507 }
0x2ca5   :  { %v6529_v34 = vmul.f32 %v9508_v33, %v9504_v22 }
0x2ca7   :  { %8459 = vst.msk [vmem:[%s10915_s16 + $0x40] sm:$0xff] %vm307_vm2, %v6529_v34  ;;  %9266 = vmatmul.mubr.msk.f32.vlgmr.msra.gmra.mxu0 %vm307_vm2, %v6529_v34 }
0x2ca8   :  { %v9510_v36 = vpop.eup %9509  ;;  %9274 = vmatpush3.xpose.msk.msra.mxu0 %vm307_vm2, %v6683_v35  ;;  %9275 = vmatprep.mubr.msk.f32.mxu0 %vm9572_vm1, %v9571_v14 }
0x2ca9   :  { %v6530_v48 = vmul.f32 %v9510_v36, %v9506_v25  ;;  %9283 = vmatprep.subr.mxu0 %v9571_v14 }
0x2cab   :  { %8460 = vst.msk [vmem:[%s10915_s16 + $0x48] sm:$0xff] %vm307_vm2, %v6530_v48  ;;  %9271 = vmatmul.mubr.msk.f32.vlgmr.msra.gmra.mxu1 %vm307_vm2, %v6530_v48  ;;  %9276 = vmatmul.mubr.msk.f32.vlgmr.msra.gmra.mxu0 %vm307_vm2, %v6681_v24 }
0x2cac   :  { %9279 = vmatpush3.xpose.msk.msra.mxu1 %vm307_vm2, %v6761_v30  ;;  %9280 = vmatprep.mubr.msk.f32.mxu1 %vm9572_vm1, %v9571_v14 }
0x2cad   :  { %9288 = vmatprep.subr.mxu1 %v9571_v14  ;;  %9285 = vmatprep.mubr.msk.f32.mxu0 %vm9572_vm1, %v9571_v14 }
0x2caf   :  { %9281 = vmatmul.mubr.msk.f32.vlgmr.msra.gmra.mxu1 %vm307_vm2, %v6759_v46 }
0x2cb0   :  { %9290 = vmatprep.mubr.msk.f32.mxu1 %vm9572_vm1, %v9571_v14 }
0x2d67   :  { %v6603_v38 = vpop.f32.mrf.mxu0 }
0x2d69   :  { %v9267_v44 = vpop.f32.mrf.mxu0 }
0x2d6b   :  { %v6676_v45 = vpop.f32.mrf.mxu1  ;;  %v6754_v37 = vpop.f32.mrf.mxu0 }
0x2d6c   :  { %v6836_v52 = vmul.f32 0.35355338, %v6754_v37 }
0x2d6d   :  { %v9272_v53 = vpop.f32.mrf.mxu1  ;;  %v9277_v19 = vpop.f32.mrf.mxu0 }
0x2d6e   :  { %v6838_v54 = vadd.f32 %v10651_v63, %v6836_v52 }
0x2d6f   :  { %v6832_v49 = vpop.f32.mrf.mxu1 }
0x2d70   :  { %v6837_v17 = vmul.f32 0.35355338, %v6832_v49  ;;  %v6840_v56 = vsel %vm307_vm2, %v6838_v54, -inf }
0x2d71   :  { %v9282_v20 = vpop.f32.mrf.mxu1  ;;  %6841 = vmax.xlane.f32.xlu0 %v6840_v56 }
0x2d72   :  { %v6839_v15 = vadd.f32 %v10658_v13, %v6837_v17 }
0x2d74   :  { %v6843_v57 = vsel %vm307_vm2, %v6839_v15, -inf }
0x2d75   :  { %6844 = vmax.xlane.f32.xlu1 %v6843_v57 }
0x2d86   :  { %6943 = vrot.lane.b32.xlu1 %v10668_v27, %s9573_s20 }
0x2d8a   :  { %7183 = vrot.lane.b32.xlu1 %v10612_v6, %s9574_s29 }
0x2d8e   :  { %7261 = vrot.lane.b32.xlu1 %v10610_v4, %s9574_s29 }
0x2d92   :  { %7259 = vrot.lane.b32.xlu1 %v10617_v7, %s9574_s29 }
0x2dfa   :  { %v6842_v16 = vpop.xlane.xlu0 %6841 }
0x2dfb   :  { %v6846_v58 = vsub.f32 %v6838_v54, %v6842_v16 }
0x2dfd   :  { %v6848_v59 = vmul.f32 1.442695, %v6846_v58 }
0x2dfe   :  { %v6845_v60 = vpop.xlane.xlu1 %6844 }
0x2dff   :  { %9511 = vpow2.f32 %v6848_v59  ;;  %v6847_v61 = vsub.f32 %v6839_v15, %v6845_v60 }
0x2e01   :  { %v6850_v10 = vmul.f32 1.442695, %v6847_v61 }
0x2e02   :  { %v6944_v18 = vpop.permute.xlu1 %6943 }
0x2e03   :  { %9513 = vpow2.f32 %v6850_v10  ;;  %9289 = vmatpush3.msra.mxu1 %v6944_v18 }
0x2e04   :  { %9298 = vmatprep.subr.mxu1 %v8445_v62 }
0x2e06   :  { %v7184_v0 = vpop.permute.xlu1 %7183 }
0x2e0a   :  { %v7262_v51 = vpop.permute.xlu1 %7261 }
0x2e0c   :  { %v9512_v11 = vpop.eup %9511 }
0x2e0d   :  { %v6852_v28 = vsel %vm307_vm2, %v9512_v11, 0.0 }
0x2e0e   :  { %6853 = vadd.xlane.f32.xlu0 %v6852_v28  ;;  %v7260_v40 = vpop.permute.xlu1 %7259 }
0x2e10   :  { %v9514_v5 = vpop.eup %9513 }
0x2e11   :  { %v6855_v9 = vsel %vm307_vm2, %v9514_v5, 0.0 }
0x2e12   :  { %6856 = vadd.xlane.f32.xlu0 %v6855_v9 }
0x2e28   :  { %6866 = vrot.lane.b32.xlu0 %v10671_v29, %s9573_s20 }
0x2e2c   :  { %7181 = vrot.lane.b32.xlu0 %v10619_v1, %s9574_s29 }
0x2e97   :  { %v6854_v8 = vpop.xlane.xlu0 %6853 }
0x2e98   :  { %9515 = vrcp.f32 %v6854_v8 }
0x2e9b   :  { %v6857_v12 = vpop.xlane.xlu0 %6856 }
0x2e9c   :  { %9517 = vrcp.f32 %v6857_v12 }
0x2e9f   :  { %v6867_v55 = vpop.permute.xlu0 %6866 }
0x2ea0   :  { %9284 = vmatpush3.msra.mxu0 %v6867_v55 }
0x2ea1   :  { %9293 = vmatprep.subr.mxu0 %v8446_v21 }
0x2ea3   :  { %v7182_v25 = vpop.permute.xlu0 %7181 }
0x2ea5   :  { %v9516_v41 = vpop.eup %9515 }
0x2ea6   :  { %v6860_v42 = vmul.f32 %v9516_v41, %v9512_v11  ;;  %v8447_v11 = vld [vmem:[%s10910_s11 + $0x30] sm:$0xff] }
0x2ea8   :  { %8467 = vst.msk [vmem:[%s10915_s16 + $0x50] sm:$0xff] %vm307_vm2, %v6860_v42  ;;  %9286 = vmatmul.mubr.msk.f32.vlgmr.msra.gmra.mxu0 %vm307_vm2, %v6860_v42 }
0x2ea9   :  { %v9518_v50 = vpop.eup %9517  ;;  %9294 = vmatpush3.msra.mxu0 %v8446_v21 }
0x2eaa   :  { %v6861_v39 = vmul.f32 %v9518_v50, %v9514_v5  ;;  %9303 = vmatprep.subr.mxu0 %v9571_v14 }
0x2eac   :  { %8468 = vst.msk [vmem:[%s10915_s16 + $0x58] sm:$0xff] %vm307_vm2, %v6861_v39  ;;  %9291 = vmatmul.mubr.msk.f32.vlgmr.msra.gmra.mxu1 %vm307_vm2, %v6861_v39 }
0x2ead   :  { %9300 = vmatprep.mubr.msk.f32.mxu1 %vm307_vm2, %v6603_v38  ;;  %9299 = vmatpush3.msra.mxu1 %v8445_v62 }
0x2eae   :  { %9308 = vmatprep.subr.mxu1 %v9571_v14 }
0x2eb0   :  { %9301 = vmatmul.mubr.msk.f32.vlgmr.msra.gmra.mxu1 %vm307_vm2, %v6676_v45 }
0x2eb1   :  { %9309 = vmatpush3.xpose.msk.msra.mxu1 %vm307_vm2, %v7262_v51  ;;  %9310 = vmatprep.mubr.msk.f32.mxu1 %vm9572_vm1, %v9571_v14 }
0x2eb2   :  { %9318 = vmatprep.subr.mxu1 %v9571_v14 }
0x2eb4   :  { %9311 = vmatmul.mubr.msk.f32.vlgmr.msra.gmra.mxu1 %vm307_vm2, %v7260_v40 }
0x2eb5   :  { %9320 = vmatprep.mubr.msk.f32.mxu1 %vm9572_vm1, %v9571_v14 }
0x2f68   :  { %v6938_v47 = vpop.f32.mrf.mxu0 }
0x2f69   :  { %9295 = vmatprep.mubr.msk.f32.mxu0 %vm307_vm2, %v6938_v47 }
0x2f6a   :  { %v9287_v43 = vpop.f32.mrf.mxu0 }
0x2f6c   :  { %v7015_v22 = vpop.f32.mrf.mxu1 }
0x2f6d   :  { %9296 = vmatmul.mubr.msk.f32.vlgmr.msra.gmra.mxu0 %vm307_vm2, %v7015_v22 }
0x2f6e   :  { %9304 = vmatpush3.xpose.msk.msra.mxu0 %vm307_vm2, %v7184_v0  ;;  %v9292_v23 = vpop.f32.mrf.mxu1  ;;  %9305 = vmatprep.mubr.msk.f32.mxu0 %vm9572_vm1, %v9571_v14 }
0x2f6f   :  { %9313 = vmatprep.subr.mxu0 %v9571_v14 }
0x2f70   :  { %v10755_v26 = vpop.f32.mrf.mxu1 }
0x2f71   :  { %9306 = vmatmul.mubr.msk.f32.vlgmr.msra.gmra.mxu0 %vm307_vm2, %v7182_v25 }
0x2f72   :  { %v10758_v30 = vpop.f32.mrf.mxu1  ;;  %9315 = vmatprep.mubr.msk.f32.mxu0 %vm9572_vm1, %v9571_v14 }
0x2f74   :  { %v7333_v24 = vpop.f32.mrf.mxu1 }
0x2f75   :  { %v7338_v31 = vmul.f32 0.35355338, %v7333_v24 }
0x2f76   :  { %v9312_v32 = vpop.f32.mrf.mxu1 }
0x2f77   :  { %v7340_v33 = vadd.f32 %v10658_v13, %v7338_v31 }
0x2f79   :  { %v7344_v34 = vsel %vm307_vm2, %v7340_v33, -inf }
0x2f7a   :  { %7345 = vmax.xlane.f32.xlu1 %v7344_v34 }
0x2f8b   :  { %7442 = vrot.lane.b32.xlu1 %v10668_v27, %s9574_s29 }
0x2f8f   :  { %7603 = vrot.lane.b32.xlu1 %v10612_v6, %s9575_s24 }
0x2f93   :  { %7681 = vrot.lane.b32.xlu1 %v10610_v4, %s9575_s24 }
0x2f97   :  { %7679 = vrot.lane.b32.xlu1 %v10617_v7, %s9575_s24 }
0x3003   :  { %v7346_v35 = vpop.xlane.xlu1 %7345 }
0x3004   :  { %v7348_v48 = vsub.f32 %v7340_v33, %v7346_v35 }
0x3006   :  { %v7351_v46 = vmul.f32 1.442695, %v7348_v48 }
0x3007   :  { %v7443_v36 = vpop.permute.xlu1 %7442 }
0x3008   :  { %9319 = vmatpush3.msra.mxu1 %v7443_v36  ;;  %9519 = vpow2.f32 %v7351_v46 }
0x3009   :  { %9328 = vmatprep.subr.mxu1 %v9571_v14 }
0x300b   :  { %v7604_v16 = vpop.permute.xlu1 %7603 }
0x300f   :  { %v7682_v12 = vpop.permute.xlu1 %7681 }
0x3013   :  { %v7680_v42 = vpop.permute.xlu1 %7679 }
0x3015   :  { %v9520_v7 = vpop.eup %9519 }
0x3016   :  { %v7356_v53 = vsel %vm307_vm2, %v9520_v7, 0.0 }
0x302d   :  { %v10773_v38 = vpop.f32.mrf.mxu0 }
0x302e   :  { %v7178_v40 = vadd.f32 %v10755_v26, %v10773_v38 }
0x302f   :  { %v10775_v44 = vpop.f32.mrf.mxu0 }
0x3030   :  { %v7173_v47 = vadd.f32 %v10758_v30, %v10775_v44 }
0x3031   :  { %v7255_v45 = vpop.f32.mrf.mxu0 }
0x3032   :  { %v7337_v6 = vmul.f32 0.35355338, %v7255_v45 }
0x3033   :  { %v9307_v37 = vpop.f32.mrf.mxu0 }
0x3034   :  { %v7339_v4 = vadd.f32 %v10651_v63, %v7337_v6  ;;  %v8448_v6 = vld [vmem:[%s10910_s11 + $0x38] sm:$0xff] }
0x3036   :  { %v7341_v52 = vsel %vm307_vm2, %v7339_v4, -inf }
0x3037   :  { %7342 = vmax.xlane.f32.xlu0 %v7341_v52 }
0x303b   :  { %7357 = vadd.xlane.f32.xlu0 %v7356_v53 }
0x30c0   :  { %v7343_v19 = vpop.xlane.xlu0 %7342 }
0x30c1   :  { %v7347_v54 = vsub.f32 %v7339_v4, %v7343_v19 }
0x30c3   :  { %v7349_v49 = vmul.f32 1.442695, %v7347_v54 }
0x30c4   :  { %v7358_v17 = vpop.xlane.xlu0 %7357 }
0x30c5   :  { %9521 = vpow2.f32 %v7349_v49 }
0x30c6   :  { %9523 = vrcp.f32 %v7358_v17 }
0x30d2   :  { %v9522_v56 = vpop.eup %9521 }
0x30d3   :  { %v9524_v20 = vpop.eup %9523  ;;  %v7353_v15 = vsel %vm307_vm2, %v9522_v56, 0.0 }
0x30d4   :  { %7354 = vadd.xlane.f32.xlu0 %v7353_v15  ;;  %v7362_v57 = vmul.f32 %v9524_v20, %v9520_v7 }
0x30d6   :  { %8480 = vst.msk [vmem:[%s10915_s16 + $0x68] sm:$0xff] %vm307_vm2, %v7362_v57  ;;  %9321 = vmatmul.mubr.msk.f32.vlgmr.msra.gmra.mxu1 %vm307_vm2, %v7362_v57 }
0x30d7   :  { %9329 = vmatpush3.xpose.msk.msra.mxu1 %vm307_vm2, %v7604_v16  ;;  %9330 = vmatprep.mubr.msk.f32.mxu1 %vm9572_vm1, %v9571_v14 }
0x30d8   :  { %9338 = vmatprep.subr.mxu1 %v9571_v14 }
0x30ea   :  { %7366 = vrot.lane.b32.xlu0 %v10671_v29, %s9574_s29 }
0x30ee   :  { %7601 = vrot.lane.b32.xlu0 %v10619_v1, %s9575_s24 }
0x315d   :  { %v7355_v58 = vpop.xlane.xlu0 %7354 }
0x315e   :  { %9525 = vrcp.f32 %v7355_v58 }
0x3161   :  { %v7367_v59 = vpop.permute.xlu0 %7366 }
0x3162   :  { %9314 = vmatpush3.msra.mxu0 %v7367_v59 }
0x3163   :  { %9323 = vmatprep.subr.mxu0 %v8447_v11 }
0x3165   :  { %v7602_v60 = vpop.permute.xlu0 %7601 }
0x3166   :  { %9331 = vmatmul.mubr.msk.f32.vlgmr.msra.gmra.mxu1 %vm307_vm2, %v7602_v60 }
0x3167   :  { %9340 = vmatprep.mubr.msk.f32.mxu1 %vm9572_vm1, %v9571_v14 }
0x316b   :  { %v9526_v61 = vpop.eup %9525 }
0x316c   :  { %v7361_v10 = vmul.f32 %v9526_v61, %v9522_v56 }
0x316e   :  { %8479 = vst.msk [vmem:[%s10915_s16 + $0x60] sm:$0xff] %vm307_vm2, %v7361_v10  ;;  %9316 = vmatmul.mubr.msk.f32.vlgmr.msra.gmra.mxu0 %vm307_vm2, %v7361_v10 }
0x316f   :  { %9324 = vmatpush3.msra.mxu0 %v8447_v11  ;;  %v8496_v11 = vld [vmem:[%s10911_s12 + $0x28] sm:$0xff] }
0x3170   :  { %9333 = vmatprep.subr.mxu0 %v9571_v14 }
0x3196   :  { %v7514_v1 = vpop.f32.mrf.mxu1 }
0x3198   :  { %v9322_v18 = vpop.f32.mrf.mxu1 }
0x3199   :  { %v8497_v18 = vld [vmem:[%s10911_s12 + $0x30] sm:$0xff] }
0x3226   :  { %v7675_v28 = vpop.f32.mrf.mxu1 }
0x3227   :  { %v7757_v5 = vmul.f32 0.35355338, %v7675_v28  ;;  %v8495_v28 = vld [vmem:[%s10911_s12 + $0x20] sm:$0xff] }
0x3228   :  { %v9332_v9 = vpop.f32.mrf.mxu1 }
0x3229   :  { %v7759_v62 = vadd.f32 %v10651_v63, %v7757_v5  ;;  %v8508_v5 = vld [vmem:[%s10912_s13 + $0x78] sm:$0xff]  ;;  %v8507_v9 = vld [vmem:[%s10912_s13 + $0x70] sm:$0xff] }
0x322b   :  { %v7761_v8 = vsel %vm307_vm2, %v7759_v62, -inf }
0x322c   :  { %7762 = vmax.xlane.f32.xlu0 %v7761_v8  ;;  %v8505_v8 = vld [vmem:[%s10912_s13 + $0x60] sm:$0xff] }
0x322e   :  { %v7438_v55 = vpop.f32.mrf.mxu0 }
0x322f   :  { %9325 = vmatprep.mubr.msk.f32.mxu0 %vm307_vm2, %v7438_v55 }
0x3230   :  { %v9317_v41 = vpop.f32.mrf.mxu0  ;;  %9326 = vmatmul.mubr.msk.f32.vlgmr.msra.gmra.mxu0 %vm307_vm2, %v7514_v1 }
0x3231   :  { %9334 = vmatpush3.xpose.msk.msra.mxu0 %vm307_vm2, %v7682_v12  ;;  %9335 = vmatprep.mubr.msk.f32.mxu0 %vm9572_vm1, %v9571_v14  ;;  %v8504_v12 = vld [vmem:[%s10912_s13 + $0x58] sm:$0xff] }
0x3232   :  { %9343 = vmatprep.subr.mxu0 %v9571_v14 }
0x3234   :  { %9336 = vmatmul.mubr.msk.f32.vlgmr.msra.gmra.mxu0 %vm307_vm2, %v7680_v42 }
0x3235   :  { %9345 = vmatprep.mubr.msk.f32.mxu0 %vm9572_vm1, %v9571_v14 }
0x32b5   :  { %v7763_v63 = vpop.xlane.xlu0 %7762 }
0x32b6   :  { %v7767_v0 = vsub.f32 %v7759_v62, %v7763_v63  ;;  %v8506_v62 = vld [vmem:[%s10912_s13 + $0x68] sm:$0xff] }
0x32b8   :  { %v7769_v50 = vmul.f32 1.442695, %v7767_v0 }
0x32ba   :  { %9527 = vpow2.f32 %v7769_v50 }
0x32c7   :  { %v9528_v39 = vpop.eup %9527 }
0x32c8   :  { %v7773_v51 = vsel %vm307_vm2, %v9528_v39, 0.0 }
0x32c9   :  { %7774 = vadd.xlane.f32.xlu0 %v7773_v51 }
0x32f0   :  { %v9327_v21 = vpop.f32.mrf.mxu0 }
0x32f1   :  { %v7600_v43 = vadd.f32 %v9327_v21, %v7178_v40 }
0x32f2   :  { %v7590_v22 = vpop.f32.mrf.mxu0 }
0x32f3   :  { %v7599_v23 = vadd.f32 %v7590_v22, %v7173_v47  ;;  %v8503_v47 = vld [vmem:[%s10912_s13 + $0x50] sm:$0xff]  ;;  %v8501_v22 = vld [vmem:[%s10912_s13 + $0x40] sm:$0xff] }
0x32f4   :  { %v7753_v25 = vpop.f32.mrf.mxu0 }
0x32f5   :  { %v7758_v14 = vmul.f32 0.35355338, %v7753_v25 }
0x32f6   :  { %v9337_v24 = vpop.f32.mrf.mxu0 }
0x32f7   :  { %v7760_v31 = vadd.f32 %v10658_v13, %v7758_v14 }
0x32f9   :  { %v7764_v32 = vsel %vm307_vm2, %v7760_v31, -inf }
0x32fa   :  { %7765 = vmax.xlane.f32.xlu1 %v7764_v32 }
0x330b   :  { %7862 = vrot.lane.b32.xlu1 %v10668_v27, %s9575_s24 }
0x3352   :  { %v7775_v33 = vpop.xlane.xlu0 %7774 }
0x3353   :  { %9529 = vrcp.f32 %v7775_v33 }
0x3360   :  { %v9530_v26 = vpop.eup %9529 }
0x3361   :  { %v7781_v34 = vmul.f32 %v9530_v26, %v9528_v39 }
0x3363   :  { %8489 = vst.msk [vmem:[%s10915_s16 + $0x70] sm:$0xff] %vm307_vm2, %v7781_v34 }
0x3383   :  { %v7766_v30 = vpop.xlane.xlu1 %7765 }
0x3384   :  { %v7768_v35 = vsub.f32 %v7760_v31, %v7766_v30 }
0x3386   :  { %v7771_v36 = vmul.f32 1.442695, %v7768_v35 }
0x3387   :  { %v7863_v48 = vpop.permute.xlu1 %7862 }
0x3388   :  { %9531 = vpow2.f32 %v7771_v36  ;;  %9344 = vmatpush3.msra.mxu0 %v7863_v48 }
0x3395   :  { %v9532_v13 = vpop.eup %9531 }
0x3396   :  { %v7776_v46 = vsel %vm307_vm2, %v9532_v13, 0.0 }
0x3397   :  { %7777 = vadd.xlane.f32.xlu0 %v7776_v46 }
0x33ad   :  { %7786 = vrot.lane.b32.xlu0 %v10671_v29, %s9575_s24 }
0x3420   :  { %v7778_v27 = vpop.xlane.xlu0 %7777 }
0x3421   :  { %9533 = vrcp.f32 %v7778_v27 }
0x3424   :  { %v7787_v38 = vpop.permute.xlu0 %7786 }
0x3425   :  { %9339 = vmatpush3.msra.mxu1 %v7787_v38 }
0x3426   :  { %9341 = vmatmul.mubr.msk.f32.vlgmr.msra.gmra.mxu1 %vm307_vm2, %v7781_v34  ;;  %9348 = vmatprep.subr.mxu1 %v8448_v6 }
0x3427   :  { %9349 = vmatpush3.msra.mxu1 %v8448_v6 }
0x3428   :  { %9364 = vmatprep.subr.mxu1 %v8508_v5 }
0x342e   :  { %v9534_v44 = vpop.eup %9533 }
0x342f   :  { %v7782_v45 = vmul.f32 %v9534_v44, %v9532_v13 }
0x3431   :  { %8490 = vst.msk [vmem:[%s10915_s16 + $0x78] sm:$0xff] %vm307_vm2, %v7782_v45  ;;  %9346 = vmatmul.mubr.msk.f32.vlgmr.msra.gmra.mxu0 %vm307_vm2, %v7782_v45 }
0x34e6   :  { %v7858_v29 = vpop.f32.mrf.mxu1 }
0x34e7   :  { %9350 = vmatprep.mubr.msk.f32.mxu1 %vm307_vm2, %v7858_v29 }
0x34e8   :  { %v9342_v37 = vpop.f32.mrf.mxu1 }
0x34f1   :  { %v7934_v4 = vpop.f32.mrf.mxu0 }
0x34f2   :  { %9351 = vmatmul.mubr.msk.f32.vlgmr.msra.gmra.mxu1 %vm307_vm2, %v7934_v4 }
0x34f3   :  { %v9347_v52 = vpop.f32.mrf.mxu0  ;;  %9365 = vmatpush3.msra.mxu1 %v8508_v5 }
0x34f4   :  { %9366 = vmatprep.subr.mxu1 %v8507_v9 }
0x34f5   :  { %9367 = vmatpush3.msra.mxu1 %v8507_v9 }
0x34f6   :  { %9368 = vmatprep.subr.mxu1 %v8506_v62 }
0x34f7   :  { %9369 = vmatpush3.msra.mxu1 %v8506_v62 }
0x34f8   :  { %9370 = vmatprep.subr.mxu1 %v8505_v8 }
0x34f9   :  { %9371 = vmatpush3.msra.mxu1 %v8505_v8 }
0x34fa   :  { %9372 = vmatprep.subr.mxu1 %v8504_v12 }
0x34fb   :  { %9373 = vmatpush3.msra.mxu1 %v8504_v12 }
0x34fc   :  { %9374 = vmatprep.subr.mxu1 %v8503_v47 }
0x34fd   :  { %9375 = vmatpush3.msra.mxu1 %v8503_v47 }
0x35b2   :  { %v9352_v7 = vpop.f32.mrf.mxu1 }
0x35b3   :  { %v8020_v53 = vadd.f32 %v9352_v7, %v7600_v43  ;;  %v8502_v43 = vld [vmem:[%s10912_s13 + $0x48] sm:$0xff]  ;;  %s9576_s13 = smov [#allocation2]  }
0x35b4   :  { %v8010_v19 = vpop.f32.mrf.mxu1  ;;  %9376 = vmatprep.subr.mxu1 %v8502_v43  ;;  %s8260_s0 = sshll.u32 %s9576_s13, 4  ;;  %s8261_s0 = int_to_ptr.vmem [resolvable:$true] %s8260_s0 }
0x35b5   :  { %v8022_v54 = vadd.f32 %v8020_v53, %v10602_v3  ;;  %v8019_v49 = vadd.f32 %v8010_v19, %v7599_v23  ;;  %9377 = vmatpush3.msra.mxu1 %v8502_v43  ;;  %s9549_s5 = scalar_lea.vmem %s8261_s0, 256  ;;  %p9554_p1 = scmp.lt.s32.totalorder %s8261_s0, %s8261_s0 }
0x35b6   :  { %9378 = vmatprep.subr.mxu1 %v8501_v22  ;;  %p9550_p0 = scmp.ne.s32.totalorder %s8261_s0, %s9549_s5  ;;  %p9555_p2 = scmp.lt.s32.totalorder %s9549_s5, %s9549_s5 }
0x35b7   :  { %v8021_v17 = vadd.f32 %v8019_v49, %v10600_v2  ;;  %v8026_v56 = vsel %vm75_vm0, %v8022_v54, 0.0  ;;  %v8498_v2 = vld [vmem:[%s10911_s12 + $0x38] sm:$0xff]  ;;  %9379 = vmatpush3.msra.mxu1 %v8501_v22 }
0x35b8   :  { %8027 = vadd.xlane.f32.xlu0 %v8026_v56  ;;  %9353 = vmatprep.subr.mxu0 %v8498_v2  ;;  %p9556_p3 = por %p9555_p2, %p9554_p1 }
0x35b9   :  { %v8023_v20 = vsel %vm75_vm0, %v8021_v17, 0.0  ;;  %9354 = vmatpush3.msra.mxu0 %v8498_v2 }
0x35ba   :  { %8024 = vadd.xlane.f32.xlu1 %v8023_v20  ;;  %9355 = vmatprep.subr.mxu0 %v8497_v18  ;;  %p9557_p4 = pnand %p9556_p3, %p9550_p0 }
0x35bb   :  { %9356 = vmatpush3.msra.mxu0 %v8497_v18 }
0x35bc   :  { %9357 = vmatprep.subr.mxu0 %v8496_v11 }
0x35bd   :  { %9358 = vmatpush3.msra.mxu0 %v8496_v11 }
0x35be   :  { %9359 = vmatprep.subr.mxu0 %v8495_v28 }
0x35bf   :  { %9360 = vmatpush3.msra.mxu0 %v8495_v28 }
0x3641   :  { %v8028_v15 = vpop.xlane.xlu0 %8027 }
0x3642   :  { %v8030_v57 = vmul.f32 0.03125, %v8028_v15 }
0x3643   :  { %v8025_v16 = vpop.xlane.xlu1 %8024 }
0x3644   :  { %v8032_v58 = vsub.f32 %v8022_v54, %v8030_v57  ;;  %v8029_v59 = vmul.f32 0.03125, %v8025_v16 }
0x3646   :  { %v8031_v60 = vsub.f32 %v8021_v17, %v8029_v59  ;;  %v8034_v61 = vmul.f32 %v8032_v58, %v8032_v58 }
0x3648   :  { %v8038_v10 = vsel %vm75_vm0, %v8034_v61, 0.0  ;;  %v8033_v1 = vmul.f32 %v8031_v60, %v8031_v60 }
0x3649   :  { %8039 = vadd.xlane.f32.xlu1 %v8038_v10 }
0x364a   :  { %v8035_v3 = vsel %vm75_vm0, %v8033_v1, 0.0 }
0x364b   :  { %8036 = vadd.xlane.f32.xlu0 %v8035_v3 }
0x36d2   :  { %v8040_v55 = vpop.xlane.xlu1 %8039 }
0x36d3   :  { %v8042_v41 = vmul.f32 0.03125, %v8040_v55 }
0x36d4   :  { %v8037_v42 = vpop.xlane.xlu0 %8036 }
0x36d5   :  { %v8044_v63 = vadd.f32 1e-05, %v8042_v41  ;;  %v8041_v0 = vmul.f32 0.03125, %v8037_v42 }
0x36d7   :  { %v8043_v50 = vadd.f32 1e-05, %v8041_v0  ;;  %9535 = vrsqrt.f32 %v8044_v63 }
0x36d9   :  { %9537 = vrsqrt.f32 %v8043_v50 }
0x36e4   :  { %v9536_v39 = vpop.eup %9535 }
0x36e5   :  { %v8048_v21 = vmul.f32 %v9536_v39, %v8032_v58 }
0x36e6   :  { %v9538_v51 = vpop.eup %9537 }
0x36e7   :  { %v8047_v40 = vmul.f32 %v9538_v51, %v8031_v60 }
0x36e9   :  { %9361 = vmatprep.mubr.msk.f32.mxu0 %vm75_vm0, %v8047_v40 }
0x36ea   :  { %9362 = vmatmul.mubr.msk.f32.vlgmr.msra.gmra.mxu0 %vm75_vm0, %v8048_v21 }
0x37aa   :  { %v9363_v23 = vpop.f32.mrf.mxu0 }
0x37ab   :  { %v8136_v24 = vmax.f32 %v9363_v23, 0.0 }
0x37ac   :  { %v8126_v25 = vpop.f32.mrf.mxu0 }
0x37ad   :  { %v8135_v14 = vmax.f32 %v8126_v25, 0.0 }
0x37af   :  { %9380 = vmatprep.mubr.msk.f32.mxu1 %vm4047_vm3, %v8135_v14 }
0x37b0   :  { %9381 = vmatmul.mubr.msk.f32.vlgmr.msra.gmra.mxu1 %vm4047_vm3, %v8136_v24 }
0x3870   :  { %v9382_v31 = vpop.f32.mrf.mxu1 }
0x3871   :  { %v8224_v32 = vadd.f32 %v9382_v31, %v8048_v21 }
0x3872   :  { %v8218_v33 = vpop.f32.mrf.mxu1 }
0x3873   :  { %v8219_v26 = vadd.f32 %v8218_v33, %v8047_v40  ;;  %v8230_v34 = vsel %vm75_vm0, %v8224_v32, 0.0 }
0x3874   :  { %8231 = vadd.xlane.f32.xlu1 %v8230_v34 }
0x3875   :  { %v8227_v30 = vsel %vm75_vm0, %v8219_v26, 0.0 }
0x3876   :  { %8228 = vadd.xlane.f32.xlu0 %v8227_v30 }
0x38fd   :  { %v8232_v35 = vpop.xlane.xlu1 %8231 }
0x38fe   :  { %v8234_v36 = vmul.f32 0.03125, %v8232_v35 }
0x38ff   :  { %v8229_v48 = vpop.xlane.xlu0 %8228 }
0x3900   :  { %v8236_v13 = vsub.f32 %v8224_v32, %v8234_v36  ;;  %v8233_v46 = vmul.f32 0.03125, %v8229_v48 }
0x3902   :  { %v8235_v27 = vsub.f32 %v8219_v26, %v8233_v46  ;;  %v8238_v38 = vmul.f32 %v8236_v13, %v8236_v13 }
0x3904   :  { %v8242_v44 = vsel %vm75_vm0, %v8238_v38, 0.0  ;;  %v8237_v45 = vmul.f32 %v8235_v27, %v8235_v27 }
0x3905   :  { %8243 = vadd.xlane.f32.xlu1 %v8242_v44 }
0x3906   :  { %v8239_v6 = vsel %vm75_vm0, %v8237_v45, 0.0 }
0x3907   :  { %8240 = vadd.xlane.f32.xlu0 %v8239_v6 }
0x398e   :  { %v8244_v29 = vpop.xlane.xlu1 %8243 }
0x398f   :  { %v8246_v37 = vmul.f32 0.03125, %v8244_v29 }
0x3990   :  { %v8241_v4 = vpop.xlane.xlu0 %8240 }
0x3991   :  { %v8248_v52 = vadd.f32 1e-05, %v8246_v37  ;;  %v8245_v7 = vmul.f32 0.03125, %v8241_v4 }
0x3993   :  { %9539 = vrsqrt.f32 %v8248_v52  ;;  %v8247_v53 = vadd.f32 1e-05, %v8245_v7 }
0x3995   :  { %9541 = vrsqrt.f32 %v8247_v53 }
0x39a0   :  { %v9540_v19 = vpop.eup %9539 }
0x39a1   :  { %v8252_v54 = vmul.f32 %v9540_v19, %v8236_v13 }
0x39a2   :  { %v9542_v49 = vpop.eup %9541 }
0x39a3   :  { %v8251_v17 = vmul.f32 %v9542_v49, %v8235_v27  ;;  %8254 = vst.msk [vmem:[#allocation2 + $0x8] sm:$0xff] %vm75_vm0, %v8252_v54 }
0x39a5   :  { %8253 = vst.msk [vmem:[#allocation2] sm:$0xff] %vm75_vm0, %v8251_v17 }
0x39a6   :  { %9560 = shalt.err (!%p9557_p4)
}
0x39a7   :  { %s9577_s17 = smov 128   ;;  %s9578_s18 = smov 8  }
0x39a8   :  { %8266 = dma.vmem_to_hbm [thread:$0]  %s8261_s0, 256, %s10913_s14, [#allocation3], %s9577_s17, %s9577_s17, %s9578_s18  }
0x39a9   :  { %9569 = dma.done.wait [#allocation3], 256  }
0x39aa   :  { %9570 = vsyncadd [#allocation3], 4294967040 }
0x39ab   :  { %8278 = vsyncpa [#allocation3], 1 }

</bundles_post_ra>
